<compile_context>
chip_gen: v5e
topology: v5e:2x2
jax: 0.10.0
libtpu: 0.0.40
codegen_flags: <defaults>
</compile_context>

<pallas_src>
import functools

import numpy as np
import jax
import jax.numpy as jnp
from jax import lax
from jax.experimental import pallas as pl
from jax.experimental.pallas import tpu as pltpu


LANE = 128


# ----------------------------------------------------------------------------
# small helpers
# ----------------------------------------------------------------------------
def _cpad(c):
    """Pad a channel count up to a multiple of 128 (lane-dense stores)."""
    return ((c + LANE - 1) // LANE) * LANE


def _round_up(x, m):
    return ((x + m - 1) // m) * m


def _tile_n(c):
    """Output-channel tile (c is always a multiple of 128)."""
    return 256 if c % 256 == 0 else 128


def _tile_m(m):
    """Row tile for the 1x1-conv matmul; None -> caller pads M."""
    for t in (512, 256, 128, 64, 32, 16, 8):
        if m % t == 0:
            return t
    return None


def _make_taps(kh, kw, stride):
    """Static tap table: (weight_index, phase_plane, row_offset, col_offset)."""
    taps = []
    for dy in range(kh):
        for dx in range(kw):
            plane = (dy % stride) * stride + (dx % stride)
            taps.append((dy * kw + dx, plane, dy // stride, dx // stride))
    return tuple(taps)


def _phase_planes(xp, stride, kh, kw, ho, wo):
    """Split a padded NHWC tensor into stride*stride phase planes so that every
    conv/pool tap becomes a contiguous (unit-stride) window.

    Returns (planes, plane_rows, plane_cols) with planes shaped
    (N, n_planes*plane_rows, plane_cols, C).  This is a 1x reorganization of
    the padded input (vs. 9x-49x for im2col)."""
    n, hp, wp, c = xp.shape
    pr = ho + (kh - 1) // stride
    pc = wo + (kw - 1) // stride
    if stride == 1:
        # single plane == the padded tensor itself (pr == hp, pc == wp)
        return xp, pr, pc
    parts = []
    for ry in range(stride):
        for rx in range(stride):
            p = xp[:, ry::stride, rx::stride, :]
            p = p[:, :pr, :pc, :]
            dr, dc = pr - p.shape[1], pc - p.shape[2]
            if dr or dc:
                # padded rows/cols are never read (proved by the tap geometry)
                p = jnp.pad(p, ((0, 0), (0, dr), (0, dc), (0, 0)))
            parts.append(p)
    planes = jnp.concatenate(parts, axis=1)  # (N, s*s*pr, pc, C)
    return planes, pr, pc


# ----------------------------------------------------------------------------
# Pallas kernels
# ----------------------------------------------------------------------------
def _mm_bias_kernel(x_ref, w_ref, b_ref, o_ref, *, relu):
    """out = [relu]( X @ W + bias )   (bf16 in, f32 accumulate, bf16 out)."""
    acc = jnp.dot(x_ref[...], w_ref[...], preferred_element_type=jnp.float32)
    y = acc + b_ref[...]
    if relu:
        y = jnp.maximum(y, 0.0)
    o_ref[...] = y.astype(o_ref.dtype)


def _mm_bias_res_kernel(x_ref, w_ref, b_ref, r_ref, o_ref, *, relu):
    """out = [relu]( X @ W + bias + residual )."""
    acc = jnp.dot(x_ref[...], w_ref[...], preferred_element_type=jnp.float32)
    y = acc + b_ref[...] + r_ref[...].astype(jnp.float32)
    if relu:
        y = jnp.maximum(y, 0.0)
    o_ref[...] = y.astype(o_ref.dtype)


def _tap_conv_kernel(x_ref, w_ref, b_ref, o_ref, *, taps, plane_rows, ho, wo, relu):
    """Spatial conv for one image / one Cout tile.

    x_ref: (n_planes*plane_rows, plane_cols, cin)   phase planes of one image
    w_ref: (kh*kw, cin, tn)  bf16, BN scale folded
    b_ref: (1, tn)           f32
    o_ref: (ho, wo, tn)      bf16
    The kh*kw taps are accumulated in-register (f32), one output row per step.
    """
    tn = o_ref.shape[-1]

    def row_body(y, carry):
        acc = jnp.zeros((wo, tn), jnp.float32)
        for (t, p, roff, coff) in taps:
            row = x_ref[p * plane_rows + y + roff]        # (plane_cols, cin)
            cols = row[coff:coff + wo, :]                 # (wo, cin) contiguous
            acc = acc + jnp.dot(cols, w_ref[t],
                                preferred_element_type=jnp.float32)
        out = acc + b_ref[...]
        if relu:
            out = jnp.maximum(out, 0.0)
        o_ref[y] = out.astype(o_ref.dtype)
        return carry

    lax.fori_loop(0, ho, row_body, 0)


def _maxpool_kernel(x_ref, o_ref, *, taps, plane_rows, ho, wo):
    """3x3/s2 max pool for one image: 9-tap max over phase planes, read once."""
    def row_body(y, carry):
        m = None
        for (p, roff, coff) in taps:
            row = x_ref[p * plane_rows + y + roff]
            v = row[coff:coff + wo, :]
            m = v if m is None else jnp.maximum(m, v)
        o_ref[y] = m
        return carry

    lax.fori_loop(0, ho, row_body, 0)


# ----------------------------------------------------------------------------
# wrappers around pallas_call
# ----------------------------------------------------------------------------
def conv1x1(x, w2d, bias, *, stride=1, relu=True, residual=None):
    """Fused 1x1 conv + folded BN + (optional residual) + (optional relu).

    x: NHWC bf16 (channels zero-padded to a multiple of 128 after the stem)
    w2d: (cin_pad, cout_pad) bf16;  bias: (1, cout_pad) f32
    """
    if stride > 1:
        x = x[:, ::stride, ::stride, :]
    n, h, w, cin = x.shape
    cout_pad = w2d.shape[-1]
    m = n * h * w
    x2d = x.reshape(m, cin)
    r2d = residual.reshape(m, cout_pad) if residual is not None else None

    tm = _tile_m(m)
    m_pad = m
    if tm is None:  # pad rows so the grid covers everything (no silent truncation)
        m_pad = _round_up(m, 128)
        tm = 128
        x2d = jnp.pad(x2d, ((0, m_pad - m), (0, 0)))
        if r2d is not None:
            r2d = jnp.pad(r2d, ((0, m_pad - m), (0, 0)))
    tn = _tile_n(cout_pad)
    grid = (m_pad // tm, cout_pad // tn)

    in_specs = [
        pl.BlockSpec((tm, cin), lambda i, j: (i, 0)),
        pl.BlockSpec((cin, tn), lambda i, j: (0, j)),
        pl.BlockSpec((1, tn), lambda i, j: (0, j)),
    ]
    args = [x2d, w2d, bias]
    if r2d is None:
        kernel = functools.partial(_mm_bias_kernel, relu=relu)
    else:
        kernel = functools.partial(_mm_bias_res_kernel, relu=relu)
        in_specs.append(pl.BlockSpec((tm, tn), lambda i, j: (i, j)))
        args.append(r2d)

    out2d = pl.pallas_call(
        kernel,
        out_shape=jax.ShapeDtypeStruct((m_pad, cout_pad), jnp.bfloat16),
        grid_spec=pltpu.PrefetchScalarGridSpec(
            num_scalar_prefetch=0,
            grid=grid,
            in_specs=in_specs,
            out_specs=pl.BlockSpec((tm, tn), lambda i, j: (i, j)),
        ),
        compiler_params=pltpu.CompilerParams(
            dimension_semantics=("parallel", "parallel")),
    )(*args)
    if m_pad != m:
        out2d = out2d[:m]
    return out2d.reshape(n, h, w, cout_pad)


def conv_taps(x, w_taps, bias, *, kh, kw, stride, pad, relu=True):
    """Spatial conv (7x7 stem / 3x3 conv2) + folded BN + relu, no im2col.

    x: NHWC bf16;  w_taps: (kh*kw, cin, cout_pad) bf16;  bias: (1, cout_pad) f32.
    """
    n, h, w, cin = x.shape
    ho = (h + 2 * pad - kh) // stride + 1
    wo = (w + 2 * pad - kw) // stride + 1
    cout_pad = w_taps.shape[-1]

    xp = jnp.pad(x, ((0, 0), (pad, pad), (pad, pad), (0, 0))) if pad else x
    planes, prows, pcols = _phase_planes(xp, stride, kh, kw, ho, wo)
    n_rows = planes.shape[1]
    tn = _tile_n(cout_pad)
    taps = _make_taps(kh, kw, stride)

    kernel = functools.partial(
        _tap_conv_kernel, taps=taps, plane_rows=prows, ho=ho, wo=wo, relu=relu)

    return pl.pallas_call(
        kernel,
        out_shape=jax.ShapeDtypeStruct((n, ho, wo, cout_pad), jnp.bfloat16),
        grid_spec=pltpu.PrefetchScalarGridSpec(
            num_scalar_prefetch=0,
            grid=(n, cout_pad // tn),
            in_specs=[
                pl.BlockSpec((None, n_rows, pcols, cin), lambda b, j: (b, 0, 0, 0)),
                pl.BlockSpec((kh * kw, cin, tn), lambda b, j: (0, 0, j)),
                pl.BlockSpec((1, tn), lambda b, j: (0, j)),
            ],
            out_specs=pl.BlockSpec((None, ho, wo, tn), lambda b, j: (b, 0, 0, j)),
        ),
        compiler_params=pltpu.CompilerParams(
            dimension_semantics=("parallel", "parallel")),
    )(planes, w_taps, bias)


def maxpool_3x3_s2_p1(x):
    """NHWC 3x3/stride-2/pad-1 max pool (PyTorch f.max_pool2d semantics)."""
    n, h, w, c = x.shape
    ho = (h + 2 - 3) // 2 + 1
    wo = (w + 2 - 3) // 2 + 1
    xp = jnp.pad(x, ((0, 0), (1, 1), (1, 1), (0, 0)), constant_values=-jnp.inf)
    planes, prows, pcols = _phase_planes(xp, 2, 3, 3, ho, wo)
    taps = tuple((p, r, cc) for (_, p, r, cc) in _make_taps(3, 3, 2))

    kernel = functools.partial(_maxpool_kernel, taps=taps, plane_rows=prows,
                               ho=ho, wo=wo)
    return pl.pallas_call(
        kernel,
        out_shape=jax.ShapeDtypeStruct((n, ho, wo, c), x.dtype),
        grid_spec=pltpu.PrefetchScalarGridSpec(
            num_scalar_prefetch=0,
            grid=(n,),
            in_specs=[pl.BlockSpec((None, planes.shape[1], pcols, c),
                                   lambda b: (b, 0, 0, 0))],
            out_specs=pl.BlockSpec((None, ho, wo, c), lambda b: (b, 0, 0, 0)),
        ),
        compiler_params=pltpu.CompilerParams(dimension_semantics=("parallel",)),
    )(planes)


# ----------------------------------------------------------------------------
# ResNet forward (stem + bottleneck stages) using the Pallas kernels
# ----------------------------------------------------------------------------
def _to_nchw(x, c_real):
    return jnp.transpose(x[..., :c_real], (0, 3, 1, 2)).astype(jnp.float32)


def bottleneck_pallas(x, p):
    """Detectron2 BottleneckBlock (stride_in_1x1=True, groups=1, dilation=1)."""
    stride = p["stride"]
    if "shortcut" in p:
        w, b = p["shortcut"]
        shortcut = conv1x1(x, w, b, stride=stride, relu=False)
    else:
        shortcut = x
    w, b = p["conv1"]
    out = conv1x1(x, w, b, stride=stride, relu=True)
    w, b = p["conv2"]
    out = conv_taps(out, w, b, kh=3, kw=3, stride=1, pad=1, relu=True)
    w, b = p["conv3"]
    # conv3 + residual add + relu fused into a single kernel call
    out = conv1x1(out, w, b, stride=1, relu=True, residual=shortcut)
    return out


def resnet_forward_pallas(x_nchw, packed, out_features):
    """Matches ResNet.forward: returns {feature_name: NCHW float32 tensor}."""
    x = jnp.transpose(x_nchw, (0, 2, 3, 1)).astype(jnp.bfloat16)  # NCHW -> NHWC
    outputs = {}
    w, b = packed["stem"]
    x = conv_taps(x, w, b, kh=7, kw=7, stride=2, pad=3, relu=True)  # BasicStem
    x = maxpool_3x3_s2_p1(x)
    if "stem" in out_features:
        outputs["stem"] = _to_nchw(x, packed["real_channels"]["stem"])
    for name in packed["stage_names"]:
        for blk in packed[name]:
            x = bottleneck_pallas(x, blk)
        if name in out_features:
            outputs[name] = _to_nchw(x, packed["real_channels"][name])
    return outputs
# TODO(synk): freeze()/output_shape() are training/bookkeeping-only (requires_grad,
# ShapeSpec metadata) and have no forward-pass compute to translate.


# ----------------------------------------------------------------------------
# Parameter packing: fold BN scale into bf16 weights, pad channels to 128
# ----------------------------------------------------------------------------
def _pack_conv(w, scale, bias, cin_pad):
    """w: (cout, cin, kh, kw) PyTorch layout.  Returns ((kh*kw, cin_pad, cout_pad)
    bf16 weights with BN scale folded, (1, cout_pad) f32 bias)."""
    cout, cin, kh, kw = w.shape
    cout_pad = _cpad(cout)
    wf = w.astype(jnp.float32) * scale[:, None, None, None]      # fold BN scale
    wf = jnp.transpose(wf, (2, 3, 1, 0))                          # (kh, kw, cin, cout)
    wf = jnp.pad(wf, ((0, 0), (0, 0), (0, cin_pad - cin), (0, cout_pad - cout)))
    w_taps = wf.reshape(kh * kw, cin_pad, cout_pad).astype(jnp.bfloat16)
    b = jnp.pad(bias, (0, cout_pad - cout)).reshape(1, cout_pad).astype(jnp.float32)
    return w_taps, b


def pack_params(params):
    packed = {"stage_names": params["stage_names"]}
    real_channels = {"stem": params["stem"][0].shape[0]}
    w, s, b = params["stem"]
    packed["stem"] = _pack_conv(w, s, b, cin_pad=w.shape[1])  # image channels unpadded
    for name in params["stage_names"]:
        blocks = []
        for blk in params[name]:
            q = {"stride": blk["stride"]}
            for cname in ("conv1", "conv2", "conv3", "shortcut"):
                if cname not in blk:
                    continue
                wc, sc, bc = blk[cname]
                cin_pad = _cpad(wc.shape[1])
                w_taps, bb = _pack_conv(wc, sc, bc, cin_pad)
                if wc.shape[2] == 1 and wc.shape[3] == 1:        # 1x1 conv -> matmul
                    q[cname] = (w_taps.reshape(cin_pad, -1), bb)
                else:
                    q[cname] = (w_taps, bb)
            blocks.append(q)
        packed[name] = blocks
        real_channels[name] = params[name][-1]["conv3"][0].shape[0]
    packed["real_channels"] = real_channels
    return packed


# ----------------------------------------------------------------------------
# Pure-JAX reference (same math & same bf16 rounding points) for validation
# ----------------------------------------------------------------------------
def conv_bn_ref(x, w, scale, bias, stride, pad, relu, residual=None):
    wf = (w.astype(jnp.float32) * scale[:, None, None, None]).astype(jnp.bfloat16)
    y = lax.conv_general_dilated(
        x.astype(jnp.bfloat16),
        jnp.transpose(wf, (2, 3, 1, 0)),
        (stride, stride),
        [(pad, pad), (pad, pad)],
        dimension_numbers=("NHWC", "HWIO", "NHWC"),
        preferred_element_type=jnp.float32,
    )
    y = y + bias
    if residual is not None:
        y = y + residual.astype(jnp.float32)
    if relu:
        y = jnp.maximum(y, 0.0)
    return y.astype(jnp.bfloat16)


def maxpool_ref(x):
    return lax.reduce_window(
        x, jnp.array(-jnp.inf, x.dtype), lax.max,
        (1, 3, 3, 1), (1, 2, 2, 1), [(0, 0), (1, 1), (1, 1), (0, 0)],
    )


def resnet_forward_ref(x_nchw, params, out_features):
    x = jnp.transpose(x_nchw, (0, 2, 3, 1)).astype(jnp.bfloat16)
    outputs = {}
    w, s, b = params["stem"]
    x = conv_bn_ref(x, w, s, b, 2, 3, True)
    x = maxpool_ref(x)
    if "stem" in out_features:
        outputs["stem"] = jnp.transpose(x, (0, 3, 1, 2)).astype(jnp.float32)
    for name in params["stage_names"]:
        for blk in params[name]:
            stride = blk["stride"]
            if "shortcut" in blk:
                ws, ss, bs = blk["shortcut"]
                sc = conv_bn_ref(x, ws, ss, bs, stride, 0, False)
            else:
                sc = x
            w1, s1, b1 = blk["conv1"]
            out = conv_bn_ref(x, w1, s1, b1, stride, 0, True)
            w2, s2, b2 = blk["conv2"]
            out = conv_bn_ref(out, w2, s2, b2, 1, 1, True)
            w3, s3, b3 = blk["conv3"]
            out = conv_bn_ref(out, w3, s3, b3, 1, 0, True, residual=sc)
            x = out
        if name in out_features:
            outputs[name] = jnp.transpose(x, (0, 3, 1, 2)).astype(jnp.float32)
    return outputs


# ----------------------------------------------------------------------------
# Deterministic synthetic parameters
# ----------------------------------------------------------------------------
def _conv_w(key, cout, cin, kh, kw):
    std = (2.0 / (cin * kh * kw)) ** 0.5
    return jax.random.normal(key, (cout, cin, kh, kw), jnp.float32) * std


def _bn_folded(key, c):
    k1, k2, k3, k4 = jax.random.split(key, 4)
    gamma = jax.random.uniform(k1, (c,), minval=0.5, maxval=1.5)
    beta = jax.random.uniform(k2, (c,), minval=-0.1, maxval=0.1)
    mean = jax.random.uniform(k3, (c,), minval=-0.1, maxval=0.1)
    var = jax.random.uniform(k4, (c,), minval=0.5, maxval=1.5)
    scale = gamma / jnp.sqrt(var + 1e-5)
    bias = beta - mean * scale
    return scale.astype(jnp.float32), bias.astype(jnp.float32)


def _make_bottleneck_params(key, in_c, bottleneck_c, out_c, stride):
    ks = jax.random.split(key, 8)
    p = {"stride": stride}
    p["conv1"] = (_conv_w(ks[0], bottleneck_c, in_c, 1, 1), *_bn_folded(ks[1], bottleneck_c))
    p["conv2"] = (_conv_w(ks[2], bottleneck_c, bottleneck_c, 3, 3), *_bn_folded(ks[3], bottleneck_c))
    p["conv3"] = (_conv_w(ks[4], out_c, bottleneck_c, 1, 1), *_bn_folded(ks[5], out_c))
    if in_c != out_c or stride != 1:
        p["shortcut"] = (_conv_w(ks[6], out_c, in_c, 1, 1), *_bn_folded(ks[7], out_c))
    return p


def build_params(key, in_c=3, stem_c=8):
    ks = jax.random.split(key, 16)
    params = {"stem": (_conv_w(ks[0], stem_c, in_c, 7, 7), *_bn_folded(ks[1], stem_c))}
    # (name, in_channels, bottleneck_channels, out_channels, num_blocks, first_stride)
    stage_defs = [
        ("res2", stem_c, 8, 32, 2, 1),
        ("res3", 32, 16, 64, 2, 2),
    ]
    kidx = 2
    names = []
    for name, c_in, bc, oc, nblocks, first_stride in stage_defs:
        blocks = []
        c = c_in
        for bi in range(nblocks):
            stride = first_stride if bi == 0 else 1
            blocks.append(_make_bottleneck_params(ks[kidx], c, bc, oc, stride))
            kidx += 1
            c = oc
        params[name] = blocks
        names.append(name)
    params["stage_names"] = tuple(names)
    return params


# ----------------------------------------------------------------------------
if __name__ == "__main__":
    key = jax.random.PRNGKey(0)
    kp, kx = jax.random.split(key)
    params = build_params(kp)
    packed = pack_params(params)
    out_features = ("res2", "res3")

    x = jax.random.normal(kx, (2, 3, 32, 32), jnp.float32)  # NCHW, like PyTorch

    pallas_fwd = jax.jit(lambda inp: resnet_forward_pallas(inp, packed, out_features))
    ref_fwd = jax.jit(lambda inp: resnet_forward_ref(inp, params, out_features))

    outs = pallas_fwd(x)
    jax.block_until_ready(outs)

    refs = ref_fwd(x)
    jax.block_until_ready(refs)

    assert set(outs.keys()) == set(out_features)
    expected_shapes = {"res2": (2, 32, 8, 8), "res3": (2, 64, 4, 4)}
    for name in out_features:
        assert outs[name].shape == expected_shapes[name], (name, outs[name].shape)
        np.testing.assert_allclose(
            np.asarray(outs[name]), np.asarray(refs[name]), rtol=5e-3, atol=5e-3
        )

    print("KERNEL_OK")
</pallas_src>

<mosaic_0001>
module attributes {stable_mosaic.version = 11 : i64} {
  func.func @_tap_conv_kernel(%arg0: i32, %arg1: i32, %arg2: memref<1x76x19x3xbf16, #tpu.memory_space<vmem>>, %arg3: memref<49x3x128xbf16, #tpu.memory_space<vmem>>, %arg4: memref<1x128xf32, #tpu.memory_space<vmem>>, %arg5: memref<1x16x16x128xbf16, #tpu.memory_space<vmem>>) attributes {dimension_semantics = [#tpu.dimension_semantics<parallel>, #tpu.dimension_semantics<parallel>], iteration_bounds = array<i64: 2, 1>, scalar_prefetch = 0 : i64, scratch_operands = 0 : i64, tpu.core_type = #tpu.core_type<tc>, window_params = [{transform_indices = @transform_0, window_bounds = array<i64: 1, 76, 19, 3>}, {transform_indices = @transform_1, window_bounds = array<i64: 49, 3, 128>}, {transform_indices = @transform_2, window_bounds = array<i64: 1, 128>}, {transform_indices = @transform_3, window_bounds = array<i64: 1, 16, 16, 128>}]} {
    %c0_i32 = arith.constant 0 : i32
    %c16_i32 = arith.constant 16 : i32
    %0 = arith.addi %c0_i32, %c16_i32 : i32
    %c1_i32 = arith.constant 1 : i32
    scf.for %arg6 = %c0_i32 to %0 step %c1_i32  : i32 {
      %cst = arith.constant 0.000000e+00 : f32
      %1 = vector.broadcast %cst : f32 to vector<16x128xf32>
      %c0_i32_1 = arith.constant 0 : i32
      %2 = arith.addi %c0_i32_1, %arg6 : i32
      %c0_i32_2 = arith.constant 0 : i32
      %3 = arith.addi %2, %c0_i32_2 : i32
      %c0 = arith.constant 0 : index
      %4 = arith.index_cast %3 : i32 to index
      %c0_3 = arith.constant 0 : index
      %c0_4 = arith.constant 0 : index
      %5 = vector.load %arg2[%c0, %4, %c0_3, %c0_4] : memref<1x76x19x3xbf16, #tpu.memory_space<vmem>>, vector<1x1x19x3xbf16>
      %6 = vector.shape_cast %5 : vector<1x1x19x3xbf16> to vector<19x3xbf16>
      %7 = vector.extract_strided_slice %6 {offsets = [0, 0], sizes = [16, 3], strides = [1, 1]} : vector<19x3xbf16> to vector<16x3xbf16>
      %c0_5 = arith.constant 0 : index
      %c0_6 = arith.constant 0 : index
      %c0_7 = arith.constant 0 : index
      %8 = vector.load %arg3[%c0_5, %c0_6, %c0_7] : memref<49x3x128xbf16, #tpu.memory_space<vmem>>, vector<1x3x128xbf16>
      %9 = vector.shape_cast %8 : vector<1x3x128xbf16> to vector<3x128xbf16>
      %cst_8 = arith.constant dense<0.000000e+00> : vector<16x128xf32>
      %10 = tpu.matmul %7, %9, %cst_8 {dimension_numbers = #tpu.dot_dimension_numbers<[1], [0], [0], [1], [0, 0, 1, 1], [], []>} : vector<16x3xbf16>, vector<3x128xbf16>, vector<16x128xf32> -> vector<16x128xf32>
      %11 = arith.addf %1, %10 : vector<16x128xf32>
      %c19_i32 = arith.constant 19 : i32
      %12 = arith.addi %c19_i32, %arg6 : i32
      %c0_i32_9 = arith.constant 0 : i32
      %13 = arith.addi %12, %c0_i32_9 : i32
      %c0_10 = arith.constant 0 : index
      %14 = arith.index_cast %13 : i32 to index
      %c0_11 = arith.constant 0 : index
      %c0_12 = arith.constant 0 : index
      %15 = vector.load %arg2[%c0_10, %14, %c0_11, %c0_12] : memref<1x76x19x3xbf16, #tpu.memory_space<vmem>>, vector<1x1x19x3xbf16>
      %16 = vector.shape_cast %15 : vector<1x1x19x3xbf16> to vector<19x3xbf16>
      %17 = vector.extract_strided_slice %16 {offsets = [0, 0], sizes = [16, 3], strides = [1, 1]} : vector<19x3xbf16> to vector<16x3xbf16>
      %c1 = arith.constant 1 : index
      %c0_13 = arith.constant 0 : index
      %c0_14 = arith.constant 0 : index
      %18 = vector.load %arg3[%c1, %c0_13, %c0_14] : memref<49x3x128xbf16, #tpu.memory_space<vmem>>, vector<1x3x128xbf16>
      %19 = vector.shape_cast %18 : vector<1x3x128xbf16> to vector<3x128xbf16>
      %cst_15 = arith.constant dense<0.000000e+00> : vector<16x128xf32>
      %20 = tpu.matmul %17, %19, %cst_15 {dimension_numbers = #tpu.dot_dimension_numbers<[1], [0], [0], [1], [0, 0, 1, 1], [], []>} : vector<16x3xbf16>, vector<3x128xbf16>, vector<16x128xf32> -> vector<16x128xf32>
      %21 = arith.addf %11, %20 : vector<16x128xf32>
      %c0_i32_16 = arith.constant 0 : i32
      %22 = arith.addi %c0_i32_16, %arg6 : i32
      %c0_i32_17 = arith.constant 0 : i32
      %23 = arith.addi %22, %c0_i32_17 : i32
      %c0_18 = arith.constant 0 : index
      %24 = arith.index_cast %23 : i32 to index
      %c0_19 = arith.constant 0 : index
      %c0_20 = arith.constant 0 : index
      %25 = vector.load %arg2[%c0_18, %24, %c0_19, %c0_20] : memref<1x76x19x3xbf16, #tpu.memory_space<vmem>>, vector<1x1x19x3xbf16>
      %26 = vector.shape_cast %25 : vector<1x1x19x3xbf16> to vector<19x3xbf16>
      %27 = vector.extract_strided_slice %26 {offsets = [1, 0], sizes = [16, 3], strides = [1, 1]} : vector<19x3xbf16> to vector<16x3xbf16>
      %c2 = arith.constant 2 : index
      %c0_21 = arith.constant 0 : index
      %c0_22 = arith.constant 0 : index
      %28 = vector.load %arg3[%c2, %c0_21, %c0_22] : memref<49x3x128xbf16, #tpu.memory_space<vmem>>, vector<1x3x128xbf16>
      %29 = vector.shape_cast %28 : vector<1x3x128xbf16> to vector<3x128xbf16>
      %cst_23 = arith.constant dense<0.000000e+00> : vector<16x128xf32>
      %30 = tpu.matmul %27, %29, %cst_23 {dimension_numbers = #tpu.dot_dimension_numbers<[1], [0], [0], [1], [0, 0, 1, 1], [], []>} : vector<16x3xbf16>, vector<3x128xbf16>, vector<16x128xf32> -> vector<16x128xf32>
      %31 = arith.addf %21, %30 : vector<16x128xf32>
      %c19_i32_24 = arith.constant 19 : i32
      %32 = arith.addi %c19_i32_24, %arg6 : i32
      %c0_i32_25 = arith.constant 0 : i32
      %33 = arith.addi %32, %c0_i32_25 : i32
      %c0_26 = arith.constant 0 : index
      %34 = arith.index_cast %33 : i32 to index
      %c0_27 = arith.constant 0 : index
      %c0_28 = arith.constant 0 : index
      %35 = vector.load %arg2[%c0_26, %34, %c0_27, %c0_28] : memref<1x76x19x3xbf16, #tpu.memory_space<vmem>>, vector<1x1x19x3xbf16>
      %36 = vector.shape_cast %35 : vector<1x1x19x3xbf16> to vector<19x3xbf16>
      %37 = vector.extract_strided_slice %36 {offsets = [1, 0], sizes = [16, 3], strides = [1, 1]} : vector<19x3xbf16> to vector<16x3xbf16>
      %c3 = arith.constant 3 : index
      %c0_29 = arith.constant 0 : index
      %c0_30 = arith.constant 0 : index
      %38 = vector.load %arg3[%c3, %c0_29, %c0_30] : memref<49x3x128xbf16, #tpu.memory_space<vmem>>, vector<1x3x128xbf16>
      %39 = vector.shape_cast %38 : vector<1x3x128xbf16> to vector<3x128xbf16>
      %cst_31 = arith.constant dense<0.000000e+00> : vector<16x128xf32>
      %40 = tpu.matmul %37, %39, %cst_31 {dimension_numbers = #tpu.dot_dimension_numbers<[1], [0], [0], [1], [0, 0, 1, 1], [], []>} : vector<16x3xbf16>, vector<3x128xbf16>, vector<16x128xf32> -> vector<16x128xf32>
      %41 = arith.addf %31, %40 : vector<16x128xf32>
      %c0_i32_32 = arith.constant 0 : i32
      %42 = arith.addi %c0_i32_32, %arg6 : i32
      %c0_i32_33 = arith.constant 0 : i32
      %43 = arith.addi %42, %c0_i32_33 : i32
      %c0_34 = arith.constant 0 : index
      %44 = arith.index_cast %43 : i32 to index
      %c0_35 = arith.constant 0 : index
      %c0_36 = arith.constant 0 : index
      %45 = vector.load %arg2[%c0_34, %44, %c0_35, %c0_36] : memref<1x76x19x3xbf16, #tpu.memory_space<vmem>>, vector<1x1x19x3xbf16>
      %46 = vector.shape_cast %45 : vector<1x1x19x3xbf16> to vector<19x3xbf16>
      %47 = vector.extract_strided_slice %46 {offsets = [2, 0], sizes = [16, 3], strides = [1, 1]} : vector<19x3xbf16> to vector<16x3xbf16>
      %c4 = arith.constant 4 : index
      %c0_37 = arith.constant 0 : index
      %c0_38 = arith.constant 0 : index
      %48 = vector.load %arg3[%c4, %c0_37, %c0_38] : memref<49x3x128xbf16, #tpu.memory_space<vmem>>, vector<1x3x128xbf16>
      %49 = vector.shape_cast %48 : vector<1x3x128xbf16> to vector<3x128xbf16>
      %cst_39 = arith.constant dense<0.000000e+00> : vector<16x128xf32>
      %50 = tpu.matmul %47, %49, %cst_39 {dimension_numbers = #tpu.dot_dimension_numbers<[1], [0], [0], [1], [0, 0, 1, 1], [], []>} : vector<16x3xbf16>, vector<3x128xbf16>, vector<16x128xf32> -> vector<16x128xf32>
      %51 = arith.addf %41, %50 : vector<16x128xf32>
      %c19_i32_40 = arith.constant 19 : i32
      %52 = arith.addi %c19_i32_40, %arg6 : i32
      %c0_i32_41 = arith.constant 0 : i32
      %53 = arith.addi %52, %c0_i32_41 : i32
      %c0_42 = arith.constant 0 : index
      %54 = arith.index_cast %53 : i32 to index
      %c0_43 = arith.constant 0 : index
      %c0_44 = arith.constant 0 : index
      %55 = vector.load %arg2[%c0_42, %54, %c0_43, %c0_44] : memref<1x76x19x3xbf16, #tpu.memory_space<vmem>>, vector<1x1x19x3xbf16>
      %56 = vector.shape_cast %55 : vector<1x1x19x3xbf16> to vector<19x3xbf16>
      %57 = vector.extract_strided_slice %56 {offsets = [2, 0], sizes = [16, 3], strides = [1, 1]} : vector<19x3xbf16> to vector<16x3xbf16>
      %c5 = arith.constant 5 : index
      %c0_45 = arith.constant 0 : index
      %c0_46 = arith.constant 0 : index
      %58 = vector.load %arg3[%c5, %c0_45, %c0_46] : memref<49x3x128xbf16, #tpu.memory_space<vmem>>, vector<1x3x128xbf16>
      %59 = vector.shape_cast %58 : vector<1x3x128xbf16> to vector<3x128xbf16>
      %cst_47 = arith.constant dense<0.000000e+00> : vector<16x128xf32>
      %60 = tpu.matmul %57, %59, %cst_47 {dimension_numbers = #tpu.dot_dimension_numbers<[1], [0], [0], [1], [0, 0, 1, 1], [], []>} : vector<16x3xbf16>, vector<3x128xbf16>, vector<16x128xf32> -> vector<16x128xf32>
      %61 = arith.addf %51, %60 : vector<16x128xf32>
      %c0_i32_48 = arith.constant 0 : i32
      %62 = arith.addi %c0_i32_48, %arg6 : i32
      %c0_i32_49 = arith.constant 0 : i32
      %63 = arith.addi %62, %c0_i32_49 : i32
      %c0_50 = arith.constant 0 : index
      %64 = arith.index_cast %63 : i32 to index
      %c0_51 = arith.constant 0 : index
      %c0_52 = arith.constant 0 : index
      %65 = vector.load %arg2[%c0_50, %64, %c0_51, %c0_52] : memref<1x76x19x3xbf16, #tpu.memory_space<vmem>>, vector<1x1x19x3xbf16>
      %66 = vector.shape_cast %65 : vector<1x1x19x3xbf16> to vector<19x3xbf16>
      %67 = vector.extract_strided_slice %66 {offsets = [3, 0], sizes = [16, 3], strides = [1, 1]} : vector<19x3xbf16> to vector<16x3xbf16>
      %c6 = arith.constant 6 : index
      %c0_53 = arith.constant 0 : index
      %c0_54 = arith.constant 0 : index
      %68 = vector.load %arg3[%c6, %c0_53, %c0_54] : memref<49x3x128xbf16, #tpu.memory_space<vmem>>, vector<1x3x128xbf16>
      %69 = vector.shape_cast %68 : vector<1x3x128xbf16> to vector<3x128xbf16>
      %cst_55 = arith.constant dense<0.000000e+00> : vector<16x128xf32>
      %70 = tpu.matmul %67, %69, %cst_55 {dimension_numbers = #tpu.dot_dimension_numbers<[1], [0], [0], [1], [0, 0, 1, 1], [], []>} : vector<16x3xbf16>, vector<3x128xbf16>, vector<16x128xf32> -> vector<16x128xf32>
      %71 = arith.addf %61, %70 : vector<16x128xf32>
      %c38_i32 = arith.constant 38 : i32
      %72 = arith.addi %c38_i32, %arg6 : i32
      %c0_i32_56 = arith.constant 0 : i32
      %73 = arith.addi %72, %c0_i32_56 : i32
      %c0_57 = arith.constant 0 : index
      %74 = arith.index_cast %73 : i32 to index
      %c0_58 = arith.constant 0 : index
      %c0_59 = arith.constant 0 : index
      %75 = vector.load %arg2[%c0_57, %74, %c0_58, %c0_59] : memref<1x76x19x3xbf16, #tpu.memory_space<vmem>>, vector<1x1x19x3xbf16>
      %76 = vector.shape_cast %75 : vector<1x1x19x3xbf16> to vector<19x3xbf16>
      %77 = vector.extract_strided_slice %76 {offsets = [0, 0], sizes = [16, 3], strides = [1, 1]} : vector<19x3xbf16> to vector<16x3xbf16>
      %c7 = arith.constant 7 : index
      %c0_60 = arith.constant 0 : index
      %c0_61 = arith.constant 0 : index
      %78 = vector.load %arg3[%c7, %c0_60, %c0_61] : memref<49x3x128xbf16, #tpu.memory_space<vmem>>, vector<1x3x128xbf16>
      %79 = vector.shape_cast %78 : vector<1x3x128xbf16> to vector<3x128xbf16>
      %cst_62 = arith.constant dense<0.000000e+00> : vector<16x128xf32>
      %80 = tpu.matmul %77, %79, %cst_62 {dimension_numbers = #tpu.dot_dimension_numbers<[1], [0], [0], [1], [0, 0, 1, 1], [], []>} : vector<16x3xbf16>, vector<3x128xbf16>, vector<16x128xf32> -> vector<16x128xf32>
      %81 = arith.addf %71, %80 : vector<16x128xf32>
      %c57_i32 = arith.constant 57 : i32
      %82 = arith.addi %c57_i32, %arg6 : i32
      %c0_i32_63 = arith.constant 0 : i32
      %83 = arith.addi %82, %c0_i32_63 : i32
      %c0_64 = arith.constant 0 : index
      %84 = arith.index_cast %83 : i32 to index
      %c0_65 = arith.constant 0 : index
      %c0_66 = arith.constant 0 : index
      %85 = vector.load %arg2[%c0_64, %84, %c0_65, %c0_66] : memref<1x76x19x3xbf16, #tpu.memory_space<vmem>>, vector<1x1x19x3xbf16>
      %86 = vector.shape_cast %85 : vector<1x1x19x3xbf16> to vector<19x3xbf16>
      %87 = vector.extract_strided_slice %86 {offsets = [0, 0], sizes = [16, 3], strides = [1, 1]} : vector<19x3xbf16> to vector<16x3xbf16>
      %c8 = arith.constant 8 : index
      %c0_67 = arith.constant 0 : index
      %c0_68 = arith.constant 0 : index
      %88 = vector.load %arg3[%c8, %c0_67, %c0_68] : memref<49x3x128xbf16, #tpu.memory_space<vmem>>, vector<1x3x128xbf16>
      %89 = vector.shape_cast %88 : vector<1x3x128xbf16> to vector<3x128xbf16>
      %cst_69 = arith.constant dense<0.000000e+00> : vector<16x128xf32>
      %90 = tpu.matmul %87, %89, %cst_69 {dimension_numbers = #tpu.dot_dimension_numbers<[1], [0], [0], [1], [0, 0, 1, 1], [], []>} : vector<16x3xbf16>, vector<3x128xbf16>, vector<16x128xf32> -> vector<16x128xf32>
      %91 = arith.addf %81, %90 : vector<16x128xf32>
      %c38_i32_70 = arith.constant 38 : i32
      %92 = arith.addi %c38_i32_70, %arg6 : i32
      %c0_i32_71 = arith.constant 0 : i32
      %93 = arith.addi %92, %c0_i32_71 : i32
      %c0_72 = arith.constant 0 : index
      %94 = arith.index_cast %93 : i32 to index
      %c0_73 = arith.constant 0 : index
      %c0_74 = arith.constant 0 : index
      %95 = vector.load %arg2[%c0_72, %94, %c0_73, %c0_74] : memref<1x76x19x3xbf16, #tpu.memory_space<vmem>>, vector<1x1x19x3xbf16>
      %96 = vector.shape_cast %95 : vector<1x1x19x3xbf16> to vector<19x3xbf16>
      %97 = vector.extract_strided_slice %96 {offsets = [1, 0], sizes = [16, 3], strides = [1, 1]} : vector<19x3xbf16> to vector<16x3xbf16>
      %c9 = arith.constant 9 : index
      %c0_75 = arith.constant 0 : index
      %c0_76 = arith.constant 0 : index
      %98 = vector.load %arg3[%c9, %c0_75, %c0_76] : memref<49x3x128xbf16, #tpu.memory_space<vmem>>, vector<1x3x128xbf16>
      %99 = vector.shape_cast %98 : vector<1x3x128xbf16> to vector<3x128xbf16>
      %cst_77 = arith.constant dense<0.000000e+00> : vector<16x128xf32>
      %100 = tpu.matmul %97, %99, %cst_77 {dimension_numbers = #tpu.dot_dimension_numbers<[1], [0], [0], [1], [0, 0, 1, 1], [], []>} : vector<16x3xbf16>, vector<3x128xbf16>, vector<16x128xf32> -> vector<16x128xf32>
      %101 = arith.addf %91, %100 : vector<16x128xf32>
      %c57_i32_78 = arith.constant 57 : i32
      %102 = arith.addi %c57_i32_78, %arg6 : i32
      %c0_i32_79 = arith.constant 0 : i32
      %103 = arith.addi %102, %c0_i32_79 : i32
      %c0_80 = arith.constant 0 : index
      %104 = arith.index_cast %103 : i32 to index
      %c0_81 = arith.constant 0 : index
      %c0_82 = arith.constant 0 : index
      %105 = vector.load %arg2[%c0_80, %104, %c0_81, %c0_82] : memref<1x76x19x3xbf16, #tpu.memory_space<vmem>>, vector<1x1x19x3xbf16>
      %106 = vector.shape_cast %105 : vector<1x1x19x3xbf16> to vector<19x3xbf16>
      %107 = vector.extract_strided_slice %106 {offsets = [1, 0], sizes = [16, 3], strides = [1, 1]} : vector<19x3xbf16> to vector<16x3xbf16>
      %c10 = arith.constant 10 : index
      %c0_83 = arith.constant 0 : index
      %c0_84 = arith.constant 0 : index
      %108 = vector.load %arg3[%c10, %c0_83, %c0_84] : memref<49x3x128xbf16, #tpu.memory_space<vmem>>, vector<1x3x128xbf16>
      %109 = vector.shape_cast %108 : vector<1x3x128xbf16> to vector<3x128xbf16>
      %cst_85 = arith.constant dense<0.000000e+00> : vector<16x128xf32>
      %110 = tpu.matmul %107, %109, %cst_85 {dimension_numbers = #tpu.dot_dimension_numbers<[1], [0], [0], [1], [0, 0, 1, 1], [], []>} : vector<16x3xbf16>, vector<3x128xbf16>, vector<16x128xf32> -> vector<16x128xf32>
      %111 = arith.addf %101, %110 : vector<16x128xf32>
      %c38_i32_86 = arith.constant 38 : i32
      %112 = arith.addi %c38_i32_86, %arg6 : i32
      %c0_i32_87 = arith.constant 0 : i32
      %113 = arith.addi %112, %c0_i32_87 : i32
      %c0_88 = arith.constant 0 : index
      %114 = arith.index_cast %113 : i32 to index
      %c0_89 = arith.constant 0 : index
      %c0_90 = arith.constant 0 : index
      %115 = vector.load %arg2[%c0_88, %114, %c0_89, %c0_90] : memref<1x76x19x3xbf16, #tpu.memory_space<vmem>>, vector<1x1x19x3xbf16>
      %116 = vector.shape_cast %115 : vector<1x1x19x3xbf16> to vector<19x3xbf16>
      %117 = vector.extract_strided_slice %116 {offsets = [2, 0], sizes = [16, 3], strides = [1, 1]} : vector<19x3xbf16> to vector<16x3xbf16>
      %c11 = arith.constant 11 : index
      %c0_91 = arith.constant 0 : index
      %c0_92 = arith.constant 0 : index
      %118 = vector.load %arg3[%c11, %c0_91, %c0_92] : memref<49x3x128xbf16, #tpu.memory_space<vmem>>, vector<1x3x128xbf16>
      %119 = vector.shape_cast %118 : vector<1x3x128xbf16> to vector<3x128xbf16>
      %cst_93 = arith.constant dense<0.000000e+00> : vector<16x128xf32>
      %120 = tpu.matmul %117, %119, %cst_93 {dimension_numbers = #tpu.dot_dimension_numbers<[1], [0], [0], [1], [0, 0, 1, 1], [], []>} : vector<16x3xbf16>, vector<3x128xbf16>, vector<16x128xf32> -> vector<16x128xf32>
      %121 = arith.addf %111, %120 : vector<16x128xf32>
      %c57_i32_94 = arith.constant 57 : i32
      %122 = arith.addi %c57_i32_94, %arg6 : i32
      %c0_i32_95 = arith.constant 0 : i32
      %123 = arith.addi %122, %c0_i32_95 : i32
      %c0_96 = arith.constant 0 : index
      %124 = arith.index_cast %123 : i32 to index
      %c0_97 = arith.constant 0 : index
      %c0_98 = arith.constant 0 : index
      %125 = vector.load %arg2[%c0_96, %124, %c0_97, %c0_98] : memref<1x76x19x3xbf16, #tpu.memory_space<vmem>>, vector<1x1x19x3xbf16>
      %126 = vector.shape_cast %125 : vector<1x1x19x3xbf16> to vector<19x3xbf16>
      %127 = vector.extract_strided_slice %126 {offsets = [2, 0], sizes = [16, 3], strides = [1, 1]} : vector<19x3xbf16> to vector<16x3xbf16>
      %c12 = arith.constant 12 : index
      %c0_99 = arith.constant 0 : index
      %c0_100 = arith.constant 0 : index
      %128 = vector.load %arg3[%c12, %c0_99, %c0_100] : memref<49x3x128xbf16, #tpu.memory_space<vmem>>, vector<1x3x128xbf16>
      %129 = vector.shape_cast %128 : vector<1x3x128xbf16> to vector<3x128xbf16>
      %cst_101 = arith.constant dense<0.000000e+00> : vector<16x128xf32>
      %130 = tpu.matmul %127, %129, %cst_101 {dimension_numbers = #tpu.dot_dimension_numbers<[1], [0], [0], [1], [0, 0, 1, 1], [], []>} : vector<16x3xbf16>, vector<3x128xbf16>, vector<16x128xf32> -> vector<16x128xf32>
      %131 = arith.addf %121, %130 : vector<16x128xf32>
      %c38_i32_102 = arith.constant 38 : i32
      %132 = arith.addi %c38_i32_102, %arg6 : i32
      %c0_i32_103 = arith.constant 0 : i32
      %133 = arith.addi %132, %c0_i32_103 : i32
      %c0_104 = arith.constant 0 : index
      %134 = arith.index_cast %133 : i32 to index
      %c0_105 = arith.constant 0 : index
      %c0_106 = arith.constant 0 : index
      %135 = vector.load %arg2[%c0_104, %134, %c0_105, %c0_106] : memref<1x76x19x3xbf16, #tpu.memory_space<vmem>>, vector<1x1x19x3xbf16>
      %136 = vector.shape_cast %135 : vector<1x1x19x3xbf16> to vector<19x3xbf16>
      %137 = vector.extract_strided_slice %136 {offsets = [3, 0], sizes = [16, 3], strides = [1, 1]} : vector<19x3xbf16> to vector<16x3xbf16>
      %c13 = arith.constant 13 : index
      %c0_107 = arith.constant 0 : index
      %c0_108 = arith.constant 0 : index
      %138 = vector.load %arg3[%c13, %c0_107, %c0_108] : memref<49x3x128xbf16, #tpu.memory_space<vmem>>, vector<1x3x128xbf16>
      %139 = vector.shape_cast %138 : vector<1x3x128xbf16> to vector<3x128xbf16>
      %cst_109 = arith.constant dense<0.000000e+00> : vector<16x128xf32>
      %140 = tpu.matmul %137, %139, %cst_109 {dimension_numbers = #tpu.dot_dimension_numbers<[1], [0], [0], [1], [0, 0, 1, 1], [], []>} : vector<16x3xbf16>, vector<3x128xbf16>, vector<16x128xf32> -> vector<16x128xf32>
      %141 = arith.addf %131, %140 : vector<16x128xf32>
      %c0_i32_110 = arith.constant 0 : i32
      %142 = arith.addi %c0_i32_110, %arg6 : i32
      %c1_i32_111 = arith.constant 1 : i32
      %143 = arith.addi %142, %c1_i32_111 : i32
      %c0_112 = arith.constant 0 : index
      %144 = arith.index_cast %143 : i32 to index
      %c0_113 = arith.constant 0 : index
      %c0_114 = arith.constant 0 : index
      %145 = vector.load %arg2[%c0_112, %144, %c0_113, %c0_114] : memref<1x76x19x3xbf16, #tpu.memory_space<vmem>>, vector<1x1x19x3xbf16>
      %146 = vector.shape_cast %145 : vector<1x1x19x3xbf16> to vector<19x3xbf16>
      %147 = vector.extract_strided_slice %146 {offsets = [0, 0], sizes = [16, 3], strides = [1, 1]} : vector<19x3xbf16> to vector<16x3xbf16>
      %c14 = arith.constant 14 : index
      %c0_115 = arith.constant 0 : index
      %c0_116 = arith.constant 0 : index
      %148 = vector.load %arg3[%c14, %c0_115, %c0_116] : memref<49x3x128xbf16, #tpu.memory_space<vmem>>, vector<1x3x128xbf16>
      %149 = vector.shape_cast %148 : vector<1x3x128xbf16> to vector<3x128xbf16>
      %cst_117 = arith.constant dense<0.000000e+00> : vector<16x128xf32>
      %150 = tpu.matmul %147, %149, %cst_117 {dimension_numbers = #tpu.dot_dimension_numbers<[1], [0], [0], [1], [0, 0, 1, 1], [], []>} : vector<16x3xbf16>, vector<3x128xbf16>, vector<16x128xf32> -> vector<16x128xf32>
      %151 = arith.addf %141, %150 : vector<16x128xf32>
      %c19_i32_118 = arith.constant 19 : i32
      %152 = arith.addi %c19_i32_118, %arg6 : i32
      %c1_i32_119 = arith.constant 1 : i32
      %153 = arith.addi %152, %c1_i32_119 : i32
      %c0_120 = arith.constant 0 : index
      %154 = arith.index_cast %153 : i32 to index
      %c0_121 = arith.constant 0 : index
      %c0_122 = arith.constant 0 : index
      %155 = vector.load %arg2[%c0_120, %154, %c0_121, %c0_122] : memref<1x76x19x3xbf16, #tpu.memory_space<vmem>>, vector<1x1x19x3xbf16>
      %156 = vector.shape_cast %155 : vector<1x1x19x3xbf16> to vector<19x3xbf16>
      %157 = vector.extract_strided_slice %156 {offsets = [0, 0], sizes = [16, 3], strides = [1, 1]} : vector<19x3xbf16> to vector<16x3xbf16>
      %c15 = arith.constant 15 : index
      %c0_123 = arith.constant 0 : index
      %c0_124 = arith.constant 0 : index
      %158 = vector.load %arg3[%c15, %c0_123, %c0_124] : memref<49x3x128xbf16, #tpu.memory_space<vmem>>, vector<1x3x128xbf16>
      %159 = vector.shape_cast %158 : vector<1x3x128xbf16> to vector<3x128xbf16>
      %cst_125 = arith.constant dense<0.000000e+00> : vector<16x128xf32>
      %160 = tpu.matmul %157, %159, %cst_125 {dimension_numbers = #tpu.dot_dimension_numbers<[1], [0], [0], [1], [0, 0, 1, 1], [], []>} : vector<16x3xbf16>, vector<3x128xbf16>, vector<16x128xf32> -> vector<16x128xf32>
      %161 = arith.addf %151, %160 : vector<16x128xf32>
      %c0_i32_126 = arith.constant 0 : i32
      %162 = arith.addi %c0_i32_126, %arg6 : i32
      %c1_i32_127 = arith.constant 1 : i32
      %163 = arith.addi %162, %c1_i32_127 : i32
      %c0_128 = arith.constant 0 : index
      %164 = arith.index_cast %163 : i32 to index
      %c0_129 = arith.constant 0 : index
      %c0_130 = arith.constant 0 : index
      %165 = vector.load %arg2[%c0_128, %164, %c0_129, %c0_130] : memref<1x76x19x3xbf16, #tpu.memory_space<vmem>>, vector<1x1x19x3xbf16>
      %166 = vector.shape_cast %165 : vector<1x1x19x3xbf16> to vector<19x3xbf16>
      %167 = vector.extract_strided_slice %166 {offsets = [1, 0], sizes = [16, 3], strides = [1, 1]} : vector<19x3xbf16> to vector<16x3xbf16>
      %c16 = arith.constant 16 : index
      %c0_131 = arith.constant 0 : index
      %c0_132 = arith.constant 0 : index
      %168 = vector.load %arg3[%c16, %c0_131, %c0_132] : memref<49x3x128xbf16, #tpu.memory_space<vmem>>, vector<1x3x128xbf16>
      %169 = vector.shape_cast %168 : vector<1x3x128xbf16> to vector<3x128xbf16>
      %cst_133 = arith.constant dense<0.000000e+00> : vector<16x128xf32>
      %170 = tpu.matmul %167, %169, %cst_133 {dimension_numbers = #tpu.dot_dimension_numbers<[1], [0], [0], [1], [0, 0, 1, 1], [], []>} : vector<16x3xbf16>, vector<3x128xbf16>, vector<16x128xf32> -> vector<16x128xf32>
      %171 = arith.addf %161, %170 : vector<16x128xf32>
      %c19_i32_134 = arith.constant 19 : i32
      %172 = arith.addi %c19_i32_134, %arg6 : i32
      %c1_i32_135 = arith.constant 1 : i32
      %173 = arith.addi %172, %c1_i32_135 : i32
      %c0_136 = arith.constant 0 : index
      %174 = arith.index_cast %173 : i32 to index
      %c0_137 = arith.constant 0 : index
      %c0_138 = arith.constant 0 : index
      %175 = vector.load %arg2[%c0_136, %174, %c0_137, %c0_138] : memref<1x76x19x3xbf16, #tpu.memory_space<vmem>>, vector<1x1x19x3xbf16>
      %176 = vector.shape_cast %175 : vector<1x1x19x3xbf16> to vector<19x3xbf16>
      %177 = vector.extract_strided_slice %176 {offsets = [1, 0], sizes = [16, 3], strides = [1, 1]} : vector<19x3xbf16> to vector<16x3xbf16>
      %c17 = arith.constant 17 : index
      %c0_139 = arith.constant 0 : index
      %c0_140 = arith.constant 0 : index
      %178 = vector.load %arg3[%c17, %c0_139, %c0_140] : memref<49x3x128xbf16, #tpu.memory_space<vmem>>, vector<1x3x128xbf16>
      %179 = vector.shape_cast %178 : vector<1x3x128xbf16> to vector<3x128xbf16>
      %cst_141 = arith.constant dense<0.000000e+00> : vector<16x128xf32>
      %180 = tpu.matmul %177, %179, %cst_141 {dimension_numbers = #tpu.dot_dimension_numbers<[1], [0], [0], [1], [0, 0, 1, 1], [], []>} : vector<16x3xbf16>, vector<3x128xbf16>, vector<16x128xf32> -> vector<16x128xf32>
      %181 = arith.addf %171, %180 : vector<16x128xf32>
      %c0_i32_142 = arith.constant 0 : i32
      %182 = arith.addi %c0_i32_142, %arg6 : i32
      %c1_i32_143 = arith.constant 1 : i32
      %183 = arith.addi %182, %c1_i32_143 : i32
      %c0_144 = arith.constant 0 : index
      %184 = arith.index_cast %183 : i32 to index
      %c0_145 = arith.constant 0 : index
      %c0_146 = arith.constant 0 : index
      %185 = vector.load %arg2[%c0_144, %184, %c0_145, %c0_146] : memref<1x76x19x3xbf16, #tpu.memory_space<vmem>>, vector<1x1x19x3xbf16>
      %186 = vector.shape_cast %185 : vector<1x1x19x3xbf16> to vector<19x3xbf16>
      %187 = vector.extract_strided_slice %186 {offsets = [2, 0], sizes = [16, 3], strides = [1, 1]} : vector<19x3xbf16> to vector<16x3xbf16>
      %c18 = arith.constant 18 : index
      %c0_147 = arith.constant 0 : index
      %c0_148 = arith.constant 0 : index
      %188 = vector.load %arg3[%c18, %c0_147, %c0_148] : memref<49x3x128xbf16, #tpu.memory_space<vmem>>, vector<1x3x128xbf16>
      %189 = vector.shape_cast %188 : vector<1x3x128xbf16> to vector<3x128xbf16>
      %cst_149 = arith.constant dense<0.000000e+00> : vector<16x128xf32>
      %190 = tpu.matmul %187, %189, %cst_149 {dimension_numbers = #tpu.dot_dimension_numbers<[1], [0], [0], [1], [0, 0, 1, 1], [], []>} : vector<16x3xbf16>, vector<3x128xbf16>, vector<16x128xf32> -> vector<16x128xf32>
      %191 = arith.addf %181, %190 : vector<16x128xf32>
      %c19_i32_150 = arith.constant 19 : i32
      %192 = arith.addi %c19_i32_150, %arg6 : i32
      %c1_i32_151 = arith.constant 1 : i32
      %193 = arith.addi %192, %c1_i32_151 : i32
      %c0_152 = arith.constant 0 : index
      %194 = arith.index_cast %193 : i32 to index
      %c0_153 = arith.constant 0 : index
      %c0_154 = arith.constant 0 : index
      %195 = vector.load %arg2[%c0_152, %194, %c0_153, %c0_154] : memref<1x76x19x3xbf16, #tpu.memory_space<vmem>>, vector<1x1x19x3xbf16>
      %196 = vector.shape_cast %195 : vector<1x1x19x3xbf16> to vector<19x3xbf16>
      %197 = vector.extract_strided_slice %196 {offsets = [2, 0], sizes = [16, 3], strides = [1, 1]} : vector<19x3xbf16> to vector<16x3xbf16>
      %c19 = arith.constant 19 : index
      %c0_155 = arith.constant 0 : index
      %c0_156 = arith.constant 0 : index
      %198 = vector.load %arg3[%c19, %c0_155, %c0_156] : memref<49x3x128xbf16, #tpu.memory_space<vmem>>, vector<1x3x128xbf16>
      %199 = vector.shape_cast %198 : vector<1x3x128xbf16> to vector<3x128xbf16>
      %cst_157 = arith.constant dense<0.000000e+00> : vector<16x128xf32>
      %200 = tpu.matmul %197, %199, %cst_157 {dimension_numbers = #tpu.dot_dimension_numbers<[1], [0], [0], [1], [0, 0, 1, 1], [], []>} : vector<16x3xbf16>, vector<3x128xbf16>, vector<16x128xf32> -> vector<16x128xf32>
      %201 = arith.addf %191, %200 : vector<16x128xf32>
      %c0_i32_158 = arith.constant 0 : i32
      %202 = arith.addi %c0_i32_158, %arg6 : i32
      %c1_i32_159 = arith.constant 1 : i32
      %203 = arith.addi %202, %c1_i32_159 : i32
      %c0_160 = arith.constant 0 : index
      %204 = arith.index_cast %203 : i32 to index
      %c0_161 = arith.constant 0 : index
      %c0_162 = arith.constant 0 : index
      %205 = vector.load %arg2[%c0_160, %204, %c0_161, %c0_162] : memref<1x76x19x3xbf16, #tpu.memory_space<vmem>>, vector<1x1x19x3xbf16>
      %206 = vector.shape_cast %205 : vector<1x1x19x3xbf16> to vector<19x3xbf16>
      %207 = vector.extract_strided_slice %206 {offsets = [3, 0], sizes = [16, 3], strides = [1, 1]} : vector<19x3xbf16> to vector<16x3xbf16>
      %c20 = arith.constant 20 : index
      %c0_163 = arith.constant 0 : index
      %c0_164 = arith.constant 0 : index
      %208 = vector.load %arg3[%c20, %c0_163, %c0_164] : memref<49x3x128xbf16, #tpu.memory_space<vmem>>, vector<1x3x128xbf16>
      %209 = vector.shape_cast %208 : vector<1x3x128xbf16> to vector<3x128xbf16>
      %cst_165 = arith.constant dense<0.000000e+00> : vector<16x128xf32>
      %210 = tpu.matmul %207, %209, %cst_165 {dimension_numbers = #tpu.dot_dimension_numbers<[1], [0], [0], [1], [0, 0, 1, 1], [], []>} : vector<16x3xbf16>, vector<3x128xbf16>, vector<16x128xf32> -> vector<16x128xf32>
      %211 = arith.addf %201, %210 : vector<16x128xf32>
      %c38_i32_166 = arith.constant 38 : i32
      %212 = arith.addi %c38_i32_166, %arg6 : i32
      %c1_i32_167 = arith.constant 1 : i32
      %213 = arith.addi %212, %c1_i32_167 : i32
      %c0_168 = arith.constant 0 : index
      %214 = arith.index_cast %213 : i32 to index
      %c0_169 = arith.constant 0 : index
      %c0_170 = arith.constant 0 : index
      %215 = vector.load %arg2[%c0_168, %214, %c0_169, %c0_170] : memref<1x76x19x3xbf16, #tpu.memory_space<vmem>>, vector<1x1x19x3xbf16>
      %216 = vector.shape_cast %215 : vector<1x1x19x3xbf16> to vector<19x3xbf16>
      %217 = vector.extract_strided_slice %216 {offsets = [0, 0], sizes = [16, 3], strides = [1, 1]} : vector<19x3xbf16> to vector<16x3xbf16>
      %c21 = arith.constant 21 : index
      %c0_171 = arith.constant 0 : index
      %c0_172 = arith.constant 0 : index
      %218 = vector.load %arg3[%c21, %c0_171, %c0_172] : memref<49x3x128xbf16, #tpu.memory_space<vmem>>, vector<1x3x128xbf16>
      %219 = vector.shape_cast %218 : vector<1x3x128xbf16> to vector<3x128xbf16>
      %cst_173 = arith.constant dense<0.000000e+00> : vector<16x128xf32>
      %220 = tpu.matmul %217, %219, %cst_173 {dimension_numbers = #tpu.dot_dimension_numbers<[1], [0], [0], [1], [0, 0, 1, 1], [], []>} : vector<16x3xbf16>, vector<3x128xbf16>, vector<16x128xf32> -> vector<16x128xf32>
      %221 = arith.addf %211, %220 : vector<16x128xf32>
      %c57_i32_174 = arith.constant 57 : i32
      %222 = arith.addi %c57_i32_174, %arg6 : i32
      %c1_i32_175 = arith.constant 1 : i32
      %223 = arith.addi %222, %c1_i32_175 : i32
      %c0_176 = arith.constant 0 : index
      %224 = arith.index_cast %223 : i32 to index
      %c0_177 = arith.constant 0 : index
      %c0_178 = arith.constant 0 : index
      %225 = vector.load %arg2[%c0_176, %224, %c0_177, %c0_178] : memref<1x76x19x3xbf16, #tpu.memory_space<vmem>>, vector<1x1x19x3xbf16>
      %226 = vector.shape_cast %225 : vector<1x1x19x3xbf16> to vector<19x3xbf16>
      %227 = vector.extract_strided_slice %226 {offsets = [0, 0], sizes = [16, 3], strides = [1, 1]} : vector<19x3xbf16> to vector<16x3xbf16>
      %c22 = arith.constant 22 : index
      %c0_179 = arith.constant 0 : index
      %c0_180 = arith.constant 0 : index
      %228 = vector.load %arg3[%c22, %c0_179, %c0_180] : memref<49x3x128xbf16, #tpu.memory_space<vmem>>, vector<1x3x128xbf16>
      %229 = vector.shape_cast %228 : vector<1x3x128xbf16> to vector<3x128xbf16>
      %cst_181 = arith.constant dense<0.000000e+00> : vector<16x128xf32>
      %230 = tpu.matmul %227, %229, %cst_181 {dimension_numbers = #tpu.dot_dimension_numbers<[1], [0], [0], [1], [0, 0, 1, 1], [], []>} : vector<16x3xbf16>, vector<3x128xbf16>, vector<16x128xf32> -> vector<16x128xf32>
      %231 = arith.addf %221, %230 : vector<16x128xf32>
      %c38_i32_182 = arith.constant 38 : i32
      %232 = arith.addi %c38_i32_182, %arg6 : i32
      %c1_i32_183 = arith.constant 1 : i32
      %233 = arith.addi %232, %c1_i32_183 : i32
      %c0_184 = arith.constant 0 : index
      %234 = arith.index_cast %233 : i32 to index
      %c0_185 = arith.constant 0 : index
      %c0_186 = arith.constant 0 : index
      %235 = vector.load %arg2[%c0_184, %234, %c0_185, %c0_186] : memref<1x76x19x3xbf16, #tpu.memory_space<vmem>>, vector<1x1x19x3xbf16>
      %236 = vector.shape_cast %235 : vector<1x1x19x3xbf16> to vector<19x3xbf16>
      %237 = vector.extract_strided_slice %236 {offsets = [1, 0], sizes = [16, 3], strides = [1, 1]} : vector<19x3xbf16> to vector<16x3xbf16>
      %c23 = arith.constant 23 : index
      %c0_187 = arith.constant 0 : index
      %c0_188 = arith.constant 0 : index
      %238 = vector.load %arg3[%c23, %c0_187, %c0_188] : memref<49x3x128xbf16, #tpu.memory_space<vmem>>, vector<1x3x128xbf16>
      %239 = vector.shape_cast %238 : vector<1x3x128xbf16> to vector<3x128xbf16>
      %cst_189 = arith.constant dense<0.000000e+00> : vector<16x128xf32>
      %240 = tpu.matmul %237, %239, %cst_189 {dimension_numbers = #tpu.dot_dimension_numbers<[1], [0], [0], [1], [0, 0, 1, 1], [], []>} : vector<16x3xbf16>, vector<3x128xbf16>, vector<16x128xf32> -> vector<16x128xf32>
      %241 = arith.addf %231, %240 : vector<16x128xf32>
      %c57_i32_190 = arith.constant 57 : i32
      %242 = arith.addi %c57_i32_190, %arg6 : i32
      %c1_i32_191 = arith.constant 1 : i32
      %243 = arith.addi %242, %c1_i32_191 : i32
      %c0_192 = arith.constant 0 : index
      %244 = arith.index_cast %243 : i32 to index
      %c0_193 = arith.constant 0 : index
      %c0_194 = arith.constant 0 : index
      %245 = vector.load %arg2[%c0_192, %244, %c0_193, %c0_194] : memref<1x76x19x3xbf16, #tpu.memory_space<vmem>>, vector<1x1x19x3xbf16>
      %246 = vector.shape_cast %245 : vector<1x1x19x3xbf16> to vector<19x3xbf16>
      %247 = vector.extract_strided_slice %246 {offsets = [1, 0], sizes = [16, 3], strides = [1, 1]} : vector<19x3xbf16> to vector<16x3xbf16>
      %c24 = arith.constant 24 : index
      %c0_195 = arith.constant 0 : index
      %c0_196 = arith.constant 0 : index
      %248 = vector.load %arg3[%c24, %c0_195, %c0_196] : memref<49x3x128xbf16, #tpu.memory_space<vmem>>, vector<1x3x128xbf16>
      %249 = vector.shape_cast %248 : vector<1x3x128xbf16> to vector<3x128xbf16>
      %cst_197 = arith.constant dense<0.000000e+00> : vector<16x128xf32>
      %250 = tpu.matmul %247, %249, %cst_197 {dimension_numbers = #tpu.dot_dimension_numbers<[1], [0], [0], [1], [0, 0, 1, 1], [], []>} : vector<16x3xbf16>, vector<3x128xbf16>, vector<16x128xf32> -> vector<16x128xf32>
      %251 = arith.addf %241, %250 : vector<16x128xf32>
      %c38_i32_198 = arith.constant 38 : i32
      %252 = arith.addi %c38_i32_198, %arg6 : i32
      %c1_i32_199 = arith.constant 1 : i32
      %253 = arith.addi %252, %c1_i32_199 : i32
      %c0_200 = arith.constant 0 : index
      %254 = arith.index_cast %253 : i32 to index
      %c0_201 = arith.constant 0 : index
      %c0_202 = arith.constant 0 : index
      %255 = vector.load %arg2[%c0_200, %254, %c0_201, %c0_202] : memref<1x76x19x3xbf16, #tpu.memory_space<vmem>>, vector<1x1x19x3xbf16>
      %256 = vector.shape_cast %255 : vector<1x1x19x3xbf16> to vector<19x3xbf16>
      %257 = vector.extract_strided_slice %256 {offsets = [2, 0], sizes = [16, 3], strides = [1, 1]} : vector<19x3xbf16> to vector<16x3xbf16>
      %c25 = arith.constant 25 : index
      %c0_203 = arith.constant 0 : index
      %c0_204 = arith.constant 0 : index
      %258 = vector.load %arg3[%c25, %c0_203, %c0_204] : memref<49x3x128xbf16, #tpu.memory_space<vmem>>, vector<1x3x128xbf16>
      %259 = vector.shape_cast %258 : vector<1x3x128xbf16> to vector<3x128xbf16>
      %cst_205 = arith.constant dense<0.000000e+00> : vector<16x128xf32>
      %260 = tpu.matmul %257, %259, %cst_205 {dimension_numbers = #tpu.dot_dimension_numbers<[1], [0], [0], [1], [0, 0, 1, 1], [], []>} : vector<16x3xbf16>, vector<3x128xbf16>, vector<16x128xf32> -> vector<16x128xf32>
      %261 = arith.addf %251, %260 : vector<16x128xf32>
      %c57_i32_206 = arith.constant 57 : i32
      %262 = arith.addi %c57_i32_206, %arg6 : i32
      %c1_i32_207 = arith.constant 1 : i32
      %263 = arith.addi %262, %c1_i32_207 : i32
      %c0_208 = arith.constant 0 : index
      %264 = arith.index_cast %263 : i32 to index
      %c0_209 = arith.constant 0 : index
      %c0_210 = arith.constant 0 : index
      %265 = vector.load %arg2[%c0_208, %264, %c0_209, %c0_210] : memref<1x76x19x3xbf16, #tpu.memory_space<vmem>>, vector<1x1x19x3xbf16>
      %266 = vector.shape_cast %265 : vector<1x1x19x3xbf16> to vector<19x3xbf16>
      %267 = vector.extract_strided_slice %266 {offsets = [2, 0], sizes = [16, 3], strides = [1, 1]} : vector<19x3xbf16> to vector<16x3xbf16>
      %c26 = arith.constant 26 : index
      %c0_211 = arith.constant 0 : index
      %c0_212 = arith.constant 0 : index
      %268 = vector.load %arg3[%c26, %c0_211, %c0_212] : memref<49x3x128xbf16, #tpu.memory_space<vmem>>, vector<1x3x128xbf16>
      %269 = vector.shape_cast %268 : vector<1x3x128xbf16> to vector<3x128xbf16>
      %cst_213 = arith.constant dense<0.000000e+00> : vector<16x128xf32>
      %270 = tpu.matmul %267, %269, %cst_213 {dimension_numbers = #tpu.dot_dimension_numbers<[1], [0], [0], [1], [0, 0, 1, 1], [], []>} : vector<16x3xbf16>, vector<3x128xbf16>, vector<16x128xf32> -> vector<16x128xf32>
      %271 = arith.addf %261, %270 : vector<16x128xf32>
      %c38_i32_214 = arith.constant 38 : i32
      %272 = arith.addi %c38_i32_214, %arg6 : i32
      %c1_i32_215 = arith.constant 1 : i32
      %273 = arith.addi %272, %c1_i32_215 : i32
      %c0_216 = arith.constant 0 : index
      %274 = arith.index_cast %273 : i32 to index
      %c0_217 = arith.constant 0 : index
      %c0_218 = arith.constant 0 : index
      %275 = vector.load %arg2[%c0_216, %274, %c0_217, %c0_218] : memref<1x76x19x3xbf16, #tpu.memory_space<vmem>>, vector<1x1x19x3xbf16>
      %276 = vector.shape_cast %275 : vector<1x1x19x3xbf16> to vector<19x3xbf16>
      %277 = vector.extract_strided_slice %276 {offsets = [3, 0], sizes = [16, 3], strides = [1, 1]} : vector<19x3xbf16> to vector<16x3xbf16>
      %c27 = arith.constant 27 : index
      %c0_219 = arith.constant 0 : index
      %c0_220 = arith.constant 0 : index
      %278 = vector.load %arg3[%c27, %c0_219, %c0_220] : memref<49x3x128xbf16, #tpu.memory_space<vmem>>, vector<1x3x128xbf16>
      %279 = vector.shape_cast %278 : vector<1x3x128xbf16> to vector<3x128xbf16>
      %cst_221 = arith.constant dense<0.000000e+00> : vector<16x128xf32>
      %280 = tpu.matmul %277, %279, %cst_221 {dimension_numbers = #tpu.dot_dimension_numbers<[1], [0], [0], [1], [0, 0, 1, 1], [], []>} : vector<16x3xbf16>, vector<3x128xbf16>, vector<16x128xf32> -> vector<16x128xf32>
      %281 = arith.addf %271, %280 : vector<16x128xf32>
      %c0_i32_222 = arith.constant 0 : i32
      %282 = arith.addi %c0_i32_222, %arg6 : i32
      %c2_i32 = arith.constant 2 : i32
      %283 = arith.addi %282, %c2_i32 : i32
      %c0_223 = arith.constant 0 : index
      %284 = arith.index_cast %283 : i32 to index
      %c0_224 = arith.constant 0 : index
      %c0_225 = arith.constant 0 : index
      %285 = vector.load %arg2[%c0_223, %284, %c0_224, %c0_225] : memref<1x76x19x3xbf16, #tpu.memory_space<vmem>>, vector<1x1x19x3xbf16>
      %286 = vector.shape_cast %285 : vector<1x1x19x3xbf16> to vector<19x3xbf16>
      %287 = vector.extract_strided_slice %286 {offsets = [0, 0], sizes = [16, 3], strides = [1, 1]} : vector<19x3xbf16> to vector<16x3xbf16>
      %c28 = arith.constant 28 : index
      %c0_226 = arith.constant 0 : index
      %c0_227 = arith.constant 0 : index
      %288 = vector.load %arg3[%c28, %c0_226, %c0_227] : memref<49x3x128xbf16, #tpu.memory_space<vmem>>, vector<1x3x128xbf16>
      %289 = vector.shape_cast %288 : vector<1x3x128xbf16> to vector<3x128xbf16>
      %cst_228 = arith.constant dense<0.000000e+00> : vector<16x128xf32>
      %290 = tpu.matmul %287, %289, %cst_228 {dimension_numbers = #tpu.dot_dimension_numbers<[1], [0], [0], [1], [0, 0, 1, 1], [], []>} : vector<16x3xbf16>, vector<3x128xbf16>, vector<16x128xf32> -> vector<16x128xf32>
      %291 = arith.addf %281, %290 : vector<16x128xf32>
      %c19_i32_229 = arith.constant 19 : i32
      %292 = arith.addi %c19_i32_229, %arg6 : i32
      %c2_i32_230 = arith.constant 2 : i32
      %293 = arith.addi %292, %c2_i32_230 : i32
      %c0_231 = arith.constant 0 : index
      %294 = arith.index_cast %293 : i32 to index
      %c0_232 = arith.constant 0 : index
      %c0_233 = arith.constant 0 : index
      %295 = vector.load %arg2[%c0_231, %294, %c0_232, %c0_233] : memref<1x76x19x3xbf16, #tpu.memory_space<vmem>>, vector<1x1x19x3xbf16>
      %296 = vector.shape_cast %295 : vector<1x1x19x3xbf16> to vector<19x3xbf16>
      %297 = vector.extract_strided_slice %296 {offsets = [0, 0], sizes = [16, 3], strides = [1, 1]} : vector<19x3xbf16> to vector<16x3xbf16>
      %c29 = arith.constant 29 : index
      %c0_234 = arith.constant 0 : index
      %c0_235 = arith.constant 0 : index
      %298 = vector.load %arg3[%c29, %c0_234, %c0_235] : memref<49x3x128xbf16, #tpu.memory_space<vmem>>, vector<1x3x128xbf16>
      %299 = vector.shape_cast %298 : vector<1x3x128xbf16> to vector<3x128xbf16>
      %cst_236 = arith.constant dense<0.000000e+00> : vector<16x128xf32>
      %300 = tpu.matmul %297, %299, %cst_236 {dimension_numbers = #tpu.dot_dimension_numbers<[1], [0], [0], [1], [0, 0, 1, 1], [], []>} : vector<16x3xbf16>, vector<3x128xbf16>, vector<16x128xf32> -> vector<16x128xf32>
      %301 = arith.addf %291, %300 : vector<16x128xf32>
      %c0_i32_237 = arith.constant 0 : i32
      %302 = arith.addi %c0_i32_237, %arg6 : i32
      %c2_i32_238 = arith.constant 2 : i32
      %303 = arith.addi %302, %c2_i32_238 : i32
      %c0_239 = arith.constant 0 : index
      %304 = arith.index_cast %303 : i32 to index
      %c0_240 = arith.constant 0 : index
      %c0_241 = arith.constant 0 : index
      %305 = vector.load %arg2[%c0_239, %304, %c0_240, %c0_241] : memref<1x76x19x3xbf16, #tpu.memory_space<vmem>>, vector<1x1x19x3xbf16>
      %306 = vector.shape_cast %305 : vector<1x1x19x3xbf16> to vector<19x3xbf16>
      %307 = vector.extract_strided_slice %306 {offsets = [1, 0], sizes = [16, 3], strides = [1, 1]} : vector<19x3xbf16> to vector<16x3xbf16>
      %c30 = arith.constant 30 : index
      %c0_242 = arith.constant 0 : index
      %c0_243 = arith.constant 0 : index
      %308 = vector.load %arg3[%c30, %c0_242, %c0_243] : memref<49x3x128xbf16, #tpu.memory_space<vmem>>, vector<1x3x128xbf16>
      %309 = vector.shape_cast %308 : vector<1x3x128xbf16> to vector<3x128xbf16>
      %cst_244 = arith.constant dense<0.000000e+00> : vector<16x128xf32>
      %310 = tpu.matmul %307, %309, %cst_244 {dimension_numbers = #tpu.dot_dimension_numbers<[1], [0], [0], [1], [0, 0, 1, 1], [], []>} : vector<16x3xbf16>, vector<3x128xbf16>, vector<16x128xf32> -> vector<16x128xf32>
      %311 = arith.addf %301, %310 : vector<16x128xf32>
      %c19_i32_245 = arith.constant 19 : i32
      %312 = arith.addi %c19_i32_245, %arg6 : i32
      %c2_i32_246 = arith.constant 2 : i32
      %313 = arith.addi %312, %c2_i32_246 : i32
      %c0_247 = arith.constant 0 : index
      %314 = arith.index_cast %313 : i32 to index
      %c0_248 = arith.constant 0 : index
      %c0_249 = arith.constant 0 : index
      %315 = vector.load %arg2[%c0_247, %314, %c0_248, %c0_249] : memref<1x76x19x3xbf16, #tpu.memory_space<vmem>>, vector<1x1x19x3xbf16>
      %316 = vector.shape_cast %315 : vector<1x1x19x3xbf16> to vector<19x3xbf16>
      %317 = vector.extract_strided_slice %316 {offsets = [1, 0], sizes = [16, 3], strides = [1, 1]} : vector<19x3xbf16> to vector<16x3xbf16>
      %c31 = arith.constant 31 : index
      %c0_250 = arith.constant 0 : index
      %c0_251 = arith.constant 0 : index
      %318 = vector.load %arg3[%c31, %c0_250, %c0_251] : memref<49x3x128xbf16, #tpu.memory_space<vmem>>, vector<1x3x128xbf16>
      %319 = vector.shape_cast %318 : vector<1x3x128xbf16> to vector<3x128xbf16>
      %cst_252 = arith.constant dense<0.000000e+00> : vector<16x128xf32>
      %320 = tpu.matmul %317, %319, %cst_252 {dimension_numbers = #tpu.dot_dimension_numbers<[1], [0], [0], [1], [0, 0, 1, 1], [], []>} : vector<16x3xbf16>, vector<3x128xbf16>, vector<16x128xf32> -> vector<16x128xf32>
      %321 = arith.addf %311, %320 : vector<16x128xf32>
      %c0_i32_253 = arith.constant 0 : i32
      %322 = arith.addi %c0_i32_253, %arg6 : i32
      %c2_i32_254 = arith.constant 2 : i32
      %323 = arith.addi %322, %c2_i32_254 : i32
      %c0_255 = arith.constant 0 : index
      %324 = arith.index_cast %323 : i32 to index
      %c0_256 = arith.constant 0 : index
      %c0_257 = arith.constant 0 : index
      %325 = vector.load %arg2[%c0_255, %324, %c0_256, %c0_257] : memref<1x76x19x3xbf16, #tpu.memory_space<vmem>>, vector<1x1x19x3xbf16>
      %326 = vector.shape_cast %325 : vector<1x1x19x3xbf16> to vector<19x3xbf16>
      %327 = vector.extract_strided_slice %326 {offsets = [2, 0], sizes = [16, 3], strides = [1, 1]} : vector<19x3xbf16> to vector<16x3xbf16>
      %c32 = arith.constant 32 : index
      %c0_258 = arith.constant 0 : index
      %c0_259 = arith.constant 0 : index
      %328 = vector.load %arg3[%c32, %c0_258, %c0_259] : memref<49x3x128xbf16, #tpu.memory_space<vmem>>, vector<1x3x128xbf16>
      %329 = vector.shape_cast %328 : vector<1x3x128xbf16> to vector<3x128xbf16>
      %cst_260 = arith.constant dense<0.000000e+00> : vector<16x128xf32>
      %330 = tpu.matmul %327, %329, %cst_260 {dimension_numbers = #tpu.dot_dimension_numbers<[1], [0], [0], [1], [0, 0, 1, 1], [], []>} : vector<16x3xbf16>, vector<3x128xbf16>, vector<16x128xf32> -> vector<16x128xf32>
      %331 = arith.addf %321, %330 : vector<16x128xf32>
      %c19_i32_261 = arith.constant 19 : i32
      %332 = arith.addi %c19_i32_261, %arg6 : i32
      %c2_i32_262 = arith.constant 2 : i32
      %333 = arith.addi %332, %c2_i32_262 : i32
      %c0_263 = arith.constant 0 : index
      %334 = arith.index_cast %333 : i32 to index
      %c0_264 = arith.constant 0 : index
      %c0_265 = arith.constant 0 : index
      %335 = vector.load %arg2[%c0_263, %334, %c0_264, %c0_265] : memref<1x76x19x3xbf16, #tpu.memory_space<vmem>>, vector<1x1x19x3xbf16>
      %336 = vector.shape_cast %335 : vector<1x1x19x3xbf16> to vector<19x3xbf16>
      %337 = vector.extract_strided_slice %336 {offsets = [2, 0], sizes = [16, 3], strides = [1, 1]} : vector<19x3xbf16> to vector<16x3xbf16>
      %c33 = arith.constant 33 : index
      %c0_266 = arith.constant 0 : index
      %c0_267 = arith.constant 0 : index
      %338 = vector.load %arg3[%c33, %c0_266, %c0_267] : memref<49x3x128xbf16, #tpu.memory_space<vmem>>, vector<1x3x128xbf16>
      %339 = vector.shape_cast %338 : vector<1x3x128xbf16> to vector<3x128xbf16>
      %cst_268 = arith.constant dense<0.000000e+00> : vector<16x128xf32>
      %340 = tpu.matmul %337, %339, %cst_268 {dimension_numbers = #tpu.dot_dimension_numbers<[1], [0], [0], [1], [0, 0, 1, 1], [], []>} : vector<16x3xbf16>, vector<3x128xbf16>, vector<16x128xf32> -> vector<16x128xf32>
      %341 = arith.addf %331, %340 : vector<16x128xf32>
      %c0_i32_269 = arith.constant 0 : i32
      %342 = arith.addi %c0_i32_269, %arg6 : i32
      %c2_i32_270 = arith.constant 2 : i32
      %343 = arith.addi %342, %c2_i32_270 : i32
      %c0_271 = arith.constant 0 : index
      %344 = arith.index_cast %343 : i32 to index
      %c0_272 = arith.constant 0 : index
      %c0_273 = arith.constant 0 : index
      %345 = vector.load %arg2[%c0_271, %344, %c0_272, %c0_273] : memref<1x76x19x3xbf16, #tpu.memory_space<vmem>>, vector<1x1x19x3xbf16>
      %346 = vector.shape_cast %345 : vector<1x1x19x3xbf16> to vector<19x3xbf16>
      %347 = vector.extract_strided_slice %346 {offsets = [3, 0], sizes = [16, 3], strides = [1, 1]} : vector<19x3xbf16> to vector<16x3xbf16>
      %c34 = arith.constant 34 : index
      %c0_274 = arith.constant 0 : index
      %c0_275 = arith.constant 0 : index
      %348 = vector.load %arg3[%c34, %c0_274, %c0_275] : memref<49x3x128xbf16, #tpu.memory_space<vmem>>, vector<1x3x128xbf16>
      %349 = vector.shape_cast %348 : vector<1x3x128xbf16> to vector<3x128xbf16>
      %cst_276 = arith.constant dense<0.000000e+00> : vector<16x128xf32>
      %350 = tpu.matmul %347, %349, %cst_276 {dimension_numbers = #tpu.dot_dimension_numbers<[1], [0], [0], [1], [0, 0, 1, 1], [], []>} : vector<16x3xbf16>, vector<3x128xbf16>, vector<16x128xf32> -> vector<16x128xf32>
      %351 = arith.addf %341, %350 : vector<16x128xf32>
      %c38_i32_277 = arith.constant 38 : i32
      %352 = arith.addi %c38_i32_277, %arg6 : i32
      %c2_i32_278 = arith.constant 2 : i32
      %353 = arith.addi %352, %c2_i32_278 : i32
      %c0_279 = arith.constant 0 : index
      %354 = arith.index_cast %353 : i32 to index
      %c0_280 = arith.constant 0 : index
      %c0_281 = arith.constant 0 : index
      %355 = vector.load %arg2[%c0_279, %354, %c0_280, %c0_281] : memref<1x76x19x3xbf16, #tpu.memory_space<vmem>>, vector<1x1x19x3xbf16>
      %356 = vector.shape_cast %355 : vector<1x1x19x3xbf16> to vector<19x3xbf16>
      %357 = vector.extract_strided_slice %356 {offsets = [0, 0], sizes = [16, 3], strides = [1, 1]} : vector<19x3xbf16> to vector<16x3xbf16>
      %c35 = arith.constant 35 : index
      %c0_282 = arith.constant 0 : index
      %c0_283 = arith.constant 0 : index
      %358 = vector.load %arg3[%c35, %c0_282, %c0_283] : memref<49x3x128xbf16, #tpu.memory_space<vmem>>, vector<1x3x128xbf16>
      %359 = vector.shape_cast %358 : vector<1x3x128xbf16> to vector<3x128xbf16>
      %cst_284 = arith.constant dense<0.000000e+00> : vector<16x128xf32>
      %360 = tpu.matmul %357, %359, %cst_284 {dimension_numbers = #tpu.dot_dimension_numbers<[1], [0], [0], [1], [0, 0, 1, 1], [], []>} : vector<16x3xbf16>, vector<3x128xbf16>, vector<16x128xf32> -> vector<16x128xf32>
      %361 = arith.addf %351, %360 : vector<16x128xf32>
      %c57_i32_285 = arith.constant 57 : i32
      %362 = arith.addi %c57_i32_285, %arg6 : i32
      %c2_i32_286 = arith.constant 2 : i32
      %363 = arith.addi %362, %c2_i32_286 : i32
      %c0_287 = arith.constant 0 : index
      %364 = arith.index_cast %363 : i32 to index
      %c0_288 = arith.constant 0 : index
      %c0_289 = arith.constant 0 : index
      %365 = vector.load %arg2[%c0_287, %364, %c0_288, %c0_289] : memref<1x76x19x3xbf16, #tpu.memory_space<vmem>>, vector<1x1x19x3xbf16>
      %366 = vector.shape_cast %365 : vector<1x1x19x3xbf16> to vector<19x3xbf16>
      %367 = vector.extract_strided_slice %366 {offsets = [0, 0], sizes = [16, 3], strides = [1, 1]} : vector<19x3xbf16> to vector<16x3xbf16>
      %c36 = arith.constant 36 : index
      %c0_290 = arith.constant 0 : index
      %c0_291 = arith.constant 0 : index
      %368 = vector.load %arg3[%c36, %c0_290, %c0_291] : memref<49x3x128xbf16, #tpu.memory_space<vmem>>, vector<1x3x128xbf16>
      %369 = vector.shape_cast %368 : vector<1x3x128xbf16> to vector<3x128xbf16>
      %cst_292 = arith.constant dense<0.000000e+00> : vector<16x128xf32>
      %370 = tpu.matmul %367, %369, %cst_292 {dimension_numbers = #tpu.dot_dimension_numbers<[1], [0], [0], [1], [0, 0, 1, 1], [], []>} : vector<16x3xbf16>, vector<3x128xbf16>, vector<16x128xf32> -> vector<16x128xf32>
      %371 = arith.addf %361, %370 : vector<16x128xf32>
      %c38_i32_293 = arith.constant 38 : i32
      %372 = arith.addi %c38_i32_293, %arg6 : i32
      %c2_i32_294 = arith.constant 2 : i32
      %373 = arith.addi %372, %c2_i32_294 : i32
      %c0_295 = arith.constant 0 : index
      %374 = arith.index_cast %373 : i32 to index
      %c0_296 = arith.constant 0 : index
      %c0_297 = arith.constant 0 : index
      %375 = vector.load %arg2[%c0_295, %374, %c0_296, %c0_297] : memref<1x76x19x3xbf16, #tpu.memory_space<vmem>>, vector<1x1x19x3xbf16>
      %376 = vector.shape_cast %375 : vector<1x1x19x3xbf16> to vector<19x3xbf16>
      %377 = vector.extract_strided_slice %376 {offsets = [1, 0], sizes = [16, 3], strides = [1, 1]} : vector<19x3xbf16> to vector<16x3xbf16>
      %c37 = arith.constant 37 : index
      %c0_298 = arith.constant 0 : index
      %c0_299 = arith.constant 0 : index
      %378 = vector.load %arg3[%c37, %c0_298, %c0_299] : memref<49x3x128xbf16, #tpu.memory_space<vmem>>, vector<1x3x128xbf16>
      %379 = vector.shape_cast %378 : vector<1x3x128xbf16> to vector<3x128xbf16>
      %cst_300 = arith.constant dense<0.000000e+00> : vector<16x128xf32>
      %380 = tpu.matmul %377, %379, %cst_300 {dimension_numbers = #tpu.dot_dimension_numbers<[1], [0], [0], [1], [0, 0, 1, 1], [], []>} : vector<16x3xbf16>, vector<3x128xbf16>, vector<16x128xf32> -> vector<16x128xf32>
      %381 = arith.addf %371, %380 : vector<16x128xf32>
      %c57_i32_301 = arith.constant 57 : i32
      %382 = arith.addi %c57_i32_301, %arg6 : i32
      %c2_i32_302 = arith.constant 2 : i32
      %383 = arith.addi %382, %c2_i32_302 : i32
      %c0_303 = arith.constant 0 : index
      %384 = arith.index_cast %383 : i32 to index
      %c0_304 = arith.constant 0 : index
      %c0_305 = arith.constant 0 : index
      %385 = vector.load %arg2[%c0_303, %384, %c0_304, %c0_305] : memref<1x76x19x3xbf16, #tpu.memory_space<vmem>>, vector<1x1x19x3xbf16>
      %386 = vector.shape_cast %385 : vector<1x1x19x3xbf16> to vector<19x3xbf16>
      %387 = vector.extract_strided_slice %386 {offsets = [1, 0], sizes = [16, 3], strides = [1, 1]} : vector<19x3xbf16> to vector<16x3xbf16>
      %c38 = arith.constant 38 : index
      %c0_306 = arith.constant 0 : index
      %c0_307 = arith.constant 0 : index
      %388 = vector.load %arg3[%c38, %c0_306, %c0_307] : memref<49x3x128xbf16, #tpu.memory_space<vmem>>, vector<1x3x128xbf16>
      %389 = vector.shape_cast %388 : vector<1x3x128xbf16> to vector<3x128xbf16>
      %cst_308 = arith.constant dense<0.000000e+00> : vector<16x128xf32>
      %390 = tpu.matmul %387, %389, %cst_308 {dimension_numbers = #tpu.dot_dimension_numbers<[1], [0], [0], [1], [0, 0, 1, 1], [], []>} : vector<16x3xbf16>, vector<3x128xbf16>, vector<16x128xf32> -> vector<16x128xf32>
      %391 = arith.addf %381, %390 : vector<16x128xf32>
      %c38_i32_309 = arith.constant 38 : i32
      %392 = arith.addi %c38_i32_309, %arg6 : i32
      %c2_i32_310 = arith.constant 2 : i32
      %393 = arith.addi %392, %c2_i32_310 : i32
      %c0_311 = arith.constant 0 : index
      %394 = arith.index_cast %393 : i32 to index
      %c0_312 = arith.constant 0 : index
      %c0_313 = arith.constant 0 : index
      %395 = vector.load %arg2[%c0_311, %394, %c0_312, %c0_313] : memref<1x76x19x3xbf16, #tpu.memory_space<vmem>>, vector<1x1x19x3xbf16>
      %396 = vector.shape_cast %395 : vector<1x1x19x3xbf16> to vector<19x3xbf16>
      %397 = vector.extract_strided_slice %396 {offsets = [2, 0], sizes = [16, 3], strides = [1, 1]} : vector<19x3xbf16> to vector<16x3xbf16>
      %c39 = arith.constant 39 : index
      %c0_314 = arith.constant 0 : index
      %c0_315 = arith.constant 0 : index
      %398 = vector.load %arg3[%c39, %c0_314, %c0_315] : memref<49x3x128xbf16, #tpu.memory_space<vmem>>, vector<1x3x128xbf16>
      %399 = vector.shape_cast %398 : vector<1x3x128xbf16> to vector<3x128xbf16>
      %cst_316 = arith.constant dense<0.000000e+00> : vector<16x128xf32>
      %400 = tpu.matmul %397, %399, %cst_316 {dimension_numbers = #tpu.dot_dimension_numbers<[1], [0], [0], [1], [0, 0, 1, 1], [], []>} : vector<16x3xbf16>, vector<3x128xbf16>, vector<16x128xf32> -> vector<16x128xf32>
      %401 = arith.addf %391, %400 : vector<16x128xf32>
      %c57_i32_317 = arith.constant 57 : i32
      %402 = arith.addi %c57_i32_317, %arg6 : i32
      %c2_i32_318 = arith.constant 2 : i32
      %403 = arith.addi %402, %c2_i32_318 : i32
      %c0_319 = arith.constant 0 : index
      %404 = arith.index_cast %403 : i32 to index
      %c0_320 = arith.constant 0 : index
      %c0_321 = arith.constant 0 : index
      %405 = vector.load %arg2[%c0_319, %404, %c0_320, %c0_321] : memref<1x76x19x3xbf16, #tpu.memory_space<vmem>>, vector<1x1x19x3xbf16>
      %406 = vector.shape_cast %405 : vector<1x1x19x3xbf16> to vector<19x3xbf16>
      %407 = vector.extract_strided_slice %406 {offsets = [2, 0], sizes = [16, 3], strides = [1, 1]} : vector<19x3xbf16> to vector<16x3xbf16>
      %c40 = arith.constant 40 : index
      %c0_322 = arith.constant 0 : index
      %c0_323 = arith.constant 0 : index
      %408 = vector.load %arg3[%c40, %c0_322, %c0_323] : memref<49x3x128xbf16, #tpu.memory_space<vmem>>, vector<1x3x128xbf16>
      %409 = vector.shape_cast %408 : vector<1x3x128xbf16> to vector<3x128xbf16>
      %cst_324 = arith.constant dense<0.000000e+00> : vector<16x128xf32>
      %410 = tpu.matmul %407, %409, %cst_324 {dimension_numbers = #tpu.dot_dimension_numbers<[1], [0], [0], [1], [0, 0, 1, 1], [], []>} : vector<16x3xbf16>, vector<3x128xbf16>, vector<16x128xf32> -> vector<16x128xf32>
      %411 = arith.addf %401, %410 : vector<16x128xf32>
      %c38_i32_325 = arith.constant 38 : i32
      %412 = arith.addi %c38_i32_325, %arg6 : i32
      %c2_i32_326 = arith.constant 2 : i32
      %413 = arith.addi %412, %c2_i32_326 : i32
      %c0_327 = arith.constant 0 : index
      %414 = arith.index_cast %413 : i32 to index
      %c0_328 = arith.constant 0 : index
      %c0_329 = arith.constant 0 : index
      %415 = vector.load %arg2[%c0_327, %414, %c0_328, %c0_329] : memref<1x76x19x3xbf16, #tpu.memory_space<vmem>>, vector<1x1x19x3xbf16>
      %416 = vector.shape_cast %415 : vector<1x1x19x3xbf16> to vector<19x3xbf16>
      %417 = vector.extract_strided_slice %416 {offsets = [3, 0], sizes = [16, 3], strides = [1, 1]} : vector<19x3xbf16> to vector<16x3xbf16>
      %c41 = arith.constant 41 : index
      %c0_330 = arith.constant 0 : index
      %c0_331 = arith.constant 0 : index
      %418 = vector.load %arg3[%c41, %c0_330, %c0_331] : memref<49x3x128xbf16, #tpu.memory_space<vmem>>, vector<1x3x128xbf16>
      %419 = vector.shape_cast %418 : vector<1x3x128xbf16> to vector<3x128xbf16>
      %cst_332 = arith.constant dense<0.000000e+00> : vector<16x128xf32>
      %420 = tpu.matmul %417, %419, %cst_332 {dimension_numbers = #tpu.dot_dimension_numbers<[1], [0], [0], [1], [0, 0, 1, 1], [], []>} : vector<16x3xbf16>, vector<3x128xbf16>, vector<16x128xf32> -> vector<16x128xf32>
      %421 = arith.addf %411, %420 : vector<16x128xf32>
      %c0_i32_333 = arith.constant 0 : i32
      %422 = arith.addi %c0_i32_333, %arg6 : i32
      %c3_i32 = arith.constant 3 : i32
      %423 = arith.addi %422, %c3_i32 : i32
      %c0_334 = arith.constant 0 : index
      %424 = arith.index_cast %423 : i32 to index
      %c0_335 = arith.constant 0 : index
      %c0_336 = arith.constant 0 : index
      %425 = vector.load %arg2[%c0_334, %424, %c0_335, %c0_336] : memref<1x76x19x3xbf16, #tpu.memory_space<vmem>>, vector<1x1x19x3xbf16>
      %426 = vector.shape_cast %425 : vector<1x1x19x3xbf16> to vector<19x3xbf16>
      %427 = vector.extract_strided_slice %426 {offsets = [0, 0], sizes = [16, 3], strides = [1, 1]} : vector<19x3xbf16> to vector<16x3xbf16>
      %c42 = arith.constant 42 : index
      %c0_337 = arith.constant 0 : index
      %c0_338 = arith.constant 0 : index
      %428 = vector.load %arg3[%c42, %c0_337, %c0_338] : memref<49x3x128xbf16, #tpu.memory_space<vmem>>, vector<1x3x128xbf16>
      %429 = vector.shape_cast %428 : vector<1x3x128xbf16> to vector<3x128xbf16>
      %cst_339 = arith.constant dense<0.000000e+00> : vector<16x128xf32>
      %430 = tpu.matmul %427, %429, %cst_339 {dimension_numbers = #tpu.dot_dimension_numbers<[1], [0], [0], [1], [0, 0, 1, 1], [], []>} : vector<16x3xbf16>, vector<3x128xbf16>, vector<16x128xf32> -> vector<16x128xf32>
      %431 = arith.addf %421, %430 : vector<16x128xf32>
      %c19_i32_340 = arith.constant 19 : i32
      %432 = arith.addi %c19_i32_340, %arg6 : i32
      %c3_i32_341 = arith.constant 3 : i32
      %433 = arith.addi %432, %c3_i32_341 : i32
      %c0_342 = arith.constant 0 : index
      %434 = arith.index_cast %433 : i32 to index
      %c0_343 = arith.constant 0 : index
      %c0_344 = arith.constant 0 : index
      %435 = vector.load %arg2[%c0_342, %434, %c0_343, %c0_344] : memref<1x76x19x3xbf16, #tpu.memory_space<vmem>>, vector<1x1x19x3xbf16>
      %436 = vector.shape_cast %435 : vector<1x1x19x3xbf16> to vector<19x3xbf16>
      %437 = vector.extract_strided_slice %436 {offsets = [0, 0], sizes = [16, 3], strides = [1, 1]} : vector<19x3xbf16> to vector<16x3xbf16>
      %c43 = arith.constant 43 : index
      %c0_345 = arith.constant 0 : index
      %c0_346 = arith.constant 0 : index
      %438 = vector.load %arg3[%c43, %c0_345, %c0_346] : memref<49x3x128xbf16, #tpu.memory_space<vmem>>, vector<1x3x128xbf16>
      %439 = vector.shape_cast %438 : vector<1x3x128xbf16> to vector<3x128xbf16>
      %cst_347 = arith.constant dense<0.000000e+00> : vector<16x128xf32>
      %440 = tpu.matmul %437, %439, %cst_347 {dimension_numbers = #tpu.dot_dimension_numbers<[1], [0], [0], [1], [0, 0, 1, 1], [], []>} : vector<16x3xbf16>, vector<3x128xbf16>, vector<16x128xf32> -> vector<16x128xf32>
      %441 = arith.addf %431, %440 : vector<16x128xf32>
      %c0_i32_348 = arith.constant 0 : i32
      %442 = arith.addi %c0_i32_348, %arg6 : i32
      %c3_i32_349 = arith.constant 3 : i32
      %443 = arith.addi %442, %c3_i32_349 : i32
      %c0_350 = arith.constant 0 : index
      %444 = arith.index_cast %443 : i32 to index
      %c0_351 = arith.constant 0 : index
      %c0_352 = arith.constant 0 : index
      %445 = vector.load %arg2[%c0_350, %444, %c0_351, %c0_352] : memref<1x76x19x3xbf16, #tpu.memory_space<vmem>>, vector<1x1x19x3xbf16>
      %446 = vector.shape_cast %445 : vector<1x1x19x3xbf16> to vector<19x3xbf16>
      %447 = vector.extract_strided_slice %446 {offsets = [1, 0], sizes = [16, 3], strides = [1, 1]} : vector<19x3xbf16> to vector<16x3xbf16>
      %c44 = arith.constant 44 : index
      %c0_353 = arith.constant 0 : index
      %c0_354 = arith.constant 0 : index
      %448 = vector.load %arg3[%c44, %c0_353, %c0_354] : memref<49x3x128xbf16, #tpu.memory_space<vmem>>, vector<1x3x128xbf16>
      %449 = vector.shape_cast %448 : vector<1x3x128xbf16> to vector<3x128xbf16>
      %cst_355 = arith.constant dense<0.000000e+00> : vector<16x128xf32>
      %450 = tpu.matmul %447, %449, %cst_355 {dimension_numbers = #tpu.dot_dimension_numbers<[1], [0], [0], [1], [0, 0, 1, 1], [], []>} : vector<16x3xbf16>, vector<3x128xbf16>, vector<16x128xf32> -> vector<16x128xf32>
      %451 = arith.addf %441, %450 : vector<16x128xf32>
      %c19_i32_356 = arith.constant 19 : i32
      %452 = arith.addi %c19_i32_356, %arg6 : i32
      %c3_i32_357 = arith.constant 3 : i32
      %453 = arith.addi %452, %c3_i32_357 : i32
      %c0_358 = arith.constant 0 : index
      %454 = arith.index_cast %453 : i32 to index
      %c0_359 = arith.constant 0 : index
      %c0_360 = arith.constant 0 : index
      %455 = vector.load %arg2[%c0_358, %454, %c0_359, %c0_360] : memref<1x76x19x3xbf16, #tpu.memory_space<vmem>>, vector<1x1x19x3xbf16>
      %456 = vector.shape_cast %455 : vector<1x1x19x3xbf16> to vector<19x3xbf16>
      %457 = vector.extract_strided_slice %456 {offsets = [1, 0], sizes = [16, 3], strides = [1, 1]} : vector<19x3xbf16> to vector<16x3xbf16>
      %c45 = arith.constant 45 : index
      %c0_361 = arith.constant 0 : index
      %c0_362 = arith.constant 0 : index
      %458 = vector.load %arg3[%c45, %c0_361, %c0_362] : memref<49x3x128xbf16, #tpu.memory_space<vmem>>, vector<1x3x128xbf16>
      %459 = vector.shape_cast %458 : vector<1x3x128xbf16> to vector<3x128xbf16>
      %cst_363 = arith.constant dense<0.000000e+00> : vector<16x128xf32>
      %460 = tpu.matmul %457, %459, %cst_363 {dimension_numbers = #tpu.dot_dimension_numbers<[1], [0], [0], [1], [0, 0, 1, 1], [], []>} : vector<16x3xbf16>, vector<3x128xbf16>, vector<16x128xf32> -> vector<16x128xf32>
      %461 = arith.addf %451, %460 : vector<16x128xf32>
      %c0_i32_364 = arith.constant 0 : i32
      %462 = arith.addi %c0_i32_364, %arg6 : i32
      %c3_i32_365 = arith.constant 3 : i32
      %463 = arith.addi %462, %c3_i32_365 : i32
      %c0_366 = arith.constant 0 : index
      %464 = arith.index_cast %463 : i32 to index
      %c0_367 = arith.constant 0 : index
      %c0_368 = arith.constant 0 : index
      %465 = vector.load %arg2[%c0_366, %464, %c0_367, %c0_368] : memref<1x76x19x3xbf16, #tpu.memory_space<vmem>>, vector<1x1x19x3xbf16>
      %466 = vector.shape_cast %465 : vector<1x1x19x3xbf16> to vector<19x3xbf16>
      %467 = vector.extract_strided_slice %466 {offsets = [2, 0], sizes = [16, 3], strides = [1, 1]} : vector<19x3xbf16> to vector<16x3xbf16>
      %c46 = arith.constant 46 : index
      %c0_369 = arith.constant 0 : index
      %c0_370 = arith.constant 0 : index
      %468 = vector.load %arg3[%c46, %c0_369, %c0_370] : memref<49x3x128xbf16, #tpu.memory_space<vmem>>, vector<1x3x128xbf16>
      %469 = vector.shape_cast %468 : vector<1x3x128xbf16> to vector<3x128xbf16>
      %cst_371 = arith.constant dense<0.000000e+00> : vector<16x128xf32>
      %470 = tpu.matmul %467, %469, %cst_371 {dimension_numbers = #tpu.dot_dimension_numbers<[1], [0], [0], [1], [0, 0, 1, 1], [], []>} : vector<16x3xbf16>, vector<3x128xbf16>, vector<16x128xf32> -> vector<16x128xf32>
      %471 = arith.addf %461, %470 : vector<16x128xf32>
      %c19_i32_372 = arith.constant 19 : i32
      %472 = arith.addi %c19_i32_372, %arg6 : i32
      %c3_i32_373 = arith.constant 3 : i32
      %473 = arith.addi %472, %c3_i32_373 : i32
      %c0_374 = arith.constant 0 : index
      %474 = arith.index_cast %473 : i32 to index
      %c0_375 = arith.constant 0 : index
      %c0_376 = arith.constant 0 : index
      %475 = vector.load %arg2[%c0_374, %474, %c0_375, %c0_376] : memref<1x76x19x3xbf16, #tpu.memory_space<vmem>>, vector<1x1x19x3xbf16>
      %476 = vector.shape_cast %475 : vector<1x1x19x3xbf16> to vector<19x3xbf16>
      %477 = vector.extract_strided_slice %476 {offsets = [2, 0], sizes = [16, 3], strides = [1, 1]} : vector<19x3xbf16> to vector<16x3xbf16>
      %c47 = arith.constant 47 : index
      %c0_377 = arith.constant 0 : index
      %c0_378 = arith.constant 0 : index
      %478 = vector.load %arg3[%c47, %c0_377, %c0_378] : memref<49x3x128xbf16, #tpu.memory_space<vmem>>, vector<1x3x128xbf16>
      %479 = vector.shape_cast %478 : vector<1x3x128xbf16> to vector<3x128xbf16>
      %cst_379 = arith.constant dense<0.000000e+00> : vector<16x128xf32>
      %480 = tpu.matmul %477, %479, %cst_379 {dimension_numbers = #tpu.dot_dimension_numbers<[1], [0], [0], [1], [0, 0, 1, 1], [], []>} : vector<16x3xbf16>, vector<3x128xbf16>, vector<16x128xf32> -> vector<16x128xf32>
      %481 = arith.addf %471, %480 : vector<16x128xf32>
      %c0_i32_380 = arith.constant 0 : i32
      %482 = arith.addi %c0_i32_380, %arg6 : i32
      %c3_i32_381 = arith.constant 3 : i32
      %483 = arith.addi %482, %c3_i32_381 : i32
      %c0_382 = arith.constant 0 : index
      %484 = arith.index_cast %483 : i32 to index
      %c0_383 = arith.constant 0 : index
      %c0_384 = arith.constant 0 : index
      %485 = vector.load %arg2[%c0_382, %484, %c0_383, %c0_384] : memref<1x76x19x3xbf16, #tpu.memory_space<vmem>>, vector<1x1x19x3xbf16>
      %486 = vector.shape_cast %485 : vector<1x1x19x3xbf16> to vector<19x3xbf16>
      %487 = vector.extract_strided_slice %486 {offsets = [3, 0], sizes = [16, 3], strides = [1, 1]} : vector<19x3xbf16> to vector<16x3xbf16>
      %c48 = arith.constant 48 : index
      %c0_385 = arith.constant 0 : index
      %c0_386 = arith.constant 0 : index
      %488 = vector.load %arg3[%c48, %c0_385, %c0_386] : memref<49x3x128xbf16, #tpu.memory_space<vmem>>, vector<1x3x128xbf16>
      %489 = vector.shape_cast %488 : vector<1x3x128xbf16> to vector<3x128xbf16>
      %cst_387 = arith.constant dense<0.000000e+00> : vector<16x128xf32>
      %490 = tpu.matmul %487, %489, %cst_387 {dimension_numbers = #tpu.dot_dimension_numbers<[1], [0], [0], [1], [0, 0, 1, 1], [], []>} : vector<16x3xbf16>, vector<3x128xbf16>, vector<16x128xf32> -> vector<16x128xf32>
      %491 = arith.addf %481, %490 : vector<16x128xf32>
      %c0_388 = arith.constant 0 : index
      %c0_389 = arith.constant 0 : index
      %492 = vector.load %arg4[%c0_388, %c0_389] : memref<1x128xf32, #tpu.memory_space<vmem>>, vector<1x128xf32>
      %493 = vector.broadcast %492 : vector<1x128xf32> to vector<16x128xf32>
      %494 = arith.addf %491, %493 : vector<16x128xf32>
      %cst_390 = arith.constant 0.000000e+00 : f32
      %495 = vector.broadcast %cst_390 : f32 to vector<16x128xf32>
      %496 = arith.maximumf %494, %495 : vector<16x128xf32>
      %497 = arith.truncf %496 : vector<16x128xf32> to vector<16x128xbf16>
      %c0_391 = arith.constant 0 : index
      %498 = arith.index_cast %arg6 : i32 to index
      %c0_392 = arith.constant 0 : index
      %c0_393 = arith.constant 0 : index
      %499 = vector.load %arg5[%c0_391, %498, %c0_392, %c0_393] : memref<1x16x16x128xbf16, #tpu.memory_space<vmem>>, vector<1x1x16x128xbf16>
      %500 = vector.shape_cast %499 : vector<1x1x16x128xbf16> to vector<16x128xbf16>
      %501 = vector.shape_cast %497 : vector<16x128xbf16> to vector<1x1x16x128xbf16>
      tpu.vector_store %arg5[%c0_391, %498, %c0_392, %c0_393], %501 {strides = array<i32>} : memref<1x16x16x128xbf16, #tpu.memory_space<vmem>>, vector<1x1x16x128xbf16>,
    }
    %c16_i32_0 = arith.constant 16 : i32
    return
  }
  func.func @transform_0(%arg0: i32, %arg1: i32) -> (i32, i32, i32, i32) {
    %c0_i32 = arith.constant 0 : i32
    %c0_i32_0 = arith.constant 0 : i32
    %c0_i32_1 = arith.constant 0 : i32
    %c0_i32_2 = arith.constant 0 : i32
    return %arg0, %c0_i32, %c0_i32_0, %c0_i32_1 : i32, i32, i32, i32
  }
  func.func @transform_1(%arg0: i32, %arg1: i32) -> (i32, i32, i32) {
    %c0_i32 = arith.constant 0 : i32
    %c0_i32_0 = arith.constant 0 : i32
    %c0_i32_1 = arith.constant 0 : i32
    return %c0_i32, %c0_i32_0, %arg1 : i32, i32, i32
  }
  func.func @transform_2(%arg0: i32, %arg1: i32) -> (i32, i32) {
    %c0_i32 = arith.constant 0 : i32
    %c0_i32_0 = arith.constant 0 : i32
    return %c0_i32, %arg1 : i32, i32
  }
  func.func @transform_3(%arg0: i32, %arg1: i32) -> (i32, i32, i32, i32) {
    %c0_i32 = arith.constant 0 : i32
    %c0_i32_0 = arith.constant 0 : i32
    %c0_i32_1 = arith.constant 0 : i32
    return %arg0, %c0_i32, %c0_i32_0, %arg1 : i32, i32, i32, i32
  }
}

module attributes {stable_mosaic.version = 11 : i64} {
  func.func @_maxpool_kernel(%arg0: i32, %arg1: memref<1x36x9x128xbf16, #tpu.memory_space<vmem>>, %arg2: memref<1x8x8x128xbf16, #tpu.memory_space<vmem>>) attributes {dimension_semantics = [#tpu.dimension_semantics<parallel>], iteration_bounds = array<i64: 2>, scalar_prefetch = 0 : i64, scratch_operands = 0 : i64, tpu.core_type = #tpu.core_type<tc>, window_params = [{transform_indices = @transform_0, window_bounds = array<i64: 1, 36, 9, 128>}, {transform_indices = @transform_1, window_bounds = array<i64: 1, 8, 8, 128>}]} {
    %c0_i32 = arith.constant 0 : i32
    %c8_i32 = arith.constant 8 : i32
    %0 = arith.addi %c0_i32, %c8_i32 : i32
    %c1_i32 = arith.constant 1 : i32
    scf.for %arg3 = %c0_i32 to %0 step %c1_i32  : i32 {
      %c0_i32_1 = arith.constant 0 : i32
      %1 = arith.addi %c0_i32_1, %arg3 : i32
      %c0_i32_2 = arith.constant 0 : i32
      %2 = arith.addi %1, %c0_i32_2 : i32
      %c0 = arith.constant 0 : index
      %3 = arith.index_cast %2 : i32 to index
      %c0_3 = arith.constant 0 : index
      %c0_4 = arith.constant 0 : index
      %4 = vector.load %arg1[%c0, %3, %c0_3, %c0_4] : memref<1x36x9x128xbf16, #tpu.memory_space<vmem>>, vector<1x1x9x128xbf16>
      %5 = vector.shape_cast %4 : vector<1x1x9x128xbf16> to vector<9x128xbf16>
      %6 = vector.extract_strided_slice %5 {offsets = [0, 0], sizes = [8, 128], strides = [1, 1]} : vector<9x128xbf16> to vector<8x128xbf16>
      %c9_i32 = arith.constant 9 : i32
      %7 = arith.addi %c9_i32, %arg3 : i32
      %c0_i32_5 = arith.constant 0 : i32
      %8 = arith.addi %7, %c0_i32_5 : i32
      %c0_6 = arith.constant 0 : index
      %9 = arith.index_cast %8 : i32 to index
      %c0_7 = arith.constant 0 : index
      %c0_8 = arith.constant 0 : index
      %10 = vector.load %arg1[%c0_6, %9, %c0_7, %c0_8] : memref<1x36x9x128xbf16, #tpu.memory_space<vmem>>, vector<1x1x9x128xbf16>
      %11 = vector.shape_cast %10 : vector<1x1x9x128xbf16> to vector<9x128xbf16>
      %12 = vector.extract_strided_slice %11 {offsets = [0, 0], sizes = [8, 128], strides = [1, 1]} : vector<9x128xbf16> to vector<8x128xbf16>
      %13 = arith.maximumf %6, %12 : vector<8x128xbf16>
      %c0_i32_9 = arith.constant 0 : i32
      %14 = arith.addi %c0_i32_9, %arg3 : i32
      %c0_i32_10 = arith.constant 0 : i32
      %15 = arith.addi %14, %c0_i32_10 : i32
      %c0_11 = arith.constant 0 : index
      %16 = arith.index_cast %15 : i32 to index
      %c0_12 = arith.constant 0 : index
      %c0_13 = arith.constant 0 : index
      %17 = vector.load %arg1[%c0_11, %16, %c0_12, %c0_13] : memref<1x36x9x128xbf16, #tpu.memory_space<vmem>>, vector<1x1x9x128xbf16>
      %18 = vector.shape_cast %17 : vector<1x1x9x128xbf16> to vector<9x128xbf16>
      %19 = vector.extract_strided_slice %18 {offsets = [1, 0], sizes = [8, 128], strides = [1, 1]} : vector<9x128xbf16> to vector<8x128xbf16>
      %20 = arith.maximumf %13, %19 : vector<8x128xbf16>
      %c18_i32 = arith.constant 18 : i32
      %21 = arith.addi %c18_i32, %arg3 : i32
      %c0_i32_14 = arith.constant 0 : i32
      %22 = arith.addi %21, %c0_i32_14 : i32
      %c0_15 = arith.constant 0 : index
      %23 = arith.index_cast %22 : i32 to index
      %c0_16 = arith.constant 0 : index
      %c0_17 = arith.constant 0 : index
      %24 = vector.load %arg1[%c0_15, %23, %c0_16, %c0_17] : memref<1x36x9x128xbf16, #tpu.memory_space<vmem>>, vector<1x1x9x128xbf16>
      %25 = vector.shape_cast %24 : vector<1x1x9x128xbf16> to vector<9x128xbf16>
      %26 = vector.extract_strided_slice %25 {offsets = [0, 0], sizes = [8, 128], strides = [1, 1]} : vector<9x128xbf16> to vector<8x128xbf16>
      %27 = arith.maximumf %20, %26 : vector<8x128xbf16>
      %c27_i32 = arith.constant 27 : i32
      %28 = arith.addi %c27_i32, %arg3 : i32
      %c0_i32_18 = arith.constant 0 : i32
      %29 = arith.addi %28, %c0_i32_18 : i32
      %c0_19 = arith.constant 0 : index
      %30 = arith.index_cast %29 : i32 to index
      %c0_20 = arith.constant 0 : index
      %c0_21 = arith.constant 0 : index
      %31 = vector.load %arg1[%c0_19, %30, %c0_20, %c0_21] : memref<1x36x9x128xbf16, #tpu.memory_space<vmem>>, vector<1x1x9x128xbf16>
      %32 = vector.shape_cast %31 : vector<1x1x9x128xbf16> to vector<9x128xbf16>
      %33 = vector.extract_strided_slice %32 {offsets = [0, 0], sizes = [8, 128], strides = [1, 1]} : vector<9x128xbf16> to vector<8x128xbf16>
      %34 = arith.maximumf %27, %33 : vector<8x128xbf16>
      %c18_i32_22 = arith.constant 18 : i32
      %35 = arith.addi %c18_i32_22, %arg3 : i32
      %c0_i32_23 = arith.constant 0 : i32
      %36 = arith.addi %35, %c0_i32_23 : i32
      %c0_24 = arith.constant 0 : index
      %37 = arith.index_cast %36 : i32 to index
      %c0_25 = arith.constant 0 : index
      %c0_26 = arith.constant 0 : index
      %38 = vector.load %arg1[%c0_24, %37, %c0_25, %c0_26] : memref<1x36x9x128xbf16, #tpu.memory_space<vmem>>, vector<1x1x9x128xbf16>
      %39 = vector.shape_cast %38 : vector<1x1x9x128xbf16> to vector<9x128xbf16>
      %40 = vector.extract_strided_slice %39 {offsets = [1, 0], sizes = [8, 128], strides = [1, 1]} : vector<9x128xbf16> to vector<8x128xbf16>
      %41 = arith.maximumf %34, %40 : vector<8x128xbf16>
      %c0_i32_27 = arith.constant 0 : i32
      %42 = arith.addi %c0_i32_27, %arg3 : i32
      %c1_i32_28 = arith.constant 1 : i32
      %43 = arith.addi %42, %c1_i32_28 : i32
      %c0_29 = arith.constant 0 : index
      %44 = arith.index_cast %43 : i32 to index
      %c0_30 = arith.constant 0 : index
      %c0_31 = arith.constant 0 : index
      %45 = vector.load %arg1[%c0_29, %44, %c0_30, %c0_31] : memref<1x36x9x128xbf16, #tpu.memory_space<vmem>>, vector<1x1x9x128xbf16>
      %46 = vector.shape_cast %45 : vector<1x1x9x128xbf16> to vector<9x128xbf16>
      %47 = vector.extract_strided_slice %46 {offsets = [0, 0], sizes = [8, 128], strides = [1, 1]} : vector<9x128xbf16> to vector<8x128xbf16>
      %48 = arith.maximumf %41, %47 : vector<8x128xbf16>
      %c9_i32_32 = arith.constant 9 : i32
      %49 = arith.addi %c9_i32_32, %arg3 : i32
      %c1_i32_33 = arith.constant 1 : i32
      %50 = arith.addi %49, %c1_i32_33 : i32
      %c0_34 = arith.constant 0 : index
      %51 = arith.index_cast %50 : i32 to index
      %c0_35 = arith.constant 0 : index
      %c0_36 = arith.constant 0 : index
      %52 = vector.load %arg1[%c0_34, %51, %c0_35, %c0_36] : memref<1x36x9x128xbf16, #tpu.memory_space<vmem>>, vector<1x1x9x128xbf16>
      %53 = vector.shape_cast %52 : vector<1x1x9x128xbf16> to vector<9x128xbf16>
      %54 = vector.extract_strided_slice %53 {offsets = [0, 0], sizes = [8, 128], strides = [1, 1]} : vector<9x128xbf16> to vector<8x128xbf16>
      %55 = arith.maximumf %48, %54 : vector<8x128xbf16>
      %c0_i32_37 = arith.constant 0 : i32
      %56 = arith.addi %c0_i32_37, %arg3 : i32
      %c1_i32_38 = arith.constant 1 : i32
      %57 = arith.addi %56, %c1_i32_38 : i32
      %c0_39 = arith.constant 0 : index
      %58 = arith.index_cast %57 : i32 to index
      %c0_40 = arith.constant 0 : index
      %c0_41 = arith.constant 0 : index
      %59 = vector.load %arg1[%c0_39, %58, %c0_40, %c0_41] : memref<1x36x9x128xbf16, #tpu.memory_space<vmem>>, vector<1x1x9x128xbf16>
      %60 = vector.shape_cast %59 : vector<1x1x9x128xbf16> to vector<9x128xbf16>
      %61 = vector.extract_strided_slice %60 {offsets = [1, 0], sizes = [8, 128], strides = [1, 1]} : vector<9x128xbf16> to vector<8x128xbf16>
      %62 = arith.maximumf %55, %61 : vector<8x128xbf16>
      %c0_42 = arith.constant 0 : index
      %63 = arith.index_cast %arg3 : i32 to index
      %c0_43 = arith.constant 0 : index
      %c0_44 = arith.constant 0 : index
      %64 = vector.load %arg2[%c0_42, %63, %c0_43, %c0_44] : memref<1x8x8x128xbf16, #tpu.memory_space<vmem>>, vector<1x1x8x128xbf16>
      %65 = vector.shape_cast %64 : vector<1x1x8x128xbf16> to vector<8x128xbf16>
      %66 = vector.shape_cast %62 : vector<8x128xbf16> to vector<1x1x8x128xbf16>
      tpu.vector_store %arg2[%c0_42, %63, %c0_43, %c0_44], %66 {strides = array<i32>} : memref<1x8x8x128xbf16, #tpu.memory_space<vmem>>, vector<1x1x8x128xbf16>,
    }
    %c8_i32_0 = arith.constant 8 : i32
    return
  }
  func.func @transform_0(%arg0: i32) -> (i32, i32, i32, i32) {
    %c0_i32 = arith.constant 0 : i32
    %c0_i32_0 = arith.constant 0 : i32
    %c0_i32_1 = arith.constant 0 : i32
    %c0_i32_2 = arith.constant 0 : i32
    return %arg0, %c0_i32, %c0_i32_0, %c0_i32_1 : i32, i32, i32, i32
  }
  func.func @transform_1(%arg0: i32) -> (i32, i32, i32, i32) {
    %c0_i32 = arith.constant 0 : i32
    %c0_i32_0 = arith.constant 0 : i32
    %c0_i32_1 = arith.constant 0 : i32
    %c0_i32_2 = arith.constant 0 : i32
    return %arg0, %c0_i32, %c0_i32_0, %c0_i32_1 : i32, i32, i32, i32
  }
}

module attributes {stable_mosaic.version = 11 : i64} {
  func.func @_mm_bias_kernel(%arg0: i32, %arg1: i32, %arg2: memref<128x128xbf16, #tpu.memory_space<vmem>>, %arg3: memref<128x128xbf16, #tpu.memory_space<vmem>>, %arg4: memref<1x128xf32, #tpu.memory_space<vmem>>, %arg5: memref<128x128xbf16, #tpu.memory_space<vmem>>) attributes {dimension_semantics = [#tpu.dimension_semantics<parallel>, #tpu.dimension_semantics<parallel>], iteration_bounds = array<i64: 1, 1>, scalar_prefetch = 0 : i64, scratch_operands = 0 : i64, tpu.core_type = #tpu.core_type<tc>, window_params = [{transform_indices = @transform_0, window_bounds = array<i64: 128, 128>}, {transform_indices = @transform_1, window_bounds = array<i64: 128, 128>}, {transform_indices = @transform_2, window_bounds = array<i64: 1, 128>}, {transform_indices = @transform_3, window_bounds = array<i64: 128, 128>}]} {
    %c0 = arith.constant 0 : index
    %c0_0 = arith.constant 0 : index
    %0 = vector.load %arg2[%c0, %c0_0] : memref<128x128xbf16, #tpu.memory_space<vmem>>, vector<128x128xbf16>
    %c0_1 = arith.constant 0 : index
    %c0_2 = arith.constant 0 : index
    %1 = vector.load %arg3[%c0_1, %c0_2] : memref<128x128xbf16, #tpu.memory_space<vmem>>, vector<128x128xbf16>
    %cst = arith.constant dense<0.000000e+00> : vector<128x128xf32>
    %2 = tpu.matmul %0, %1, %cst {dimension_numbers = #tpu.dot_dimension_numbers<[1], [0], [0], [1], [0, 0, 1, 1], [], []>} : vector<128x128xbf16>, vector<128x128xbf16>, vector<128x128xf32> -> vector<128x128xf32>
    %c0_3 = arith.constant 0 : index
    %c0_4 = arith.constant 0 : index
    %3 = vector.load %arg4[%c0_3, %c0_4] : memref<1x128xf32, #tpu.memory_space<vmem>>, vector<1x128xf32>
    %4 = vector.broadcast %3 : vector<1x128xf32> to vector<128x128xf32>
    %5 = arith.addf %2, %4 : vector<128x128xf32>
    %6 = arith.truncf %5 : vector<128x128xf32> to vector<128x128xbf16>
    %c0_5 = arith.constant 0 : index
    %c0_6 = arith.constant 0 : index
    %7 = vector.load %arg5[%c0_5, %c0_6] : memref<128x128xbf16, #tpu.memory_space<vmem>>, vector<128x128xbf16>
    tpu.vector_store %arg5[%c0_5, %c0_6], %6 {strides = array<i32>} : memref<128x128xbf16, #tpu.memory_space<vmem>>, vector<128x128xbf16>,
    return
  }
  func.func @transform_0(%arg0: i32, %arg1: i32) -> (i32, i32) {
    %c0_i32 = arith.constant 0 : i32
    %c0_i32_0 = arith.constant 0 : i32
    return %arg0, %c0_i32 : i32, i32
  }
  func.func @transform_1(%arg0: i32, %arg1: i32) -> (i32, i32) {
    %c0_i32 = arith.constant 0 : i32
    %c0_i32_0 = arith.constant 0 : i32
    return %c0_i32, %arg1 : i32, i32
  }
  func.func @transform_2(%arg0: i32, %arg1: i32) -> (i32, i32) {
    %c0_i32 = arith.constant 0 : i32
    %c0_i32_0 = arith.constant 0 : i32
    return %c0_i32, %arg1 : i32, i32
  }
  func.func @transform_3(%arg0: i32, %arg1: i32) -> (i32, i32) {
    %c0_i32 = arith.constant 0 : i32
    return %arg0, %arg1 : i32, i32
  }
}

module attributes {stable_mosaic.version = 11 : i64} {
  func.func @_mm_bias_kernel(%arg0: i32, %arg1: i32, %arg2: memref<128x128xbf16, #tpu.memory_space<vmem>>, %arg3: memref<128x128xbf16, #tpu.memory_space<vmem>>, %arg4: memref<1x128xf32, #tpu.memory_space<vmem>>, %arg5: memref<128x128xbf16, #tpu.memory_space<vmem>>) attributes {dimension_semantics = [#tpu.dimension_semantics<parallel>, #tpu.dimension_semantics<parallel>], iteration_bounds = array<i64: 1, 1>, scalar_prefetch = 0 : i64, scratch_operands = 0 : i64, tpu.core_type = #tpu.core_type<tc>, window_params = [{transform_indices = @transform_0, window_bounds = array<i64: 128, 128>}, {transform_indices = @transform_1, window_bounds = array<i64: 128, 128>}, {transform_indices = @transform_2, window_bounds = array<i64: 1, 128>}, {transform_indices = @transform_3, window_bounds = array<i64: 128, 128>}]} {
    %c0 = arith.constant 0 : index
    %c0_0 = arith.constant 0 : index
    %0 = vector.load %arg2[%c0, %c0_0] : memref<128x128xbf16, #tpu.memory_space<vmem>>, vector<128x128xbf16>
    %c0_1 = arith.constant 0 : index
    %c0_2 = arith.constant 0 : index
    %1 = vector.load %arg3[%c0_1, %c0_2] : memref<128x128xbf16, #tpu.memory_space<vmem>>, vector<128x128xbf16>
    %cst = arith.constant dense<0.000000e+00> : vector<128x128xf32>
    %2 = tpu.matmul %0, %1, %cst {dimension_numbers = #tpu.dot_dimension_numbers<[1], [0], [0], [1], [0, 0, 1, 1], [], []>} : vector<128x128xbf16>, vector<128x128xbf16>, vector<128x128xf32> -> vector<128x128xf32>
    %c0_3 = arith.constant 0 : index
    %c0_4 = arith.constant 0 : index
    %3 = vector.load %arg4[%c0_3, %c0_4] : memref<1x128xf32, #tpu.memory_space<vmem>>, vector<1x128xf32>
    %4 = vector.broadcast %3 : vector<1x128xf32> to vector<128x128xf32>
    %5 = arith.addf %2, %4 : vector<128x128xf32>
    %cst_5 = arith.constant 0.000000e+00 : f32
    %6 = vector.broadcast %cst_5 : f32 to vector<128x128xf32>
    %7 = arith.maximumf %5, %6 : vector<128x128xf32>
    %8 = arith.truncf %7 : vector<128x128xf32> to vector<128x128xbf16>
    %c0_6 = arith.constant 0 : index
    %c0_7 = arith.constant 0 : index
    %9 = vector.load %arg5[%c0_6, %c0_7] : memref<128x128xbf16, #tpu.memory_space<vmem>>, vector<128x128xbf16>
    tpu.vector_store %arg5[%c0_6, %c0_7], %8 {strides = array<i32>} : memref<128x128xbf16, #tpu.memory_space<vmem>>, vector<128x128xbf16>,
    return
  }
  func.func @transform_0(%arg0: i32, %arg1: i32) -> (i32, i32) {
    %c0_i32 = arith.constant 0 : i32
    %c0_i32_0 = arith.constant 0 : i32
    return %arg0, %c0_i32 : i32, i32
  }
  func.func @transform_1(%arg0: i32, %arg1: i32) -> (i32, i32) {
    %c0_i32 = arith.constant 0 : i32
    %c0_i32_0 = arith.constant 0 : i32
    return %c0_i32, %arg1 : i32, i32
  }
  func.func @transform_2(%arg0: i32, %arg1: i32) -> (i32, i32) {
    %c0_i32 = arith.constant 0 : i32
    %c0_i32_0 = arith.constant 0 : i32
    return %c0_i32, %arg1 : i32, i32
  }
  func.func @transform_3(%arg0: i32, %arg1: i32) -> (i32, i32) {
    %c0_i32 = arith.constant 0 : i32
    return %arg0, %arg1 : i32, i32
  }
}

module attributes {stable_mosaic.version = 11 : i64} {
  func.func @_tap_conv_kernel(%arg0: i32, %arg1: i32, %arg2: memref<1x10x10x128xbf16, #tpu.memory_space<vmem>>, %arg3: memref<9x128x128xbf16, #tpu.memory_space<vmem>>, %arg4: memref<1x128xf32, #tpu.memory_space<vmem>>, %arg5: memref<1x8x8x128xbf16, #tpu.memory_space<vmem>>) attributes {dimension_semantics = [#tpu.dimension_semantics<parallel>, #tpu.dimension_semantics<parallel>], iteration_bounds = array<i64: 2, 1>, scalar_prefetch = 0 : i64, scratch_operands = 0 : i64, tpu.core_type = #tpu.core_type<tc>, window_params = [{transform_indices = @transform_0, window_bounds = array<i64: 1, 10, 10, 128>}, {transform_indices = @transform_1, window_bounds = array<i64: 9, 128, 128>}, {transform_indices = @transform_2, window_bounds = array<i64: 1, 128>}, {transform_indices = @transform_3, window_bounds = array<i64: 1, 8, 8, 128>}]} {
    %c0_i32 = arith.constant 0 : i32
    %c8_i32 = arith.constant 8 : i32
    %0 = arith.addi %c0_i32, %c8_i32 : i32
    %c1_i32 = arith.constant 1 : i32
    scf.for %arg6 = %c0_i32 to %0 step %c1_i32  : i32 {
      %cst = arith.constant 0.000000e+00 : f32
      %1 = vector.broadcast %cst : f32 to vector<8x128xf32>
      %c0_i32_1 = arith.constant 0 : i32
      %2 = arith.addi %c0_i32_1, %arg6 : i32
      %c0_i32_2 = arith.constant 0 : i32
      %3 = arith.addi %2, %c0_i32_2 : i32
      %c0 = arith.constant 0 : index
      %4 = arith.index_cast %3 : i32 to index
      %c0_3 = arith.constant 0 : index
      %c0_4 = arith.constant 0 : index
      %5 = vector.load %arg2[%c0, %4, %c0_3, %c0_4] : memref<1x10x10x128xbf16, #tpu.memory_space<vmem>>, vector<1x1x10x128xbf16>
      %6 = vector.shape_cast %5 : vector<1x1x10x128xbf16> to vector<10x128xbf16>
      %7 = vector.extract_strided_slice %6 {offsets = [0, 0], sizes = [8, 128], strides = [1, 1]} : vector<10x128xbf16> to vector<8x128xbf16>
      %c0_5 = arith.constant 0 : index
      %c0_6 = arith.constant 0 : index
      %c0_7 = arith.constant 0 : index
      %8 = vector.load %arg3[%c0_5, %c0_6, %c0_7] : memref<9x128x128xbf16, #tpu.memory_space<vmem>>, vector<1x128x128xbf16>
      %9 = vector.shape_cast %8 : vector<1x128x128xbf16> to vector<128x128xbf16>
      %cst_8 = arith.constant dense<0.000000e+00> : vector<8x128xf32>
      %10 = tpu.matmul %7, %9, %cst_8 {dimension_numbers = #tpu.dot_dimension_numbers<[1], [0], [0], [1], [0, 0, 1, 1], [], []>} : vector<8x128xbf16>, vector<128x128xbf16>, vector<8x128xf32> -> vector<8x128xf32>
      %11 = arith.addf %1, %10 : vector<8x128xf32>
      %c0_i32_9 = arith.constant 0 : i32
      %12 = arith.addi %c0_i32_9, %arg6 : i32
      %c0_i32_10 = arith.constant 0 : i32
      %13 = arith.addi %12, %c0_i32_10 : i32
      %c0_11 = arith.constant 0 : index
      %14 = arith.index_cast %13 : i32 to index
      %c0_12 = arith.constant 0 : index
      %c0_13 = arith.constant 0 : index
      %15 = vector.load %arg2[%c0_11, %14, %c0_12, %c0_13] : memref<1x10x10x128xbf16, #tpu.memory_space<vmem>>, vector<1x1x10x128xbf16>
      %16 = vector.shape_cast %15 : vector<1x1x10x128xbf16> to vector<10x128xbf16>
      %17 = vector.extract_strided_slice %16 {offsets = [1, 0], sizes = [8, 128], strides = [1, 1]} : vector<10x128xbf16> to vector<8x128xbf16>
      %c1 = arith.constant 1 : index
      %c0_14 = arith.constant 0 : index
      %c0_15 = arith.constant 0 : index
      %18 = vector.load %arg3[%c1, %c0_14, %c0_15] : memref<9x128x128xbf16, #tpu.memory_space<vmem>>, vector<1x128x128xbf16>
      %19 = vector.shape_cast %18 : vector<1x128x128xbf16> to vector<128x128xbf16>
      %cst_16 = arith.constant dense<0.000000e+00> : vector<8x128xf32>
      %20 = tpu.matmul %17, %19, %cst_16 {dimension_numbers = #tpu.dot_dimension_numbers<[1], [0], [0], [1], [0, 0, 1, 1], [], []>} : vector<8x128xbf16>, vector<128x128xbf16>, vector<8x128xf32> -> vector<8x128xf32>
      %21 = arith.addf %11, %20 : vector<8x128xf32>
      %c0_i32_17 = arith.constant 0 : i32
      %22 = arith.addi %c0_i32_17, %arg6 : i32
      %c0_i32_18 = arith.constant 0 : i32
      %23 = arith.addi %22, %c0_i32_18 : i32
      %c0_19 = arith.constant 0 : index
      %24 = arith.index_cast %23 : i32 to index
      %c0_20 = arith.constant 0 : index
      %c0_21 = arith.constant 0 : index
      %25 = vector.load %arg2[%c0_19, %24, %c0_20, %c0_21] : memref<1x10x10x128xbf16, #tpu.memory_space<vmem>>, vector<1x1x10x128xbf16>
      %26 = vector.shape_cast %25 : vector<1x1x10x128xbf16> to vector<10x128xbf16>
      %27 = vector.extract_strided_slice %26 {offsets = [2, 0], sizes = [8, 128], strides = [1, 1]} : vector<10x128xbf16> to vector<8x128xbf16>
      %c2 = arith.constant 2 : index
      %c0_22 = arith.constant 0 : index
      %c0_23 = arith.constant 0 : index
      %28 = vector.load %arg3[%c2, %c0_22, %c0_23] : memref<9x128x128xbf16, #tpu.memory_space<vmem>>, vector<1x128x128xbf16>
      %29 = vector.shape_cast %28 : vector<1x128x128xbf16> to vector<128x128xbf16>
      %cst_24 = arith.constant dense<0.000000e+00> : vector<8x128xf32>
      %30 = tpu.matmul %27, %29, %cst_24 {dimension_numbers = #tpu.dot_dimension_numbers<[1], [0], [0], [1], [0, 0, 1, 1], [], []>} : vector<8x128xbf16>, vector<128x128xbf16>, vector<8x128xf32> -> vector<8x128xf32>
      %31 = arith.addf %21, %30 : vector<8x128xf32>
      %c0_i32_25 = arith.constant 0 : i32
      %32 = arith.addi %c0_i32_25, %arg6 : i32
      %c1_i32_26 = arith.constant 1 : i32
      %33 = arith.addi %32, %c1_i32_26 : i32
      %c0_27 = arith.constant 0 : index
      %34 = arith.index_cast %33 : i32 to index
      %c0_28 = arith.constant 0 : index
      %c0_29 = arith.constant 0 : index
      %35 = vector.load %arg2[%c0_27, %34, %c0_28, %c0_29] : memref<1x10x10x128xbf16, #tpu.memory_space<vmem>>, vector<1x1x10x128xbf16>
      %36 = vector.shape_cast %35 : vector<1x1x10x128xbf16> to vector<10x128xbf16>
      %37 = vector.extract_strided_slice %36 {offsets = [0, 0], sizes = [8, 128], strides = [1, 1]} : vector<10x128xbf16> to vector<8x128xbf16>
      %c3 = arith.constant 3 : index
      %c0_30 = arith.constant 0 : index
      %c0_31 = arith.constant 0 : index
      %38 = vector.load %arg3[%c3, %c0_30, %c0_31] : memref<9x128x128xbf16, #tpu.memory_space<vmem>>, vector<1x128x128xbf16>
      %39 = vector.shape_cast %38 : vector<1x128x128xbf16> to vector<128x128xbf16>
      %cst_32 = arith.constant dense<0.000000e+00> : vector<8x128xf32>
      %40 = tpu.matmul %37, %39, %cst_32 {dimension_numbers = #tpu.dot_dimension_numbers<[1], [0], [0], [1], [0, 0, 1, 1], [], []>} : vector<8x128xbf16>, vector<128x128xbf16>, vector<8x128xf32> -> vector<8x128xf32>
      %41 = arith.addf %31, %40 : vector<8x128xf32>
      %c0_i32_33 = arith.constant 0 : i32
      %42 = arith.addi %c0_i32_33, %arg6 : i32
      %c1_i32_34 = arith.constant 1 : i32
      %43 = arith.addi %42, %c1_i32_34 : i32
      %c0_35 = arith.constant 0 : index
      %44 = arith.index_cast %43 : i32 to index
      %c0_36 = arith.constant 0 : index
      %c0_37 = arith.constant 0 : index
      %45 = vector.load %arg2[%c0_35, %44, %c0_36, %c0_37] : memref<1x10x10x128xbf16, #tpu.memory_space<vmem>>, vector<1x1x10x128xbf16>
      %46 = vector.shape_cast %45 : vector<1x1x10x128xbf16> to vector<10x128xbf16>
      %47 = vector.extract_strided_slice %46 {offsets = [1, 0], sizes = [8, 128], strides = [1, 1]} : vector<10x128xbf16> to vector<8x128xbf16>
      %c4 = arith.constant 4 : index
      %c0_38 = arith.constant 0 : index
      %c0_39 = arith.constant 0 : index
      %48 = vector.load %arg3[%c4, %c0_38, %c0_39] : memref<9x128x128xbf16, #tpu.memory_space<vmem>>, vector<1x128x128xbf16>
      %49 = vector.shape_cast %48 : vector<1x128x128xbf16> to vector<128x128xbf16>
      %cst_40 = arith.constant dense<0.000000e+00> : vector<8x128xf32>
      %50 = tpu.matmul %47, %49, %cst_40 {dimension_numbers = #tpu.dot_dimension_numbers<[1], [0], [0], [1], [0, 0, 1, 1], [], []>} : vector<8x128xbf16>, vector<128x128xbf16>, vector<8x128xf32> -> vector<8x128xf32>
      %51 = arith.addf %41, %50 : vector<8x128xf32>
      %c0_i32_41 = arith.constant 0 : i32
      %52 = arith.addi %c0_i32_41, %arg6 : i32
      %c1_i32_42 = arith.constant 1 : i32
      %53 = arith.addi %52, %c1_i32_42 : i32
      %c0_43 = arith.constant 0 : index
      %54 = arith.index_cast %53 : i32 to index
      %c0_44 = arith.constant 0 : index
      %c0_45 = arith.constant 0 : index
      %55 = vector.load %arg2[%c0_43, %54, %c0_44, %c0_45] : memref<1x10x10x128xbf16, #tpu.memory_space<vmem>>, vector<1x1x10x128xbf16>
      %56 = vector.shape_cast %55 : vector<1x1x10x128xbf16> to vector<10x128xbf16>
      %57 = vector.extract_strided_slice %56 {offsets = [2, 0], sizes = [8, 128], strides = [1, 1]} : vector<10x128xbf16> to vector<8x128xbf16>
      %c5 = arith.constant 5 : index
      %c0_46 = arith.constant 0 : index
      %c0_47 = arith.constant 0 : index
      %58 = vector.load %arg3[%c5, %c0_46, %c0_47] : memref<9x128x128xbf16, #tpu.memory_space<vmem>>, vector<1x128x128xbf16>
      %59 = vector.shape_cast %58 : vector<1x128x128xbf16> to vector<128x128xbf16>
      %cst_48 = arith.constant dense<0.000000e+00> : vector<8x128xf32>
      %60 = tpu.matmul %57, %59, %cst_48 {dimension_numbers = #tpu.dot_dimension_numbers<[1], [0], [0], [1], [0, 0, 1, 1], [], []>} : vector<8x128xbf16>, vector<128x128xbf16>, vector<8x128xf32> -> vector<8x128xf32>
      %61 = arith.addf %51, %60 : vector<8x128xf32>
      %c0_i32_49 = arith.constant 0 : i32
      %62 = arith.addi %c0_i32_49, %arg6 : i32
      %c2_i32 = arith.constant 2 : i32
      %63 = arith.addi %62, %c2_i32 : i32
      %c0_50 = arith.constant 0 : index
      %64 = arith.index_cast %63 : i32 to index
      %c0_51 = arith.constant 0 : index
      %c0_52 = arith.constant 0 : index
      %65 = vector.load %arg2[%c0_50, %64, %c0_51, %c0_52] : memref<1x10x10x128xbf16, #tpu.memory_space<vmem>>, vector<1x1x10x128xbf16>
      %66 = vector.shape_cast %65 : vector<1x1x10x128xbf16> to vector<10x128xbf16>
      %67 = vector.extract_strided_slice %66 {offsets = [0, 0], sizes = [8, 128], strides = [1, 1]} : vector<10x128xbf16> to vector<8x128xbf16>
      %c6 = arith.constant 6 : index
      %c0_53 = arith.constant 0 : index
      %c0_54 = arith.constant 0 : index
      %68 = vector.load %arg3[%c6, %c0_53, %c0_54] : memref<9x128x128xbf16, #tpu.memory_space<vmem>>, vector<1x128x128xbf16>
      %69 = vector.shape_cast %68 : vector<1x128x128xbf16> to vector<128x128xbf16>
      %cst_55 = arith.constant dense<0.000000e+00> : vector<8x128xf32>
      %70 = tpu.matmul %67, %69, %cst_55 {dimension_numbers = #tpu.dot_dimension_numbers<[1], [0], [0], [1], [0, 0, 1, 1], [], []>} : vector<8x128xbf16>, vector<128x128xbf16>, vector<8x128xf32> -> vector<8x128xf32>
      %71 = arith.addf %61, %70 : vector<8x128xf32>
      %c0_i32_56 = arith.constant 0 : i32
      %72 = arith.addi %c0_i32_56, %arg6 : i32
      %c2_i32_57 = arith.constant 2 : i32
      %73 = arith.addi %72, %c2_i32_57 : i32
      %c0_58 = arith.constant 0 : index
      %74 = arith.index_cast %73 : i32 to index
      %c0_59 = arith.constant 0 : index
      %c0_60 = arith.constant 0 : index
      %75 = vector.load %arg2[%c0_58, %74, %c0_59, %c0_60] : memref<1x10x10x128xbf16, #tpu.memory_space<vmem>>, vector<1x1x10x128xbf16>
      %76 = vector.shape_cast %75 : vector<1x1x10x128xbf16> to vector<10x128xbf16>
      %77 = vector.extract_strided_slice %76 {offsets = [1, 0], sizes = [8, 128], strides = [1, 1]} : vector<10x128xbf16> to vector<8x128xbf16>
      %c7 = arith.constant 7 : index
      %c0_61 = arith.constant 0 : index
      %c0_62 = arith.constant 0 : index
      %78 = vector.load %arg3[%c7, %c0_61, %c0_62] : memref<9x128x128xbf16, #tpu.memory_space<vmem>>, vector<1x128x128xbf16>
      %79 = vector.shape_cast %78 : vector<1x128x128xbf16> to vector<128x128xbf16>
      %cst_63 = arith.constant dense<0.000000e+00> : vector<8x128xf32>
      %80 = tpu.matmul %77, %79, %cst_63 {dimension_numbers = #tpu.dot_dimension_numbers<[1], [0], [0], [1], [0, 0, 1, 1], [], []>} : vector<8x128xbf16>, vector<128x128xbf16>, vector<8x128xf32> -> vector<8x128xf32>
      %81 = arith.addf %71, %80 : vector<8x128xf32>
      %c0_i32_64 = arith.constant 0 : i32
      %82 = arith.addi %c0_i32_64, %arg6 : i32
      %c2_i32_65 = arith.constant 2 : i32
      %83 = arith.addi %82, %c2_i32_65 : i32
      %c0_66 = arith.constant 0 : index
      %84 = arith.index_cast %83 : i32 to index
      %c0_67 = arith.constant 0 : index
      %c0_68 = arith.constant 0 : index
      %85 = vector.load %arg2[%c0_66, %84, %c0_67, %c0_68] : memref<1x10x10x128xbf16, #tpu.memory_space<vmem>>, vector<1x1x10x128xbf16>
      %86 = vector.shape_cast %85 : vector<1x1x10x128xbf16> to vector<10x128xbf16>
      %87 = vector.extract_strided_slice %86 {offsets = [2, 0], sizes = [8, 128], strides = [1, 1]} : vector<10x128xbf16> to vector<8x128xbf16>
      %c8 = arith.constant 8 : index
      %c0_69 = arith.constant 0 : index
      %c0_70 = arith.constant 0 : index
      %88 = vector.load %arg3[%c8, %c0_69, %c0_70] : memref<9x128x128xbf16, #tpu.memory_space<vmem>>, vector<1x128x128xbf16>
      %89 = vector.shape_cast %88 : vector<1x128x128xbf16> to vector<128x128xbf16>
      %cst_71 = arith.constant dense<0.000000e+00> : vector<8x128xf32>
      %90 = tpu.matmul %87, %89, %cst_71 {dimension_numbers = #tpu.dot_dimension_numbers<[1], [0], [0], [1], [0, 0, 1, 1], [], []>} : vector<8x128xbf16>, vector<128x128xbf16>, vector<8x128xf32> -> vector<8x128xf32>
      %91 = arith.addf %81, %90 : vector<8x128xf32>
      %c0_72 = arith.constant 0 : index
      %c0_73 = arith.constant 0 : index
      %92 = vector.load %arg4[%c0_72, %c0_73] : memref<1x128xf32, #tpu.memory_space<vmem>>, vector<1x128xf32>
      %93 = vector.broadcast %92 : vector<1x128xf32> to vector<8x128xf32>
      %94 = arith.addf %91, %93 : vector<8x128xf32>
      %cst_74 = arith.constant 0.000000e+00 : f32
      %95 = vector.broadcast %cst_74 : f32 to vector<8x128xf32>
      %96 = arith.maximumf %94, %95 : vector<8x128xf32>
      %97 = arith.truncf %96 : vector<8x128xf32> to vector<8x128xbf16>
      %c0_75 = arith.constant 0 : index
      %98 = arith.index_cast %arg6 : i32 to index
      %c0_76 = arith.constant 0 : index
      %c0_77 = arith.constant 0 : index
      %99 = vector.load %arg5[%c0_75, %98, %c0_76, %c0_77] : memref<1x8x8x128xbf16, #tpu.memory_space<vmem>>, vector<1x1x8x128xbf16>
      %100 = vector.shape_cast %99 : vector<1x1x8x128xbf16> to vector<8x128xbf16>
      %101 = vector.shape_cast %97 : vector<8x128xbf16> to vector<1x1x8x128xbf16>
      tpu.vector_store %arg5[%c0_75, %98, %c0_76, %c0_77], %101 {strides = array<i32>} : memref<1x8x8x128xbf16, #tpu.memory_space<vmem>>, vector<1x1x8x128xbf16>,
    }
    %c8_i32_0 = arith.constant 8 : i32
    return
  }
  func.func @transform_0(%arg0: i32, %arg1: i32) -> (i32, i32, i32, i32) {
    %c0_i32 = arith.constant 0 : i32
    %c0_i32_0 = arith.constant 0 : i32
    %c0_i32_1 = arith.constant 0 : i32
    %c0_i32_2 = arith.constant 0 : i32
    return %arg0, %c0_i32, %c0_i32_0, %c0_i32_1 : i32, i32, i32, i32
  }
  func.func @transform_1(%arg0: i32, %arg1: i32) -> (i32, i32, i32) {
    %c0_i32 = arith.constant 0 : i32
    %c0_i32_0 = arith.constant 0 : i32
    %c0_i32_1 = arith.constant 0 : i32
    return %c0_i32, %c0_i32_0, %arg1 : i32, i32, i32
  }
  func.func @transform_2(%arg0: i32, %arg1: i32) -> (i32, i32) {
    %c0_i32 = arith.constant 0 : i32
    %c0_i32_0 = arith.constant 0 : i32
    return %c0_i32, %arg1 : i32, i32
  }
  func.func @transform_3(%arg0: i32, %arg1: i32) -> (i32, i32, i32, i32) {
    %c0_i32 = arith.constant 0 : i32
    %c0_i32_0 = arith.constant 0 : i32
    %c0_i32_1 = arith.constant 0 : i32
    return %arg0, %c0_i32, %c0_i32_0, %arg1 : i32, i32, i32, i32
  }
}

module attributes {stable_mosaic.version = 11 : i64} {
  func.func @_mm_bias_res_kernel(%arg0: i32, %arg1: i32, %arg2: memref<128x128xbf16, #tpu.memory_space<vmem>>, %arg3: memref<128x128xbf16, #tpu.memory_space<vmem>>, %arg4: memref<1x128xf32, #tpu.memory_space<vmem>>, %arg5: memref<128x128xbf16, #tpu.memory_space<vmem>>, %arg6: memref<128x128xbf16, #tpu.memory_space<vmem>>) attributes {dimension_semantics = [#tpu.dimension_semantics<parallel>, #tpu.dimension_semantics<parallel>], iteration_bounds = array<i64: 1, 1>, scalar_prefetch = 0 : i64, scratch_operands = 0 : i64, tpu.core_type = #tpu.core_type<tc>, window_params = [{transform_indices = @transform_0, window_bounds = array<i64: 128, 128>}, {transform_indices = @transform_1, window_bounds = array<i64: 128, 128>}, {transform_indices = @transform_2, window_bounds = array<i64: 1, 128>}, {transform_indices = @transform_3, window_bounds = array<i64: 128, 128>}, {transform_indices = @transform_4, window_bounds = array<i64: 128, 128>}]} {
    %c0 = arith.constant 0 : index
    %c0_0 = arith.constant 0 : index
    %0 = vector.load %arg2[%c0, %c0_0] : memref<128x128xbf16, #tpu.memory_space<vmem>>, vector<128x128xbf16>
    %c0_1 = arith.constant 0 : index
    %c0_2 = arith.constant 0 : index
    %1 = vector.load %arg3[%c0_1, %c0_2] : memref<128x128xbf16, #tpu.memory_space<vmem>>, vector<128x128xbf16>
    %cst = arith.constant dense<0.000000e+00> : vector<128x128xf32>
    %2 = tpu.matmul %0, %1, %cst {dimension_numbers = #tpu.dot_dimension_numbers<[1], [0], [0], [1], [0, 0, 1, 1], [], []>} : vector<128x128xbf16>, vector<128x128xbf16>, vector<128x128xf32> -> vector<128x128xf32>
    %c0_3 = arith.constant 0 : index
    %c0_4 = arith.constant 0 : index
    %3 = vector.load %arg4[%c0_3, %c0_4] : memref<1x128xf32, #tpu.memory_space<vmem>>, vector<1x128xf32>
    %4 = vector.broadcast %3 : vector<1x128xf32> to vector<128x128xf32>
    %5 = arith.addf %2, %4 : vector<128x128xf32>
    %c0_5 = arith.constant 0 : index
    %c0_6 = arith.constant 0 : index
    %6 = vector.load %arg5[%c0_5, %c0_6] : memref<128x128xbf16, #tpu.memory_space<vmem>>, vector<128x128xbf16>
    %7 = arith.extf %6 : vector<128x128xbf16> to vector<128x128xf32>
    %8 = arith.addf %5, %7 : vector<128x128xf32>
    %cst_7 = arith.constant 0.000000e+00 : f32
    %9 = vector.broadcast %cst_7 : f32 to vector<128x128xf32>
    %10 = arith.maximumf %8, %9 : vector<128x128xf32>
    %11 = arith.truncf %10 : vector<128x128xf32> to vector<128x128xbf16>
    %c0_8 = arith.constant 0 : index
    %c0_9 = arith.constant 0 : index
    %12 = vector.load %arg6[%c0_8, %c0_9] : memref<128x128xbf16, #tpu.memory_space<vmem>>, vector<128x128xbf16>
    tpu.vector_store %arg6[%c0_8, %c0_9], %11 {strides = array<i32>} : memref<128x128xbf16, #tpu.memory_space<vmem>>, vector<128x128xbf16>,
    return
  }
  func.func @transform_0(%arg0: i32, %arg1: i32) -> (i32, i32) {
    %c0_i32 = arith.constant 0 : i32
    %c0_i32_0 = arith.constant 0 : i32
    return %arg0, %c0_i32 : i32, i32
  }
  func.func @transform_1(%arg0: i32, %arg1: i32) -> (i32, i32) {
    %c0_i32 = arith.constant 0 : i32
    %c0_i32_0 = arith.constant 0 : i32
    return %c0_i32, %arg1 : i32, i32
  }
  func.func @transform_2(%arg0: i32, %arg1: i32) -> (i32, i32) {
    %c0_i32 = arith.constant 0 : i32
    %c0_i32_0 = arith.constant 0 : i32
    return %c0_i32, %arg1 : i32, i32
  }
  func.func @transform_3(%arg0: i32, %arg1: i32) -> (i32, i32) {
    %c0_i32 = arith.constant 0 : i32
    return %arg0, %arg1 : i32, i32
  }
  func.func @transform_4(%arg0: i32, %arg1: i32) -> (i32, i32) {
    %c0_i32 = arith.constant 0 : i32
    return %arg0, %arg1 : i32, i32
  }
}

module attributes {stable_mosaic.version = 11 : i64} {
  func.func @_mm_bias_kernel(%arg0: i32, %arg1: i32, %arg2: memref<32x128xbf16, #tpu.memory_space<vmem>>, %arg3: memref<128x128xbf16, #tpu.memory_space<vmem>>, %arg4: memref<1x128xf32, #tpu.memory_space<vmem>>, %arg5: memref<32x128xbf16, #tpu.memory_space<vmem>>) attributes {dimension_semantics = [#tpu.dimension_semantics<parallel>, #tpu.dimension_semantics<parallel>], iteration_bounds = array<i64: 1, 1>, scalar_prefetch = 0 : i64, scratch_operands = 0 : i64, tpu.core_type = #tpu.core_type<tc>, window_params = [{transform_indices = @transform_0, window_bounds = array<i64: 32, 128>}, {transform_indices = @transform_1, window_bounds = array<i64: 128, 128>}, {transform_indices = @transform_2, window_bounds = array<i64: 1, 128>}, {transform_indices = @transform_3, window_bounds = array<i64: 32, 128>}]} {
    %c0 = arith.constant 0 : index
    %c0_0 = arith.constant 0 : index
    %0 = vector.load %arg2[%c0, %c0_0] : memref<32x128xbf16, #tpu.memory_space<vmem>>, vector<32x128xbf16>
    %c0_1 = arith.constant 0 : index
    %c0_2 = arith.constant 0 : index
    %1 = vector.load %arg3[%c0_1, %c0_2] : memref<128x128xbf16, #tpu.memory_space<vmem>>, vector<128x128xbf16>
    %cst = arith.constant dense<0.000000e+00> : vector<32x128xf32>
    %2 = tpu.matmul %0, %1, %cst {dimension_numbers = #tpu.dot_dimension_numbers<[1], [0], [0], [1], [0, 0, 1, 1], [], []>} : vector<32x128xbf16>, vector<128x128xbf16>, vector<32x128xf32> -> vector<32x128xf32>
    %c0_3 = arith.constant 0 : index
    %c0_4 = arith.constant 0 : index
    %3 = vector.load %arg4[%c0_3, %c0_4] : memref<1x128xf32, #tpu.memory_space<vmem>>, vector<1x128xf32>
    %4 = vector.broadcast %3 : vector<1x128xf32> to vector<32x128xf32>
    %5 = arith.addf %2, %4 : vector<32x128xf32>
    %6 = arith.truncf %5 : vector<32x128xf32> to vector<32x128xbf16>
    %c0_5 = arith.constant 0 : index
    %c0_6 = arith.constant 0 : index
    %7 = vector.load %arg5[%c0_5, %c0_6] : memref<32x128xbf16, #tpu.memory_space<vmem>>, vector<32x128xbf16>
    tpu.vector_store %arg5[%c0_5, %c0_6], %6 {strides = array<i32>} : memref<32x128xbf16, #tpu.memory_space<vmem>>, vector<32x128xbf16>,
    return
  }
  func.func @transform_0(%arg0: i32, %arg1: i32) -> (i32, i32) {
    %c0_i32 = arith.constant 0 : i32
    %c0_i32_0 = arith.constant 0 : i32
    return %arg0, %c0_i32 : i32, i32
  }
  func.func @transform_1(%arg0: i32, %arg1: i32) -> (i32, i32) {
    %c0_i32 = arith.constant 0 : i32
    %c0_i32_0 = arith.constant 0 : i32
    return %c0_i32, %arg1 : i32, i32
  }
  func.func @transform_2(%arg0: i32, %arg1: i32) -> (i32, i32) {
    %c0_i32 = arith.constant 0 : i32
    %c0_i32_0 = arith.constant 0 : i32
    return %c0_i32, %arg1 : i32, i32
  }
  func.func @transform_3(%arg0: i32, %arg1: i32) -> (i32, i32) {
    %c0_i32 = arith.constant 0 : i32
    return %arg0, %arg1 : i32, i32
  }
}

module attributes {stable_mosaic.version = 11 : i64} {
  func.func @_mm_bias_kernel(%arg0: i32, %arg1: i32, %arg2: memref<32x128xbf16, #tpu.memory_space<vmem>>, %arg3: memref<128x128xbf16, #tpu.memory_space<vmem>>, %arg4: memref<1x128xf32, #tpu.memory_space<vmem>>, %arg5: memref<32x128xbf16, #tpu.memory_space<vmem>>) attributes {dimension_semantics = [#tpu.dimension_semantics<parallel>, #tpu.dimension_semantics<parallel>], iteration_bounds = array<i64: 1, 1>, scalar_prefetch = 0 : i64, scratch_operands = 0 : i64, tpu.core_type = #tpu.core_type<tc>, window_params = [{transform_indices = @transform_0, window_bounds = array<i64: 32, 128>}, {transform_indices = @transform_1, window_bounds = array<i64: 128, 128>}, {transform_indices = @transform_2, window_bounds = array<i64: 1, 128>}, {transform_indices = @transform_3, window_bounds = array<i64: 32, 128>}]} {
    %c0 = arith.constant 0 : index
    %c0_0 = arith.constant 0 : index
    %0 = vector.load %arg2[%c0, %c0_0] : memref<32x128xbf16, #tpu.memory_space<vmem>>, vector<32x128xbf16>
    %c0_1 = arith.constant 0 : index
    %c0_2 = arith.constant 0 : index
    %1 = vector.load %arg3[%c0_1, %c0_2] : memref<128x128xbf16, #tpu.memory_space<vmem>>, vector<128x128xbf16>
    %cst = arith.constant dense<0.000000e+00> : vector<32x128xf32>
    %2 = tpu.matmul %0, %1, %cst {dimension_numbers = #tpu.dot_dimension_numbers<[1], [0], [0], [1], [0, 0, 1, 1], [], []>} : vector<32x128xbf16>, vector<128x128xbf16>, vector<32x128xf32> -> vector<32x128xf32>
    %c0_3 = arith.constant 0 : index
    %c0_4 = arith.constant 0 : index
    %3 = vector.load %arg4[%c0_3, %c0_4] : memref<1x128xf32, #tpu.memory_space<vmem>>, vector<1x128xf32>
    %4 = vector.broadcast %3 : vector<1x128xf32> to vector<32x128xf32>
    %5 = arith.addf %2, %4 : vector<32x128xf32>
    %cst_5 = arith.constant 0.000000e+00 : f32
    %6 = vector.broadcast %cst_5 : f32 to vector<32x128xf32>
    %7 = arith.maximumf %5, %6 : vector<32x128xf32>
    %8 = arith.truncf %7 : vector<32x128xf32> to vector<32x128xbf16>
    %c0_6 = arith.constant 0 : index
    %c0_7 = arith.constant 0 : index
    %9 = vector.load %arg5[%c0_6, %c0_7] : memref<32x128xbf16, #tpu.memory_space<vmem>>, vector<32x128xbf16>
    tpu.vector_store %arg5[%c0_6, %c0_7], %8 {strides = array<i32>} : memref<32x128xbf16, #tpu.memory_space<vmem>>, vector<32x128xbf16>,
    return
  }
  func.func @transform_0(%arg0: i32, %arg1: i32) -> (i32, i32) {
    %c0_i32 = arith.constant 0 : i32
    %c0_i32_0 = arith.constant 0 : i32
    return %arg0, %c0_i32 : i32, i32
  }
  func.func @transform_1(%arg0: i32, %arg1: i32) -> (i32, i32) {
    %c0_i32 = arith.constant 0 : i32
    %c0_i32_0 = arith.constant 0 : i32
    return %c0_i32, %arg1 : i32, i32
  }
  func.func @transform_2(%arg0: i32, %arg1: i32) -> (i32, i32) {
    %c0_i32 = arith.constant 0 : i32
    %c0_i32_0 = arith.constant 0 : i32
    return %c0_i32, %arg1 : i32, i32
  }
  func.func @transform_3(%arg0: i32, %arg1: i32) -> (i32, i32) {
    %c0_i32 = arith.constant 0 : i32
    return %arg0, %arg1 : i32, i32
  }
}

module attributes {stable_mosaic.version = 11 : i64} {
  func.func @_mm_bias_res_kernel(%arg0: i32, %arg1: i32, %arg2: memref<32x128xbf16, #tpu.memory_space<vmem>>, %arg3: memref<128x128xbf16, #tpu.memory_space<vmem>>, %arg4: memref<1x128xf32, #tpu.memory_space<vmem>>, %arg5: memref<32x128xbf16, #tpu.memory_space<vmem>>, %arg6: memref<32x128xbf16, #tpu.memory_space<vmem>>) attributes {dimension_semantics = [#tpu.dimension_semantics<parallel>, #tpu.dimension_semantics<parallel>], iteration_bounds = array<i64: 1, 1>, scalar_prefetch = 0 : i64, scratch_operands = 0 : i64, tpu.core_type = #tpu.core_type<tc>, window_params = [{transform_indices = @transform_0, window_bounds = array<i64: 32, 128>}, {transform_indices = @transform_1, window_bounds = array<i64: 128, 128>}, {transform_indices = @transform_2, window_bounds = array<i64: 1, 128>}, {transform_indices = @transform_3, window_bounds = array<i64: 32, 128>}, {transform_indices = @transform_4, window_bounds = array<i64: 32, 128>}]} {
    %c0 = arith.constant 0 : index
    %c0_0 = arith.constant 0 : index
    %0 = vector.load %arg2[%c0, %c0_0] : memref<32x128xbf16, #tpu.memory_space<vmem>>, vector<32x128xbf16>
    %c0_1 = arith.constant 0 : index
    %c0_2 = arith.constant 0 : index
    %1 = vector.load %arg3[%c0_1, %c0_2] : memref<128x128xbf16, #tpu.memory_space<vmem>>, vector<128x128xbf16>
    %cst = arith.constant dense<0.000000e+00> : vector<32x128xf32>
    %2 = tpu.matmul %0, %1, %cst {dimension_numbers = #tpu.dot_dimension_numbers<[1], [0], [0], [1], [0, 0, 1, 1], [], []>} : vector<32x128xbf16>, vector<128x128xbf16>, vector<32x128xf32> -> vector<32x128xf32>
    %c0_3 = arith.constant 0 : index
    %c0_4 = arith.constant 0 : index
    %3 = vector.load %arg4[%c0_3, %c0_4] : memref<1x128xf32, #tpu.memory_space<vmem>>, vector<1x128xf32>
    %4 = vector.broadcast %3 : vector<1x128xf32> to vector<32x128xf32>
    %5 = arith.addf %2, %4 : vector<32x128xf32>
    %c0_5 = arith.constant 0 : index
    %c0_6 = arith.constant 0 : index
    %6 = vector.load %arg5[%c0_5, %c0_6] : memref<32x128xbf16, #tpu.memory_space<vmem>>, vector<32x128xbf16>
    %7 = arith.extf %6 : vector<32x128xbf16> to vector<32x128xf32>
    %8 = arith.addf %5, %7 : vector<32x128xf32>
    %cst_7 = arith.constant 0.000000e+00 : f32
    %9 = vector.broadcast %cst_7 : f32 to vector<32x128xf32>
    %10 = arith.maximumf %8, %9 : vector<32x128xf32>
    %11 = arith.truncf %10 : vector<32x128xf32> to vector<32x128xbf16>
    %c0_8 = arith.constant 0 : index
    %c0_9 = arith.constant 0 : index
    %12 = vector.load %arg6[%c0_8, %c0_9] : memref<32x128xbf16, #tpu.memory_space<vmem>>, vector<32x128xbf16>
    tpu.vector_store %arg6[%c0_8, %c0_9], %11 {strides = array<i32>} : memref<32x128xbf16, #tpu.memory_space<vmem>>, vector<32x128xbf16>,
    return
  }
  func.func @transform_0(%arg0: i32, %arg1: i32) -> (i32, i32) {
    %c0_i32 = arith.constant 0 : i32
    %c0_i32_0 = arith.constant 0 : i32
    return %arg0, %c0_i32 : i32, i32
  }
  func.func @transform_1(%arg0: i32, %arg1: i32) -> (i32, i32) {
    %c0_i32 = arith.constant 0 : i32
    %c0_i32_0 = arith.constant 0 : i32
    return %c0_i32, %arg1 : i32, i32
  }
  func.func @transform_2(%arg0: i32, %arg1: i32) -> (i32, i32) {
    %c0_i32 = arith.constant 0 : i32
    %c0_i32_0 = arith.constant 0 : i32
    return %c0_i32, %arg1 : i32, i32
  }
  func.func @transform_3(%arg0: i32, %arg1: i32) -> (i32, i32) {
    %c0_i32 = arith.constant 0 : i32
    return %arg0, %arg1 : i32, i32
  }
  func.func @transform_4(%arg0: i32, %arg1: i32) -> (i32, i32) {
    %c0_i32 = arith.constant 0 : i32
    return %arg0, %arg1 : i32, i32
  }
}

module attributes {stable_mosaic.version = 11 : i64} {
  func.func @_tap_conv_kernel(%arg0: i32, %arg1: i32, %arg2: memref<1x6x6x128xbf16, #tpu.memory_space<vmem>>, %arg3: memref<9x128x128xbf16, #tpu.memory_space<vmem>>, %arg4: memref<1x128xf32, #tpu.memory_space<vmem>>, %arg5: memref<1x4x4x128xbf16, #tpu.memory_space<vmem>>) attributes {dimension_semantics = [#tpu.dimension_semantics<parallel>, #tpu.dimension_semantics<parallel>], iteration_bounds = array<i64: 2, 1>, scalar_prefetch = 0 : i64, scratch_operands = 0 : i64, tpu.core_type = #tpu.core_type<tc>, window_params = [{transform_indices = @transform_0, window_bounds = array<i64: 1, 6, 6, 128>}, {transform_indices = @transform_1, window_bounds = array<i64: 9, 128, 128>}, {transform_indices = @transform_2, window_bounds = array<i64: 1, 128>}, {transform_indices = @transform_3, window_bounds = array<i64: 1, 4, 4, 128>}]} {
    %c0_i32 = arith.constant 0 : i32
    %c4_i32 = arith.constant 4 : i32
    %0 = arith.addi %c0_i32, %c4_i32 : i32
    %c1_i32 = arith.constant 1 : i32
    scf.for %arg6 = %c0_i32 to %0 step %c1_i32  : i32 {
      %cst = arith.constant 0.000000e+00 : f32
      %1 = vector.broadcast %cst : f32 to vector<4x128xf32>
      %c0_i32_1 = arith.constant 0 : i32
      %2 = arith.addi %c0_i32_1, %arg6 : i32
      %c0_i32_2 = arith.constant 0 : i32
      %3 = arith.addi %2, %c0_i32_2 : i32
      %c0 = arith.constant 0 : index
      %4 = arith.index_cast %3 : i32 to index
      %c0_3 = arith.constant 0 : index
      %c0_4 = arith.constant 0 : index
      %5 = vector.load %arg2[%c0, %4, %c0_3, %c0_4] : memref<1x6x6x128xbf16, #tpu.memory_space<vmem>>, vector<1x1x6x128xbf16>
      %6 = vector.shape_cast %5 : vector<1x1x6x128xbf16> to vector<6x128xbf16>
      %7 = vector.extract_strided_slice %6 {offsets = [0, 0], sizes = [4, 128], strides = [1, 1]} : vector<6x128xbf16> to vector<4x128xbf16>
      %c0_5 = arith.constant 0 : index
      %c0_6 = arith.constant 0 : index
      %c0_7 = arith.constant 0 : index
      %8 = vector.load %arg3[%c0_5, %c0_6, %c0_7] : memref<9x128x128xbf16, #tpu.memory_space<vmem>>, vector<1x128x128xbf16>
      %9 = vector.shape_cast %8 : vector<1x128x128xbf16> to vector<128x128xbf16>
      %cst_8 = arith.constant dense<0.000000e+00> : vector<4x128xf32>
      %10 = tpu.matmul %7, %9, %cst_8 {dimension_numbers = #tpu.dot_dimension_numbers<[1], [0], [0], [1], [0, 0, 1, 1], [], []>} : vector<4x128xbf16>, vector<128x128xbf16>, vector<4x128xf32> -> vector<4x128xf32>
      %11 = arith.addf %1, %10 : vector<4x128xf32>
      %c0_i32_9 = arith.constant 0 : i32
      %12 = arith.addi %c0_i32_9, %arg6 : i32
      %c0_i32_10 = arith.constant 0 : i32
      %13 = arith.addi %12, %c0_i32_10 : i32
      %c0_11 = arith.constant 0 : index
      %14 = arith.index_cast %13 : i32 to index
      %c0_12 = arith.constant 0 : index
      %c0_13 = arith.constant 0 : index
      %15 = vector.load %arg2[%c0_11, %14, %c0_12, %c0_13] : memref<1x6x6x128xbf16, #tpu.memory_space<vmem>>, vector<1x1x6x128xbf16>
      %16 = vector.shape_cast %15 : vector<1x1x6x128xbf16> to vector<6x128xbf16>
      %17 = vector.extract_strided_slice %16 {offsets = [1, 0], sizes = [4, 128], strides = [1, 1]} : vector<6x128xbf16> to vector<4x128xbf16>
      %c1 = arith.constant 1 : index
      %c0_14 = arith.constant 0 : index
      %c0_15 = arith.constant 0 : index
      %18 = vector.load %arg3[%c1, %c0_14, %c0_15] : memref<9x128x128xbf16, #tpu.memory_space<vmem>>, vector<1x128x128xbf16>
      %19 = vector.shape_cast %18 : vector<1x128x128xbf16> to vector<128x128xbf16>
      %cst_16 = arith.constant dense<0.000000e+00> : vector<4x128xf32>
      %20 = tpu.matmul %17, %19, %cst_16 {dimension_numbers = #tpu.dot_dimension_numbers<[1], [0], [0], [1], [0, 0, 1, 1], [], []>} : vector<4x128xbf16>, vector<128x128xbf16>, vector<4x128xf32> -> vector<4x128xf32>
      %21 = arith.addf %11, %20 : vector<4x128xf32>
      %c0_i32_17 = arith.constant 0 : i32
      %22 = arith.addi %c0_i32_17, %arg6 : i32
      %c0_i32_18 = arith.constant 0 : i32
      %23 = arith.addi %22, %c0_i32_18 : i32
      %c0_19 = arith.constant 0 : index
      %24 = arith.index_cast %23 : i32 to index
      %c0_20 = arith.constant 0 : index
      %c0_21 = arith.constant 0 : index
      %25 = vector.load %arg2[%c0_19, %24, %c0_20, %c0_21] : memref<1x6x6x128xbf16, #tpu.memory_space<vmem>>, vector<1x1x6x128xbf16>
      %26 = vector.shape_cast %25 : vector<1x1x6x128xbf16> to vector<6x128xbf16>
      %27 = vector.extract_strided_slice %26 {offsets = [2, 0], sizes = [4, 128], strides = [1, 1]} : vector<6x128xbf16> to vector<4x128xbf16>
      %c2 = arith.constant 2 : index
      %c0_22 = arith.constant 0 : index
      %c0_23 = arith.constant 0 : index
      %28 = vector.load %arg3[%c2, %c0_22, %c0_23] : memref<9x128x128xbf16, #tpu.memory_space<vmem>>, vector<1x128x128xbf16>
      %29 = vector.shape_cast %28 : vector<1x128x128xbf16> to vector<128x128xbf16>
      %cst_24 = arith.constant dense<0.000000e+00> : vector<4x128xf32>
      %30 = tpu.matmul %27, %29, %cst_24 {dimension_numbers = #tpu.dot_dimension_numbers<[1], [0], [0], [1], [0, 0, 1, 1], [], []>} : vector<4x128xbf16>, vector<128x128xbf16>, vector<4x128xf32> -> vector<4x128xf32>
      %31 = arith.addf %21, %30 : vector<4x128xf32>
      %c0_i32_25 = arith.constant 0 : i32
      %32 = arith.addi %c0_i32_25, %arg6 : i32
      %c1_i32_26 = arith.constant 1 : i32
      %33 = arith.addi %32, %c1_i32_26 : i32
      %c0_27 = arith.constant 0 : index
      %34 = arith.index_cast %33 : i32 to index
      %c0_28 = arith.constant 0 : index
      %c0_29 = arith.constant 0 : index
      %35 = vector.load %arg2[%c0_27, %34, %c0_28, %c0_29] : memref<1x6x6x128xbf16, #tpu.memory_space<vmem>>, vector<1x1x6x128xbf16>
      %36 = vector.shape_cast %35 : vector<1x1x6x128xbf16> to vector<6x128xbf16>
      %37 = vector.extract_strided_slice %36 {offsets = [0, 0], sizes = [4, 128], strides = [1, 1]} : vector<6x128xbf16> to vector<4x128xbf16>
      %c3 = arith.constant 3 : index
      %c0_30 = arith.constant 0 : index
      %c0_31 = arith.constant 0 : index
      %38 = vector.load %arg3[%c3, %c0_30, %c0_31] : memref<9x128x128xbf16, #tpu.memory_space<vmem>>, vector<1x128x128xbf16>
      %39 = vector.shape_cast %38 : vector<1x128x128xbf16> to vector<128x128xbf16>
      %cst_32 = arith.constant dense<0.000000e+00> : vector<4x128xf32>
      %40 = tpu.matmul %37, %39, %cst_32 {dimension_numbers = #tpu.dot_dimension_numbers<[1], [0], [0], [1], [0, 0, 1, 1], [], []>} : vector<4x128xbf16>, vector<128x128xbf16>, vector<4x128xf32> -> vector<4x128xf32>
      %41 = arith.addf %31, %40 : vector<4x128xf32>
      %c0_i32_33 = arith.constant 0 : i32
      %42 = arith.addi %c0_i32_33, %arg6 : i32
      %c1_i32_34 = arith.constant 1 : i32
      %43 = arith.addi %42, %c1_i32_34 : i32
      %c0_35 = arith.constant 0 : index
      %44 = arith.index_cast %43 : i32 to index
      %c0_36 = arith.constant 0 : index
      %c0_37 = arith.constant 0 : index
      %45 = vector.load %arg2[%c0_35, %44, %c0_36, %c0_37] : memref<1x6x6x128xbf16, #tpu.memory_space<vmem>>, vector<1x1x6x128xbf16>
      %46 = vector.shape_cast %45 : vector<1x1x6x128xbf16> to vector<6x128xbf16>
      %47 = vector.extract_strided_slice %46 {offsets = [1, 0], sizes = [4, 128], strides = [1, 1]} : vector<6x128xbf16> to vector<4x128xbf16>
      %c4 = arith.constant 4 : index
      %c0_38 = arith.constant 0 : index
      %c0_39 = arith.constant 0 : index
      %48 = vector.load %arg3[%c4, %c0_38, %c0_39] : memref<9x128x128xbf16, #tpu.memory_space<vmem>>, vector<1x128x128xbf16>
      %49 = vector.shape_cast %48 : vector<1x128x128xbf16> to vector<128x128xbf16>
      %cst_40 = arith.constant dense<0.000000e+00> : vector<4x128xf32>
      %50 = tpu.matmul %47, %49, %cst_40 {dimension_numbers = #tpu.dot_dimension_numbers<[1], [0], [0], [1], [0, 0, 1, 1], [], []>} : vector<4x128xbf16>, vector<128x128xbf16>, vector<4x128xf32> -> vector<4x128xf32>
      %51 = arith.addf %41, %50 : vector<4x128xf32>
      %c0_i32_41 = arith.constant 0 : i32
      %52 = arith.addi %c0_i32_41, %arg6 : i32
      %c1_i32_42 = arith.constant 1 : i32
      %53 = arith.addi %52, %c1_i32_42 : i32
      %c0_43 = arith.constant 0 : index
      %54 = arith.index_cast %53 : i32 to index
      %c0_44 = arith.constant 0 : index
      %c0_45 = arith.constant 0 : index
      %55 = vector.load %arg2[%c0_43, %54, %c0_44, %c0_45] : memref<1x6x6x128xbf16, #tpu.memory_space<vmem>>, vector<1x1x6x128xbf16>
      %56 = vector.shape_cast %55 : vector<1x1x6x128xbf16> to vector<6x128xbf16>
      %57 = vector.extract_strided_slice %56 {offsets = [2, 0], sizes = [4, 128], strides = [1, 1]} : vector<6x128xbf16> to vector<4x128xbf16>
      %c5 = arith.constant 5 : index
      %c0_46 = arith.constant 0 : index
      %c0_47 = arith.constant 0 : index
      %58 = vector.load %arg3[%c5, %c0_46, %c0_47] : memref<9x128x128xbf16, #tpu.memory_space<vmem>>, vector<1x128x128xbf16>
      %59 = vector.shape_cast %58 : vector<1x128x128xbf16> to vector<128x128xbf16>
      %cst_48 = arith.constant dense<0.000000e+00> : vector<4x128xf32>
      %60 = tpu.matmul %57, %59, %cst_48 {dimension_numbers = #tpu.dot_dimension_numbers<[1], [0], [0], [1], [0, 0, 1, 1], [], []>} : vector<4x128xbf16>, vector<128x128xbf16>, vector<4x128xf32> -> vector<4x128xf32>
      %61 = arith.addf %51, %60 : vector<4x128xf32>
      %c0_i32_49 = arith.constant 0 : i32
      %62 = arith.addi %c0_i32_49, %arg6 : i32
      %c2_i32 = arith.constant 2 : i32
      %63 = arith.addi %62, %c2_i32 : i32
      %c0_50 = arith.constant 0 : index
      %64 = arith.index_cast %63 : i32 to index
      %c0_51 = arith.constant 0 : index
      %c0_52 = arith.constant 0 : index
      %65 = vector.load %arg2[%c0_50, %64, %c0_51, %c0_52] : memref<1x6x6x128xbf16, #tpu.memory_space<vmem>>, vector<1x1x6x128xbf16>
      %66 = vector.shape_cast %65 : vector<1x1x6x128xbf16> to vector<6x128xbf16>
      %67 = vector.extract_strided_slice %66 {offsets = [0, 0], sizes = [4, 128], strides = [1, 1]} : vector<6x128xbf16> to vector<4x128xbf16>
      %c6 = arith.constant 6 : index
      %c0_53 = arith.constant 0 : index
      %c0_54 = arith.constant 0 : index
      %68 = vector.load %arg3[%c6, %c0_53, %c0_54] : memref<9x128x128xbf16, #tpu.memory_space<vmem>>, vector<1x128x128xbf16>
      %69 = vector.shape_cast %68 : vector<1x128x128xbf16> to vector<128x128xbf16>
      %cst_55 = arith.constant dense<0.000000e+00> : vector<4x128xf32>
      %70 = tpu.matmul %67, %69, %cst_55 {dimension_numbers = #tpu.dot_dimension_numbers<[1], [0], [0], [1], [0, 0, 1, 1], [], []>} : vector<4x128xbf16>, vector<128x128xbf16>, vector<4x128xf32> -> vector<4x128xf32>
      %71 = arith.addf %61, %70 : vector<4x128xf32>
      %c0_i32_56 = arith.constant 0 : i32
      %72 = arith.addi %c0_i32_56, %arg6 : i32
      %c2_i32_57 = arith.constant 2 : i32
      %73 = arith.addi %72, %c2_i32_57 : i32
      %c0_58 = arith.constant 0 : index
      %74 = arith.index_cast %73 : i32 to index
      %c0_59 = arith.constant 0 : index
      %c0_60 = arith.constant 0 : index
      %75 = vector.load %arg2[%c0_58, %74, %c0_59, %c0_60] : memref<1x6x6x128xbf16, #tpu.memory_space<vmem>>, vector<1x1x6x128xbf16>
      %76 = vector.shape_cast %75 : vector<1x1x6x128xbf16> to vector<6x128xbf16>
      %77 = vector.extract_strided_slice %76 {offsets = [1, 0], sizes = [4, 128], strides = [1, 1]} : vector<6x128xbf16> to vector<4x128xbf16>
      %c7 = arith.constant 7 : index
      %c0_61 = arith.constant 0 : index
      %c0_62 = arith.constant 0 : index
      %78 = vector.load %arg3[%c7, %c0_61, %c0_62] : memref<9x128x128xbf16, #tpu.memory_space<vmem>>, vector<1x128x128xbf16>
      %79 = vector.shape_cast %78 : vector<1x128x128xbf16> to vector<128x128xbf16>
      %cst_63 = arith.constant dense<0.000000e+00> : vector<4x128xf32>
      %80 = tpu.matmul %77, %79, %cst_63 {dimension_numbers = #tpu.dot_dimension_numbers<[1], [0], [0], [1], [0, 0, 1, 1], [], []>} : vector<4x128xbf16>, vector<128x128xbf16>, vector<4x128xf32> -> vector<4x128xf32>
      %81 = arith.addf %71, %80 : vector<4x128xf32>
      %c0_i32_64 = arith.constant 0 : i32
      %82 = arith.addi %c0_i32_64, %arg6 : i32
      %c2_i32_65 = arith.constant 2 : i32
      %83 = arith.addi %82, %c2_i32_65 : i32
      %c0_66 = arith.constant 0 : index
      %84 = arith.index_cast %83 : i32 to index
      %c0_67 = arith.constant 0 : index
      %c0_68 = arith.constant 0 : index
      %85 = vector.load %arg2[%c0_66, %84, %c0_67, %c0_68] : memref<1x6x6x128xbf16, #tpu.memory_space<vmem>>, vector<1x1x6x128xbf16>
      %86 = vector.shape_cast %85 : vector<1x1x6x128xbf16> to vector<6x128xbf16>
      %87 = vector.extract_strided_slice %86 {offsets = [2, 0], sizes = [4, 128], strides = [1, 1]} : vector<6x128xbf16> to vector<4x128xbf16>
      %c8 = arith.constant 8 : index
      %c0_69 = arith.constant 0 : index
      %c0_70 = arith.constant 0 : index
      %88 = vector.load %arg3[%c8, %c0_69, %c0_70] : memref<9x128x128xbf16, #tpu.memory_space<vmem>>, vector<1x128x128xbf16>
      %89 = vector.shape_cast %88 : vector<1x128x128xbf16> to vector<128x128xbf16>
      %cst_71 = arith.constant dense<0.000000e+00> : vector<4x128xf32>
      %90 = tpu.matmul %87, %89, %cst_71 {dimension_numbers = #tpu.dot_dimension_numbers<[1], [0], [0], [1], [0, 0, 1, 1], [], []>} : vector<4x128xbf16>, vector<128x128xbf16>, vector<4x128xf32> -> vector<4x128xf32>
      %91 = arith.addf %81, %90 : vector<4x128xf32>
      %c0_72 = arith.constant 0 : index
      %c0_73 = arith.constant 0 : index
      %92 = vector.load %arg4[%c0_72, %c0_73] : memref<1x128xf32, #tpu.memory_space<vmem>>, vector<1x128xf32>
      %93 = vector.broadcast %92 : vector<1x128xf32> to vector<4x128xf32>
      %94 = arith.addf %91, %93 : vector<4x128xf32>
      %cst_74 = arith.constant 0.000000e+00 : f32
      %95 = vector.broadcast %cst_74 : f32 to vector<4x128xf32>
      %96 = arith.maximumf %94, %95 : vector<4x128xf32>
      %97 = arith.truncf %96 : vector<4x128xf32> to vector<4x128xbf16>
      %c0_75 = arith.constant 0 : index
      %98 = arith.index_cast %arg6 : i32 to index
      %c0_76 = arith.constant 0 : index
      %c0_77 = arith.constant 0 : index
      %99 = vector.load %arg5[%c0_75, %98, %c0_76, %c0_77] : memref<1x4x4x128xbf16, #tpu.memory_space<vmem>>, vector<1x1x4x128xbf16>
      %100 = vector.shape_cast %99 : vector<1x1x4x128xbf16> to vector<4x128xbf16>
      %101 = vector.shape_cast %97 : vector<4x128xbf16> to vector<1x1x4x128xbf16>
      tpu.vector_store %arg5[%c0_75, %98, %c0_76, %c0_77], %101 {strides = array<i32>} : memref<1x4x4x128xbf16, #tpu.memory_space<vmem>>, vector<1x1x4x128xbf16>,
    }
    %c4_i32_0 = arith.constant 4 : i32
    return
  }
  func.func @transform_0(%arg0: i32, %arg1: i32) -> (i32, i32, i32, i32) {
    %c0_i32 = arith.constant 0 : i32
    %c0_i32_0 = arith.constant 0 : i32
    %c0_i32_1 = arith.constant 0 : i32
    %c0_i32_2 = arith.constant 0 : i32
    return %arg0, %c0_i32, %c0_i32_0, %c0_i32_1 : i32, i32, i32, i32
  }
  func.func @transform_1(%arg0: i32, %arg1: i32) -> (i32, i32, i32) {
    %c0_i32 = arith.constant 0 : i32
    %c0_i32_0 = arith.constant 0 : i32
    %c0_i32_1 = arith.constant 0 : i32
    return %c0_i32, %c0_i32_0, %arg1 : i32, i32, i32
  }
  func.func @transform_2(%arg0: i32, %arg1: i32) -> (i32, i32) {
    %c0_i32 = arith.constant 0 : i32
    %c0_i32_0 = arith.constant 0 : i32
    return %c0_i32, %arg1 : i32, i32
  }
  func.func @transform_3(%arg0: i32, %arg1: i32) -> (i32, i32, i32, i32) {
    %c0_i32 = arith.constant 0 : i32
    %c0_i32_0 = arith.constant 0 : i32
    %c0_i32_1 = arith.constant 0 : i32
    return %arg0, %c0_i32, %c0_i32_0, %arg1 : i32, i32, i32, i32
  }
}

</mosaic_0001>

<bundles_post_ra>
// kernel: _lambda_.17
= control target key start
LH: loop header
LB: loop body
LE: loop exit
PB: predicated region body
PF: predicated region fallthrough
CT: control target
= control target key end

     0   :  { %s358_s6 = smov 0   ;;  %s394_s0 = inlined_call_operand.vmem [shape: bf16[2,36,9,128], index: 0, kind: input, shape index: {}]   ;;  %s395_s1 = inlined_call_operand.vmem [shape: bf16[2,8,8,128], index: 1, kind: output, shape index: {}]  }
   0x1 LB: > { %s288_s7 = sadd.s32 4294967295, %s342_s6   ;;  %p292_p0 = scmp.ge.s32.totalorder %s342_s6, 1  ;;  %s342_s6 = sphi %s358_s6, %s11_s6  }
   0x2   : > { %p87_p1 = scmp.lt.s32.totalorder %s342_s6, 3 }
   0x4   : > { %p88_p2 = pnand %p292_p0, %p87_p1 }
   0x5   : > { %p107_p3 = scmp.lt.s32.totalorder (!%p88_p2), %s288_s7, 1  ;;  %s376_s16 = smov (!%p88_p2), 0  }
   0x6   : > { %91 = sbr.rel (%p88_p2) target bundleno = 40 (0x28), region = 24 }
   0xb   : > { %s397_s7 = smov (!%p107_p3, %s288_s7), 1 }
   0xc   : > { %s315_s8 = smul.u32 288, %s397_s7  ;;  %s313_s9 = sshll.u32 %s397_s7, 5 }
   0xd   : > { %s369_s12 = scalar_lea.vmem %s395_s1, %s313_s9 }
   0xe   : > { %s374_s15 = scalar_lea.vmem %s394_s0, %s315_s8 }
   0xf LB: >> { %s314_s17 = sshll.u32 %s346_s16, 3  ;;  %vm141_vm0 = vcmask 1046528   ;;  %s310_s19 = sshll.u32 %s346_s16, 2  ;;  %s346_s16 = sphi %s376_s16, %s122_s16  }
  0x10   : >> { %s125_s18 = scalar_lea.vmem %s374_s15, %s314_s17  ;;  %s207_s20 = scalar_lea.vmem %s369_s12, %s310_s19 }
  0x11   : >> { %v126_v0 = vld [vmem:[%s125_s18] sm:$0xf]  ;;  %v127_v1 = vld [vmem:[%s125_s18 + $0x4] sm:$0x1]  ;;  %v299_v2 = vld [vmem:[%s125_s18 + $0x48] sm:$0xf] }
  0x12   : >> { %v133_v3 = vunpack.c.l.bf16 %v126_v0  ;;  %v134_v4 = vunpack.c.l.bf16 %v299_v2  ;;  %v138_v5 = vunpack.c.l.bf16 %v127_v1  ;;  %v301_v6 = vld [vmem:[%s125_s18 + $0x90] sm:$0xf]  ;;  %v302_v7 = vld [vmem:[%s125_s18 + $0x94] sm:$0x1]  ;;  %v304_v13 = vld [vmem:[%s125_s18 + $0xd8] sm:$0xf] }
  0x13   : >> { %v155_v8 = vunpack.c.l.bf16 %v301_v6  ;;  %v168_v9 = vunpack.c.l.bf16 %v302_v7  ;;  %v306_v14 = vld [vmem:[%s125_s18 + $0x8] sm:$0xf]  ;;  %v307_v15 = vld [vmem:[%s125_s18 + $0xc] sm:$0x1]  ;;  %v164_v20 = vunpack.c.l.bf16 %v304_v13  ;;  %v309_v25 = vld [vmem:[%s125_s18 + $0x50] sm:$0xf] }
  0x14   : >> { %v135_v10 = vmax.f32 %v133_v3, %v134_v4  ;;  %v142_v11 = vrot.slane %v133_v3, 1  ;;  %v143_v12 = vrot.slane %v138_v5, 1  ;;  %v184_v21 = vunpack.c.l.bf16 %v306_v14  ;;  %s122_s16 = sadd.s32 1, %s346_s16  }
  0x15   : >> { %v171_v17 = vrot.slane %v155_v8, 1  ;;  %v172_v18 = vrot.slane %v168_v9, 1  ;;  %v197_v22 = vunpack.c.l.bf16 %v307_v15  ;;  %v193_v30 = vunpack.c.l.bf16 %v309_v25  ;;  %p119_p4 = scmp.ge.s32.totalorder %s122_s16, 8  }
  0x16   : >> { %v144_v16 = vsel %vm141_vm0, %v142_v11, %v143_v12  ;;  %v200_v27 = vrot.slane %v184_v21, 1 }
  0x17   : >> { %v146_v19 = vmax.f32 %v135_v10, %v144_v16  ;;  %v173_v24 = vsel %vm141_vm0, %v171_v17, %v172_v18  ;;  %v201_v28 = vrot.slane %v197_v22, 1 }
  0x19   : >> { %v156_v23 = vmax.f32 %v146_v19, %v155_v8  ;;  %v202_v32 = vsel %vm141_vm0, %v200_v27, %v201_v28 }
  0x1b   : >> { %v165_v26 = vmax.f32 %v156_v23, %v164_v20 }
  0x1d   : >> { %v175_v29 = vmax.f32 %v165_v26, %v173_v24 }
  0x1f   : >> { %v185_v31 = vmax.f32 %v175_v29, %v184_v21 }
  0x21   : >> { %v194_v33 = vmax.f32 %v185_v31, %v193_v30 }
  0x23   : >> { %v204_v34 = vmax.f32 %v194_v33, %v202_v32  ;;  %121 = sbr.rel (!%p119_p4) target bundleno = 15 (0xf), region = 68 }
  0x25   : >> { %v205_v35 = vpack.c.bf16 %v204_v34, %v204_v34 }
  0x27   : >> { %208 = vst [vmem:[%s207_s20] sm:$0xf] %v205_v35 }
  0x28 PF: > { %s11_s6 = sadd.s32 1, %s342_s6  }
  0x29   : > { %p8_p5 = scmp.ge.s32.totalorder %s11_s6, 4  }
  0x2b   :  { %10 = sbr.rel (!%p8_p5) target bundleno = 1 (0x1), region = 79 }

// kernel: _lambda_.18
= control target key start
LH: loop header
LB: loop body
LE: loop exit
PB: predicated region body
PF: predicated region fallthrough
CT: control target
= control target key end

     0   :  { %s478_s1 = inlined_call_operand.vmem [shape: bf16[128,128], index: 1, kind: input, shape index: {}]   ;;  %s479_s2 = inlined_call_operand.vmem [shape: f32[1,128], index: 2, kind: input, shape index: {}]   ;;  %s480_s0 = inlined_call_operand.vmem [shape: bf16[128,128], index: 0, kind: input, shape index: {}]   ;;  %s481_s3 = inlined_call_operand.vmem [shape: bf16[128,128], index: 3, kind: output, shape index: {}]  }
   0x1   :  { %v310_v0 = vld [vmem:[%s478_s1 + $0x38] sm:$0xff]  ;;  %v309_v1 = vld [vmem:[%s478_s1 + $0x30] sm:$0xff]  ;;  %v308_v2 = vld [vmem:[%s478_s1 + $0x28] sm:$0xff] }
   0x2   :  { %146 = vmatpush.bf16.msra.mxu0 %v310_v0  ;;  %358 = vmatpush.bf16.msra.mxu1 %v310_v0  ;;  %v307_v3 = vld [vmem:[%s478_s1 + $0x20] sm:$0xff]  ;;  %v306_v4 = vld [vmem:[%s478_s1 + $0x18] sm:$0xff]  ;;  %v305_v5 = vld [vmem:[%s478_s1 + $0x10] sm:$0xff] }
   0x3   :  { %359 = vmatpush.bf16.msra.mxu2 %v310_v0  ;;  %360 = vmatpush.bf16.msra.mxu3 %v310_v0  ;;  %v304_v6 = vld [vmem:[%s478_s1 + $0x8] sm:$0xff]  ;;  %v303_v7 = vld [vmem:[%s478_s1] sm:$0xff]  ;;  %v297_v9 = vld [vmem:[%s480_s0 + $0x10] sm:$0xff] }
   0x4   :  { %v295_v8 = vld [vmem:[%s480_s0] sm:$0xff]  ;;  %v301_v11 = vld [vmem:[%s480_s0 + $0x30] sm:$0xff]  ;;  %v296_v12 = vld [vmem:[%s480_s0 + $0x8] sm:$0xff] }
   0x5   :  { %v299_v10 = vld [vmem:[%s480_s0 + $0x20] sm:$0xff]  ;;  %v298_v13 = vld [vmem:[%s480_s0 + $0x18] sm:$0xff]  ;;  %v300_v14 = vld [vmem:[%s480_s0 + $0x28] sm:$0xff] }
   0x6   :  { %147 = vmatpush.bf16.msra.mxu0 %v309_v1  ;;  %361 = vmatpush.bf16.msra.mxu1 %v309_v1  ;;  %v302_v15 = vld [vmem:[%s480_s0 + $0x38] sm:$0xff]  ;;  %v382_v18 = vld [vmem:[%s479_s2] ss:$0 sm:$0xff] }
   0x7   :  { %362 = vmatpush.bf16.msra.mxu2 %v309_v1  ;;  %363 = vmatpush.bf16.msra.mxu3 %v309_v1 }
   0xa   :  { %148 = vmatpush.bf16.msra.mxu0 %v308_v2  ;;  %364 = vmatpush.bf16.msra.mxu1 %v308_v2 }
   0xb   :  { %365 = vmatpush.bf16.msra.mxu2 %v308_v2  ;;  %366 = vmatpush.bf16.msra.mxu3 %v308_v2 }
   0xe   :  { %149 = vmatpush.bf16.msra.mxu0 %v307_v3  ;;  %367 = vmatpush.bf16.msra.mxu1 %v307_v3 }
   0xf   :  { %368 = vmatpush.bf16.msra.mxu2 %v307_v3  ;;  %369 = vmatpush.bf16.msra.mxu3 %v307_v3 }
  0x12   :  { %150 = vmatpush.bf16.msra.mxu0 %v306_v4  ;;  %370 = vmatpush.bf16.msra.mxu1 %v306_v4 }
  0x13   :  { %371 = vmatpush.bf16.msra.mxu2 %v306_v4  ;;  %372 = vmatpush.bf16.msra.mxu3 %v306_v4 }
  0x16   :  { %151 = vmatpush.bf16.msra.mxu0 %v305_v5  ;;  %373 = vmatpush.bf16.msra.mxu1 %v305_v5 }
  0x17   :  { %374 = vmatpush.bf16.msra.mxu2 %v305_v5  ;;  %375 = vmatpush.bf16.msra.mxu3 %v305_v5 }
  0x1a   :  { %152 = vmatpush.bf16.msra.mxu0 %v304_v6  ;;  %376 = vmatpush.bf16.msra.mxu1 %v304_v6 }
  0x1b   :  { %377 = vmatpush.bf16.msra.mxu2 %v304_v6  ;;  %378 = vmatpush.bf16.msra.mxu3 %v304_v6 }
  0x1e   :  { %153 = vmatpush.bf16.msra.mxu0 %v303_v7  ;;  %379 = vmatpush.bf16.msra.mxu1 %v303_v7 }
  0x1f   :  { %380 = vmatpush.bf16.msra.mxu2 %v303_v7  ;;  %381 = vmatpush.bf16.msra.mxu3 %v303_v7 }
  0x21   :  { %154 = vmatmul.bf16.vlgmr.msra.gmra.mxu0 %v295_v8  ;;  %164 = vmatmul.bf16.vlgmr.msra.gmra.mxu1 %v297_v9 }
  0x22   :  { %174 = vmatmul.bf16.vlgmr.msra.gmra.mxu2 %v299_v10  ;;  %184 = vmatmul.bf16.vlgmr.msra.gmra.mxu3 %v301_v11 }
  0x31   :  { %159 = vmatmul.bf16.gmra.mxu0 %v296_v12  ;;  %169 = vmatmul.bf16.gmra.mxu1 %v298_v13 }
  0x32   :  { %179 = vmatmul.bf16.gmra.mxu2 %v300_v14  ;;  %189 = vmatmul.bf16.gmra.mxu3 %v302_v15 }
  0x9e   :  { %v155_v16 = vpop.f32.mrf.mxu0  ;;  %v165_v17 = vpop.f32.mrf.mxu1 }
  0x9f   :  { %v156_v23 = vadd.f32 %v382_v18, %v155_v16  ;;  %v166_v24 = vadd.f32 %v382_v18, %v165_v17 }
  0xa5   :  { %v175_v19 = vpop.f32.mrf.mxu2  ;;  %v185_v20 = vpop.f32.mrf.mxu3 }
  0xa6   :  { %v157_v21 = vpop.f32.mrf.mxu0  ;;  %v167_v22 = vpop.f32.mrf.mxu1  ;;  %v176_v31 = vadd.f32 %v382_v18, %v175_v19  ;;  %v186_v32 = vadd.f32 %v382_v18, %v185_v20 }
  0xa7   :  { %v158_v25 = vadd.f32 %v382_v18, %v157_v21  ;;  %v168_v26 = vadd.f32 %v382_v18, %v167_v22 }
  0xa9   :  { %v314_v27 = vpack.c.bf16 %v158_v25, %v156_v23  ;;  %v324_v28 = vpack.c.bf16 %v168_v26, %v166_v24 }
  0xab   :  { %315 = vst [vmem:[%s481_s3] sm:$0xff] %v314_v27  }
  0xac   :  { %352 = vst [vmem:[%s481_s3 + $0x10] sm:$0xff] %v324_v28  }
  0xad   :  { %v177_v29 = vpop.f32.mrf.mxu2  ;;  %v187_v30 = vpop.f32.mrf.mxu3 }
  0xae   :  { %v178_v33 = vadd.f32 %v382_v18, %v177_v29  ;;  %v188_v34 = vadd.f32 %v382_v18, %v187_v30  ;;  %v160_v35 = vpop.f32.mrf.mxu0  ;;  %v170_v36 = vpop.f32.mrf.mxu1 }
  0xaf   :  { %v161_v43 = vadd.f32 %v382_v18, %v160_v35  ;;  %v171_v44 = vadd.f32 %v382_v18, %v170_v36 }
  0xb0   :  { %v334_v37 = vpack.c.bf16 %v178_v33, %v176_v31  ;;  %v344_v38 = vpack.c.bf16 %v188_v34, %v186_v32 }
  0xb2   :  { %354 = vst [vmem:[%s481_s3 + $0x20] sm:$0xff] %v334_v37  }
  0xb3   :  { %356 = vst [vmem:[%s481_s3 + $0x30] sm:$0xff] %v344_v38  }
  0xb5   :  { %v180_v39 = vpop.f32.mrf.mxu2  ;;  %v190_v40 = vpop.f32.mrf.mxu3 }
  0xb6   :  { %v162_v41 = vpop.f32.mrf.mxu0  ;;  %v172_v42 = vpop.f32.mrf.mxu1  ;;  %v181_v51 = vadd.f32 %v382_v18, %v180_v39  ;;  %v191_v52 = vadd.f32 %v382_v18, %v190_v40 }
  0xb7   :  { %v163_v45 = vadd.f32 %v382_v18, %v162_v41  ;;  %v173_v46 = vadd.f32 %v382_v18, %v172_v42 }
  0xb9   :  { %v319_v47 = vpack.c.bf16 %v163_v45, %v161_v43  ;;  %v329_v48 = vpack.c.bf16 %v173_v46, %v171_v44 }
  0xbb   :  { %351 = vst [vmem:[%s481_s3 + $0x8] sm:$0xff] %v319_v47  }
  0xbc   :  { %353 = vst [vmem:[%s481_s3 + $0x18] sm:$0xff] %v329_v48  }
  0xbd   :  { %v182_v49 = vpop.f32.mrf.mxu2  ;;  %v192_v50 = vpop.f32.mrf.mxu3 }
  0xbe   :  { %v183_v53 = vadd.f32 %v382_v18, %v182_v49  ;;  %v193_v54 = vadd.f32 %v382_v18, %v192_v50 }
  0xc0   :  { %v339_v55 = vpack.c.bf16 %v183_v53, %v181_v51  ;;  %v349_v56 = vpack.c.bf16 %v193_v54, %v191_v52 }
  0xc2   :  { %355 = vst [vmem:[%s481_s3 + $0x28] sm:$0xff] %v339_v55  }
  0xc3   :  { %357 = vst [vmem:[%s481_s3 + $0x38] sm:$0xff] %v349_v56  }

// kernel: _lambda_.16
= control target key start
LH: loop header
LB: loop body
LE: loop exit
PB: predicated region body
PF: predicated region fallthrough
CT: control target
= control target key end

     0   :  { %s2361_s12 = smov 0   ;;  %s2363_s13 = smov 0   ;;  %s2752_s0 = inlined_call_operand.vmem [shape: bf16[2,76,19,3], index: 0, kind: input, shape index: {}]   ;;  %s2753_s1 = inlined_call_operand.vmem [shape: bf16[49,3,128], index: 1, kind: input, shape index: {}]   ;;  %s2754_s2 = inlined_call_operand.vmem [shape: f32[1,128], index: 2, kind: input, shape index: {}]   ;;  %s2755_s3 = inlined_call_operand.vmem [shape: bf16[2,16,16,128], index: 3, kind: output, shape index: {}]  }
   0x1   :  { %s2365_s14 = smov 0  }
   0x2 LB: > { %s25_s15 = sadd.s32 1, %s2330_s13  ;;  %p2050_p0 = scmp.ge.s32.totalorder %s2334_s14, 1  ;;  %s2334_s14 = sphi %s2365_s14, %s13_s14   ;;  %s2330_s13 = sphi %s2363_s13, %s2757_s13   ;;  %s2326_s12 = sphi %s2361_s12, %s2756_s12  }
   0x3   : > { %p27_p1 = scmp.ge.s32.totalorder %s25_s15, 2  ;;  %p168_p2 = scmp.lt.s32.totalorder %s2334_s14, 3 }
   0x5   : > { %s2759_s15 = smov (%p27_p1, %s25_s15), 0  ;;  %p169_p3 = pnand %p2050_p0, %p168_p2 }
   0x6   : > { %p202_p4 = scmp.lt.s32.totalorder (!%p169_p3), %s2326_s12, 1  ;;  %s2389_s24 = smov (!%p169_p3), 0  }
   0x7   : > { %172 = sbr.rel (%p169_p3) target bundleno = 360 (0x168), region = 32 }
   0xc   : > { %s2761_s12 = smov (!%p202_p4, %s2326_s12), 1 }
   0xd   : > { %s2273_s16 = smul.u32 912, %s2761_s12  ;;  %s2251_s17 = sshll.u32 %s2761_s12, 7 }
   0xe   : > { %s2382_s20 = scalar_lea.vmem %s2755_s3, %s2251_s17 }
   0xf   : > { %s2387_s23 = scalar_lea.vmem %s2752_s0, %s2273_s16 }
  0x10 LB: >> { %v2058_v0 = vld [vmem:[%s2753_s1 + $0x2] sm:$0x3]  ;;  %vm254_vm0 = vcmask 1040384   ;;  %vm255_vm1 = vcmask 1041408   ;;  %v2340_v1 = vmov 65535   ;;  %s2252_s4 = smul.u32 12, %s2338_s24  ;;  %s2338_s24 = sphi %s2389_s24, %s228_s24  }
  0x11   : >> { %v256_v2 = vsel %vm254_vm0, 4294967295, %v2340_v1  ;;  %v235_v3 = vld [vmem:[%s2753_s1] sm:$0x3]  ;;  %v2073_v4 = vld [vmem:[%s2753_s1 + $0x8] sm:$0x3]  ;;  %vm250_vm2 = vcmask 23552  }
  0x12   : >> { %v2403_v5 = vsel %vm255_vm1, %v256_v2, 0  ;;  %v2069_v6 = vld [vmem:[%s2753_s1 + $0x4] sm:$0x3]  ;;  %v2071_v7 = vld [vmem:[%s2753_s1 + $0x6] sm:$0x3]  ;;  %s2426_s18 = scalar_lea.vmem %s2387_s23, %s2252_s4  ;;  %vm379_vm4 = vcmask 1046528  }
  0x13   : >> { %v259_v8 = vand.u32 %v2058_v0, %v2403_v5  ;;  %v284_v9 = vand.u32 %v2403_v5, %v235_v3  ;;  %v387_v10 = vand.u32 %v2073_v4, %v2403_v5  ;;  %v321_v11 = vand.u32 %v2069_v6, %v2403_v5  ;;  %v2077_v12 = vld [vmem:[%s2753_s1 + $0xc] sm:$0x3]  ;;  %v2082_v13 = vld [vmem:[%s2753_s1 + $0xe] sm:$0x3]  ;;  %v2075_v14 = vld [vmem:[%s2753_s1 + $0xa] sm:$0x3] }
  0x14   : >> { %v359_v15 = vand.u32 %v2071_v7, %v2403_v5  ;;  %v448_v16 = vand.u32 %v2077_v12, %v2403_v5  ;;  %v2091_v17 = vld [vmem:[%s2753_s1 + $0x10] sm:$0x3]  ;;  %v2434_v18 = vld [vmem:[%s2426_s18 + $0xe4] sm:$0xff]  ;;  %v484_v21 = vand.u32 %v2082_v13, %v2403_v5  ;;  %v414_v22 = vand.u32 %v2075_v14, %v2403_v5  ;;  %v2057_v24 = vld [vmem:[%s2426_s18 + $0xec] sm:$0x3]  ;;  %s2267_s25 = sshll.u32 %s2338_s24, 3 }
  0x15   : >> { %268 = vmatpush.bf16.msra.mxu0 %v259_v8  ;;  %293 = vmatpush.bf16.msra.mxu1 %v284_v9  ;;  %v2253_v19 = vld [vmem:[%s2426_s18] sm:$0xff]  ;;  %v234_v20 = vld [vmem:[%s2426_s18 + $0x8] sm:$0x3]  ;;  %v520_v25 = vand.u32 %v2091_v17, %v2403_v5  ;;  %v342_v28 = vunpack.c.l.b16 %v2057_v24  ;;  %v344_v30 = vshrl.u32 %v2434_v18, 16  ;;  %v346_v31 = vshll.u32 %v2434_v18, 16  ;;  %v2256_v12 = vld [vmem:[%s2426_s18 + $0x2ac] sm:$0xff]  ;;  %s1888_s26 = scalar_lea.vmem %s2382_s20, %s2267_s25 }
  0x16   : >> { %330 = vmatpush.bf16.msra.mxu2 %v321_v11  ;;  %v303_v23 = vunpack.c.l.b16 %v234_v20  ;;  %368 = vmatpush.bf16.msra.mxu3 %v359_v15  ;;  %v306_v26 = vshrl.u32 %v2253_v19, 16  ;;  %v308_v27 = vshll.u32 %v2253_v19, 16  ;;  %v2099_v34 = vld [vmem:[%s2753_s1 + $0x14] sm:$0x3]  ;;  %vm305_vm3 = vsmask.f32 7424 }
  0x17   : >> { %v343_v33 = vpack.c.b16 %v342_v28, %v342_v28  ;;  %v348_v36 = vrot.slane %v346_v31, 1  ;;  %v2101_v37 = vld [vmem:[%s2753_s1 + $0x16] sm:$0x3]  ;;  %v2097_v40 = vld [vmem:[%s2753_s1 + $0x12] sm:$0x3]  ;;  %v596_v43 = vand.u32 %v2099_v34, %v2403_v5  ;;  %v380_v49 = vrot.slane %v2253_v19, 1 }
  0x18   : >> { %2063 = vmatmul.msk.bf16.vlgmr.msra.gmra.mxu0 %vm250_vm2, %v2434_v18  ;;  %2068 = vmatmul.msk.bf16.vlgmr.msra.gmra.mxu1 %vm250_vm2, %v2253_v19  ;;  %v304_v29 = vpack.c.b16 %v303_v23, %v303_v23  ;;  %v310_v32 = vrot.slane %v308_v27, 1  ;;  %v623_v45 = vand.u32 %v2101_v37, %v2403_v5  ;;  %v558_v47 = vand.u32 %v2097_v40, %v2403_v5  ;;  %v2103_v54 = vld [vmem:[%s2753_s1 + $0x18] sm:$0x3]  ;;  %v2081_v55 = vld [vmem:[%s2426_s18 + $0x1d0] sm:$0x3]  ;;  %v2255_v2 = vld [vmem:[%s2426_s18 + $0x1c8] sm:$0xff] }
  0x19   : >> { %396 = vmatpush.bf16.msrb.mxu0 %v387_v10  ;;  %423 = vmatpush.bf16.msrb.mxu1 %v414_v22  ;;  %v351_v39 = vshll.u32 %v343_v33, 16  ;;  %v349_v42 = vor.u32 %v348_v36, %v344_v30  ;;  %v407_v52 = vrot.slane %v2434_v18, 1  ;;  %v408_v53 = vrot.slane %v343_v33, 1  ;;  %v2105_v56 = vld [vmem:[%s2753_s1 + $0x1a] sm:$0x3]  ;;  %s228_s24 = sadd.s32 1, %s2338_s24  }
  0x1a   : >> { %457 = vmatpush.bf16.msrb.mxu2 %v448_v16  ;;  %493 = vmatpush.bf16.msrb.mxu3 %v484_v21  ;;  %v313_v35 = vshll.u32 %v304_v29, 16  ;;  %v311_v38 = vor.u32 %v310_v32, %v306_v26  ;;  %v381_v50 = vrot.slane %v304_v29, 1  ;;  %v438_v51 = vshrl.u32 %v304_v29, 16  ;;  %v2090_v8 = vld [vmem:[%s2426_s18 + $0x2b4] sm:$0x3]  ;;  %p225_p5 = scmp.ge.s32.totalorder %s228_s24, 16  }
  0x1b   : >> { %v353_v44 = vrot.slane %v351_v39, 1  ;;  %v435_v57 = vrot.slane %v306_v26, 1  ;;  %v436_v59 = vrot.slane %v308_v27, 2  ;;  %v409_v62 = vsel %vm379_vm4, %v407_v52, %v408_v53  ;;  %v2110_v9 = vld [vmem:[%s2753_s1 + $0x1c] sm:$0x3] }
  0x1c   : >> { %v315_v41 = vrot.slane %v313_v35, 1  ;;  %v382_v58 = vsel %vm379_vm4, %v380_v49, %v381_v50  ;;  %v440_v60 = vrot.slane %v438_v51, 1  ;;  %v441_v61 = vrot.slane %v313_v35, 2  ;;  %v2119_v10 = vld [vmem:[%s2753_s1 + $0x1e] sm:$0x3] }
  0x1d   : >> { %529 = vmatpush.bf16.msra.mxu0 %v520_v25  ;;  %v354_v48 = vsel %vm305_vm3, %v349_v42, %v353_v44  ;;  %567 = vmatpush.bf16.msra.mxu1 %v558_v47  ;;  %v650_v63 = vand.u32 %v2103_v54, %v2403_v5  ;;  %v541_v0 = vunpack.c.l.b16 %v2081_v55  ;;  %v683_v1 = vand.u32 %v2105_v56, %v2403_v5  ;;  %v2125_v23 = vld [vmem:[%s2753_s1 + $0x20] sm:$0x3]  ;;  %v2127_v24 = vld [vmem:[%s2753_s1 + $0x22] sm:$0x3]  ;;  %v2129_v36 = vld [vmem:[%s2753_s1 + $0x24] sm:$0x3] }
  0x1e   : >> { %v316_v46 = vsel %vm305_vm3, %v311_v38, %v315_v41  ;;  %2072 = vmatmul.msk.bf16.vlgmr.msra.gmra.mxu3 %vm250_vm2, %v354_v48  ;;  %vm434_vm5 = vsmask.f32 6400  ;;  %v437_v3 = vor.u32 %v436_v59, %v435_v57  ;;  %v442_v4 = vor.u32 %v441_v61, %v440_v60  ;;  %v2131_v37 = vld [vmem:[%s2753_s1 + $0x26] sm:$0x3]  ;;  %v2109_v50 = vld [vmem:[%s2426_s18 + $0x14] sm:$0x3] }
  0x1f   : >> { %2070 = vmatmul.msk.bf16.vlgmr.msra.gmra.mxu2 %vm250_vm2, %v316_v46  ;;  %632 = vmatpush.bf16.msra.mxu3 %v623_v45  ;;  %v542_v6 = vpack.c.b16 %v541_v0, %v541_v0  ;;  %v545_v7 = vshll.u32 %v2255_v2, 16  ;;  %v579_v13 = vunpack.c.l.b16 %v2090_v8  ;;  %v719_v14 = vand.u32 %v2110_v9, %v2403_v5  ;;  %v2133_v51 = vld [vmem:[%s2753_s1 + $0x28] sm:$0x3]  ;;  %v2118_v52 = vld [vmem:[%s2426_s18 + $0xf8] sm:$0x3]  ;;  %v2257_v60 = vld [vmem:[%s2426_s18 + $0xc] sm:$0xff] }
  0x20   : >> { %605 = vmatpush.bf16.msra.mxu2 %v596_v43  ;;  %v443_v11 = vsel %vm434_vm5, %v437_v3, %v442_v4  ;;  %v543_v15 = vshrl.u32 %v2255_v2, 16  ;;  %v755_v18 = vand.u32 %v2119_v10, %v2403_v5  ;;  %v583_v20 = vshll.u32 %v2256_v12, 16  ;;  %v2138_v53 = vld [vmem:[%s2753_s1 + $0x2a] sm:$0x3]  ;;  %v2258_v61 = vld [vmem:[%s2426_s18 + $0xf0] sm:$0xff] }
  0x21   : >> { %v547_v16 = vrot.slane %v545_v7, 1  ;;  %v550_v17 = vshll.u32 %v542_v6, 16  ;;  %v580_v19 = vpack.c.b16 %v579_v13, %v579_v13  ;;  %v581_v25 = vshrl.u32 %v2256_v12, 16  ;;  %v2153_v3 = vld [vmem:[%s2753_s1 + $0x2e] sm:$0x3] }
  0x22   : >> { %v585_v26 = vrot.slane %v583_v20, 1  ;;  %v793_v29 = vand.u32 %v2125_v23, %v2403_v5  ;;  %v831_v30 = vand.u32 %v2127_v24, %v2403_v5  ;;  %v616_v33 = vrot.slane %v2255_v2, 1 }
  0x23   : >> { %v548_v21 = vor.u32 %v547_v16, %v543_v15  ;;  %v552_v22 = vrot.slane %v550_v17, 1  ;;  %v588_v27 = vshll.u32 %v580_v19, 16  ;;  %v617_v34 = vrot.slane %v542_v6, 1 }
  0x24   : >> { %v586_v31 = vor.u32 %v585_v26, %v581_v25  ;;  %v673_v35 = vshrl.u32 %v542_v6, 16  ;;  %v670_v40 = vrot.slane %v543_v15, 1  ;;  %v858_v41 = vand.u32 %v2129_v36, %v2403_v5 }
  0x25   : >> { %v553_v28 = vsel %vm305_vm3, %v548_v21, %v552_v22  ;;  %v590_v32 = vrot.slane %v588_v27, 1  ;;  %v618_v39 = vsel %vm379_vm4, %v616_v33, %v617_v34  ;;  %v671_v42 = vrot.slane %v545_v7, 2 }
  0x26   : >> { %v675_v43 = vrot.slane %v673_v35, 1  ;;  %v676_v44 = vrot.slane %v550_v17, 2  ;;  %v885_v45 = vand.u32 %v2131_v37, %v2403_v5  ;;  %v643_v46 = vrot.slane %v2256_v12, 1  ;;  %v2155_v17 = vld [vmem:[%s2753_s1 + $0x30] sm:$0x3] }
  0x27   : >> { %v591_v38 = vsel %vm305_vm3, %v586_v31, %v590_v32  ;;  %v644_v47 = vrot.slane %v580_v19, 1  ;;  %v672_v48 = vor.u32 %v671_v42, %v670_v40  ;;  %v776_v55 = vunpack.c.l.b16 %v2109_v50 }
  0x28   : >> { %2074 = vmatmul.msk.bf16.vlgmr.msrb.gmra.mxu0 %vm250_vm2, %v382_v58  ;;  %2076 = vmatmul.msk.bf16.vlgmr.msrb.gmra.mxu1 %vm250_vm2, %v409_v62  ;;  %v677_v49 = vor.u32 %v676_v44, %v675_v43  ;;  %v918_v57 = vand.u32 %v2133_v51, %v2403_v5  ;;  %v814_v58 = vunpack.c.l.b16 %v2118_v52  ;;  %v954_v59 = vand.u32 %v2138_v53, %v2403_v5 }
  0x29   : >> { %659 = vmatpush.bf16.msrb.mxu0 %v650_v63  ;;  %692 = vmatpush.bf16.msrb.mxu1 %v683_v1  ;;  %v645_v54 = vsel %vm379_vm4, %v643_v46, %v644_v47  ;;  %v777_v62 = vpack.c.b16 %v776_v55, %v776_v55  ;;  %v780_v63 = vshll.u32 %v2257_v60, 16  ;;  %v818_v1 = vshll.u32 %v2258_v61, 16  ;;  %v2166_v46 = vld [vmem:[%s2753_s1 + $0x38] sm:$0x3]  ;;  %v2175_v47 = vld [vmem:[%s2753_s1 + $0x3a] sm:$0x3] }
  0x2a   : >> { %v678_v56 = vsel %vm434_vm5, %v672_v48, %v677_v49  ;;  %v815_v0 = vpack.c.b16 %v814_v58, %v814_v58  ;;  %v778_v4 = vshrl.u32 %v2257_v60, 16  ;;  %v816_v9 = vshrl.u32 %v2258_v61, 16  ;;  %v2260_v55 = vld [vmem:[%s2426_s18 + $0x2b8] sm:$0xff] }
  0x2b   : >> { %v782_v6 = vrot.slane %v780_v63, 1  ;;  %v785_v7 = vshll.u32 %v777_v62, 16  ;;  %v820_v10 = vrot.slane %v818_v1, 1  ;;  %v1066_v21 = vand.u32 %v2155_v17, %v2403_v5 }
  0x2c   : >> { %v851_v23 = vrot.slane %v2257_v60, 1  ;;  %v852_v24 = vrot.slane %v777_v62, 1  ;;  %v908_v25 = vshrl.u32 %v777_v62, 16  ;;  %v878_v26 = vrot.slane %v2258_v61, 1 }
  0x2d   : >> { %v783_v13 = vor.u32 %v782_v6, %v778_v4  ;;  %v821_v15 = vor.u32 %v820_v10, %v816_v9  ;;  %v879_v27 = vrot.slane %v815_v0, 1  ;;  %v905_v32 = vrot.slane %v778_v4, 1  ;;  %v2185_v10 = vld [vmem:[%s2753_s1 + $0x40] sm:$0x3] }
  0x2e   : >> { %2087 = vmatmul.msk.bf16.vlgmr.msrb.gmra.mxu3 %vm250_vm2, %v2255_v2  ;;  %v2147_v2 = vld [vmem:[%s2753_s1 + $0x2c] sm:$0x3]  ;;  %v853_v31 = vsel %vm379_vm4, %v851_v23, %v852_v24  ;;  %v906_v33 = vrot.slane %v780_v63, 2  ;;  %v910_v34 = vrot.slane %v908_v25, 1  ;;  %v911_v35 = vrot.slane %v785_v7, 2 }
  0x2f   : >> { %2078 = vmatmul.msk.bf16.vlgmr.msrb.gmra.mxu2 %vm250_vm2, %v443_v11  ;;  %764 = vmatpush.bf16.msrb.mxu3 %v755_v18  ;;  %v990_v8 = vand.u32 %v2147_v2, %v2403_v5  ;;  %v823_v11 = vshll.u32 %v815_v0, 16  ;;  %v2157_v18 = vld [vmem:[%s2753_s1 + $0x32] sm:$0x3]  ;;  %v880_v37 = vsel %vm379_vm4, %v878_v26, %v879_v27  ;;  %v1189_v53 = vand.u32 %v2166_v46, %v2403_v5  ;;  %v2165_v24 = vld [vmem:[%s2426_s18 + $0x20] sm:$0x3] }
  0x30   : >> { %728 = vmatpush.bf16.msrb.mxu2 %v719_v14  ;;  %v787_v14 = vrot.slane %v785_v7, 1  ;;  %v1093_v22 = vand.u32 %v2157_v18, %v2403_v5  ;;  %v912_v42 = vor.u32 %v911_v35, %v910_v34  ;;  %v1051_v62 = vshrl.u32 %v2260_v55, 16  ;;  %v2189_v25 = vld [vmem:[%s2753_s1 + $0x44] sm:$0x3]  ;;  %v2194_v27 = vld [vmem:[%s2753_s1 + $0x46] sm:$0x3] }
  0x31   : >> { %v825_v16 = vrot.slane %v823_v11, 1  ;;  %v2187_v11 = vld [vmem:[%s2753_s1 + $0x42] sm:$0x3]  ;;  %v1328_v18 = vand.u32 %v2185_v10, %v2403_v5  ;;  %v2174_v26 = vld [vmem:[%s2426_s18 + $0x104] sm:$0x3]  ;;  %v1424_v35 = vand.u32 %v2194_v27, %v2403_v5 }
  0x32   : >> { %v788_v19 = vsel %vm305_vm3, %v783_v13, %v787_v14  ;;  %v1284_v34 = vunpack.c.l.b16 %v2174_v26 }
  0x33   : >> { %v826_v20 = vsel %vm305_vm3, %v821_v15, %v825_v16 }
  0x38   : >> { %2096 = vmatmul.msk.bf16.vlgmr.msra.gmra.mxu0 %vm250_vm2, %v2256_v12  ;;  %2098 = vmatmul.msk.bf16.vlgmr.msra.gmra.mxu1 %vm250_vm2, %v553_v28  ;;  %v1028_v12 = vand.u32 %v2153_v3, %v2403_v5  ;;  %v2159_v28 = vld [vmem:[%s2753_s1 + $0x34] sm:$0x3] }
  0x39   : >> { %802 = vmatpush.bf16.msra.mxu0 %v793_v29  ;;  %840 = vmatpush.bf16.msra.mxu1 %v831_v30  ;;  %v2137_v29 = vld [vmem:[%s2426_s18 + $0x1dc] sm:$0x3]  ;;  %v2161_v30 = vld [vmem:[%s2753_s1 + $0x36] sm:$0x3]  ;;  %v1120_v36 = vand.u32 %v2159_v28, %v2403_v5 }
  0x3a   : >> { %v1153_v40 = vand.u32 %v2161_v30, %v2403_v5  ;;  %v1246_v30 = vunpack.c.l.b16 %v2165_v24  ;;  %v2231_v24 = vld [vmem:[%s2753_s1 + $0x56] sm:$0x3] }
  0x3e   : >> { %2102 = vmatmul.msk.bf16.vlgmr.msra.gmra.mxu3 %vm250_vm2, %v618_v39  ;;  %v1011_v39 = vunpack.c.l.b16 %v2137_v29  ;;  %v2261_v29 = vld [vmem:[%s2426_s18 + $0x18] sm:$0xff] }
  0x3f   : >> { %2100 = vmatmul.msk.bf16.vlgmr.msra.gmra.mxu2 %vm250_vm2, %v591_v38  ;;  %894 = vmatpush.bf16.msra.mxu3 %v885_v45  ;;  %v2259_v38 = vld [vmem:[%s2426_s18 + $0x1d4] sm:$0xff]  ;;  %v2146_v45 = vld [vmem:[%s2426_s18 + $0x2c0] sm:$0x3] }
  0x40   : >> { %867 = vmatpush.bf16.msra.mxu2 %v858_v41  ;;  %v907_v41 = vor.u32 %v906_v33, %v905_v32  ;;  %v1012_v43 = vpack.c.b16 %v1011_v39, %v1011_v39  ;;  %v1015_v44 = vshll.u32 %v2259_v38, 16  ;;  %v1013_v49 = vshrl.u32 %v2259_v38, 16  ;;  %v2262_v33 = vld [vmem:[%s2426_s18 + $0xfc] sm:$0xff] }
  0x41   : >> { %v1049_v50 = vunpack.c.l.b16 %v2146_v45  ;;  %v1086_v7 = vrot.slane %v2259_v38, 1  ;;  %v1288_v39 = vshll.u32 %v2262_v33, 16 }
  0x42   : >> { %v913_v48 = vsel %vm434_vm5, %v907_v41, %v912_v42  ;;  %v1017_v51 = vrot.slane %v1015_v44, 1  ;;  %v1020_v52 = vshll.u32 %v1012_v43, 16  ;;  %v1143_v9 = vshrl.u32 %v1012_v43, 16 }
  0x43   : >> { %v1140_v14 = vrot.slane %v1013_v49, 1  ;;  %v1141_v15 = vrot.slane %v1015_v44, 2  ;;  %v1248_v41 = vshrl.u32 %v2261_v29, 16  ;;  %v1286_v44 = vshrl.u32 %v2262_v33, 16 }
  0x44   : >> { %v1018_v58 = vor.u32 %v1017_v51, %v1013_v49  ;;  %v1145_v16 = vrot.slane %v1143_v9, 1  ;;  %v1146_v17 = vrot.slane %v1020_v52, 2  ;;  %v1290_v45 = vrot.slane %v1288_v39, 1 }
  0x46   : >> { %v1147_v23 = vor.u32 %v1146_v17, %v1145_v16  ;;  %v2652_v17 = vld [vmem:[%s2426_s18 + $0x1e0] sm:$0xff] }
  0x48   : >> { %2104 = vmatmul.msk.bf16.vlgmr.msrb.gmra.mxu0 %vm250_vm2, %v645_v54  ;;  %2106 = vmatmul.msk.bf16.vlgmr.msrb.gmra.mxu1 %vm250_vm2, %v678_v56  ;;  %v1225_v54 = vand.u32 %v2175_v47, %v2403_v5  ;;  %v1050_v56 = vpack.c.b16 %v1049_v50, %v1049_v50 }
  0x49   : >> { %927 = vmatpush.bf16.msrb.mxu0 %v918_v57  ;;  %963 = vmatpush.bf16.msrb.mxu1 %v954_v59  ;;  %v1053_v57 = vshll.u32 %v2260_v55, 16  ;;  %v1022_v59 = vrot.slane %v1020_v52, 1  ;;  %v1291_v52 = vor.u32 %v1290_v45, %v1286_v44 }
  0x4a   : >> { %v1058_v0 = vshll.u32 %v1050_v56, 16 }
  0x4b   : >> { %v1055_v63 = vrot.slane %v1053_v57, 1  ;;  %v1023_v2 = vsel %vm305_vm3, %v1018_v58, %v1022_v59 }
  0x4c   : >> { %v1060_v6 = vrot.slane %v1058_v0, 1 }
  0x4d   : >> { %v1056_v4 = vor.u32 %v1055_v63, %v1051_v62  ;;  %v1348_v63 = vrot.slane %v2262_v33, 1 }
  0x4e   : >> { %2124 = vmatmul.msk.bf16.vlgmr.msrb.gmra.mxu3 %vm250_vm2, %v2258_v61  ;;  %v2183_v61 = vld [vmem:[%s2753_s1 + $0x3e] sm:$0x3] }
  0x4f   : >> { %2115 = vmatmul.msk.bf16.vlgmr.msrb.gmra.mxu2 %vm250_vm2, %v2257_v60  ;;  %1037 = vmatpush.bf16.msrb.mxu3 %v1028_v12  ;;  %v2181_v60 = vld [vmem:[%s2753_s1 + $0x3c] sm:$0x3]  ;;  %v1301_v3 = vand.u32 %v2183_v61, %v2403_v5  ;;  %v1061_v12 = vsel %vm305_vm3, %v1056_v4, %v1060_v6  ;;  %v1321_v61 = vrot.slane %v2261_v29, 1 }
  0x50   : >> { %999 = vmatpush.bf16.msrb.mxu2 %v990_v8  ;;  %v1263_v1 = vand.u32 %v2181_v60, %v2403_v5  ;;  %v1087_v8 = vrot.slane %v1012_v43, 1 }
  0x52   : >> { %v1088_v13 = vsel %vm379_vm4, %v1086_v7, %v1087_v8 }
  0x58   : >> { %2126 = vmatmul.msk.bf16.vlgmr.msra.gmra.mxu0 %vm250_vm2, %v788_v19  ;;  %2128 = vmatmul.msk.bf16.vlgmr.msra.gmra.mxu1 %vm250_vm2, %v826_v20  ;;  %v1355_v19 = vand.u32 %v2187_v11, %v2403_v5  ;;  %v1113_v20 = vrot.slane %v2260_v55, 1 }
  0x59   : >> { %1075 = vmatpush.bf16.msra.mxu0 %v1066_v21  ;;  %1102 = vmatpush.bf16.msra.mxu1 %v1093_v22  ;;  %v1114_v21 = vrot.slane %v1050_v56, 1  ;;  %v1142_v22 = vor.u32 %v1141_v15, %v1140_v14  ;;  %v2217_v14 = vld [vmem:[%s2753_s1 + $0x52] sm:$0x3] }
  0x5a   : >> { %v1623_v16 = vand.u32 %v2217_v14, %v2403_v5 }
  0x5b   : >> { %v1115_v28 = vsel %vm379_vm4, %v1113_v20, %v1114_v21  ;;  %v1148_v32 = vsel %vm434_vm5, %v1142_v22, %v1147_v23  ;;  %v2202_v20 = vld [vmem:[%s2426_s18 + $0x2cc] sm:$0x3]  ;;  %v1485_v22 = vshll.u32 %v2652_v17, 16  ;;  %v2222_v23 = vld [vmem:[%s2753_s1 + $0x54] sm:$0x3] }
  0x5c   : >> { %v1519_v26 = vunpack.c.l.b16 %v2202_v20  ;;  %v2221_v20 = vld [vmem:[%s2426_s18 + $0x2c] sm:$0x3] }
  0x5e   : >> { %2132 = vmatmul.msk.bf16.vlgmr.msra.gmra.mxu3 %vm250_vm2, %v880_v37  ;;  %v1250_v37 = vshll.u32 %v2261_v29, 16 }
  0x5f   : >> { %2130 = vmatmul.msk.bf16.vlgmr.msra.gmra.mxu2 %vm250_vm2, %v853_v31  ;;  %1162 = vmatpush.bf16.msra.mxu3 %v1153_v40  ;;  %v1388_v31 = vand.u32 %v2189_v25, %v2403_v5  ;;  %v2203_v40 = vld [vmem:[%s2753_s1 + $0x48] sm:$0x3] }
  0x60   : >> { %1129 = vmatpush.bf16.msra.mxu2 %v1120_v36  ;;  %v1247_v36 = vpack.c.b16 %v1246_v30, %v1246_v30  ;;  %v1252_v42 = vrot.slane %v1250_v37, 1  ;;  %v1460_v47 = vand.u32 %v2203_v40, %v2403_v5  ;;  %v1376_v4 = vrot.slane %v1250_v37, 2  ;;  %v2667_v25 = vld [vmem:[%s2426_s18 + $0x2c4] sm:$0xff] }
  0x61   : >> { %v1523_v37 = vshll.u32 %v2667_v25, 16  ;;  %v1521_v44 = vshrl.u32 %v2667_v25, 16 }
  0x62   : >> { %v1255_v43 = vshll.u32 %v1247_v36, 16  ;;  %v1253_v50 = vor.u32 %v1252_v42, %v1248_v41  ;;  %v1378_v60 = vshrl.u32 %v1247_v36, 16  ;;  %v1322_v62 = vrot.slane %v1247_v36, 1 }
  0x63   : >> { %v2675_v36 = vpack.c.b16 %v1519_v26, %v1519_v26  ;;  %v1525_v45 = vrot.slane %v1523_v37, 1 }
  0x64   : >> { %v1257_v51 = vrot.slane %v1255_v43, 1  ;;  %v1380_v6 = vrot.slane %v1378_v60, 1  ;;  %v1381_v7 = vrot.slane %v1255_v43, 2  ;;  %v1323_v10 = vsel %vm379_vm4, %v1321_v61, %v1322_v62  ;;  %v2241_v61 = vld [vmem:[%s2753_s1 + $0x5c] sm:$0x3] }
  0x66   : >> { %v1258_v56 = vsel %vm305_vm3, %v1253_v50, %v1257_v51 }
  0x68   : >> { %2134 = vmatmul.msk.bf16.vlgmr.msrb.gmra.mxu0 %vm250_vm2, %v913_v48  ;;  %2143 = vmatmul.msk.bf16.vlgmr.msrb.gmra.mxu1 %vm250_vm2, %v2259_v38  ;;  %v1285_v38 = vpack.c.b16 %v1284_v34, %v1284_v34  ;;  %v2209_v48 = vld [vmem:[%s2753_s1 + $0x4a] sm:$0x3]  ;;  %v1695_v34 = vand.u32 %v2231_v24, %v2403_v5 }
  0x69   : >> { %1198 = vmatpush.bf16.msrb.mxu0 %v1189_v53  ;;  %1234 = vmatpush.bf16.msrb.mxu1 %v1225_v54  ;;  %v1498_v49 = vand.u32 %v2209_v48, %v2403_v5  ;;  %v2211_v54 = vld [vmem:[%s2753_s1 + $0x4c] sm:$0x3] }
  0x6a   : >> { %v1293_v46 = vshll.u32 %v1285_v38, 16  ;;  %v1536_v57 = vand.u32 %v2211_v54, %v2403_v5  ;;  %v1349_v0 = vrot.slane %v1285_v38, 1 }
  0x6c   : >> { %v1295_v53 = vrot.slane %v1293_v46, 1  ;;  %v1350_v11 = vsel %vm379_vm4, %v1348_v63, %v1349_v0  ;;  %v1528_v46 = vshll.u32 %v2675_v36, 16  ;;  %v2243_v63 = vld [vmem:[%s2753_s1 + $0x5e] sm:$0x3] }
  0x6e   : >> { %2154 = vmatmul.msk.bf16.vlgmr.msrb.gmra.mxu3 %vm250_vm2, %v1023_v2  ;;  %v1296_v58 = vsel %vm305_vm3, %v1291_v52, %v1295_v53  ;;  %v2193_v2 = vld [vmem:[%s2426_s18 + $0x1e8] sm:$0x3]  ;;  %v2239_v52 = vld [vmem:[%s2753_s1 + $0x5a] sm:$0x3] }
  0x6f   : >> { %2152 = vmatmul.msk.bf16.vlgmr.msrb.gmra.mxu2 %vm250_vm2, %v2260_v55  ;;  %1310 = vmatpush.bf16.msrb.mxu3 %v1301_v3  ;;  %v2213_v55 = vld [vmem:[%s2753_s1 + $0x4e] sm:$0x3]  ;;  %v1375_v3 = vrot.slane %v1248_v41, 1  ;;  %v2237_v41 = vld [vmem:[%s2753_s1 + $0x58] sm:$0x3]  ;;  %v1771_v53 = vand.u32 %v2239_v52, %v2403_v5 }
  0x70   : >> { %1272 = vmatpush.bf16.msrb.mxu2 %v1263_v1  ;;  %v1563_v59 = vand.u32 %v2213_v55, %v2403_v5  ;;  %v2215_v1 = vld [vmem:[%s2753_s1 + $0x50] sm:$0x3]  ;;  %v1733_v51 = vand.u32 %v2237_v41, %v2403_v5  ;;  %v1526_v55 = vor.u32 %v1525_v45, %v1521_v44 }
  0x78   : >> { %2156 = vmatmul.msk.bf16.vlgmr.msra.gmra.mxu0 %vm250_vm2, %v1061_v12  ;;  %2158 = vmatmul.msk.bf16.vlgmr.msra.gmra.mxu1 %vm250_vm2, %v1088_v13  ;;  %v1590_v12 = vand.u32 %v2215_v1, %v2403_v5  ;;  %v1481_v13 = vunpack.c.l.b16 %v2193_v2 }
  0x79   : >> { %1337 = vmatpush.bf16.msra.mxu0 %v1328_v18  ;;  %1364 = vmatpush.bf16.msra.mxu1 %v1355_v19  ;;  %v1377_v18 = vor.u32 %v1376_v4, %v1375_v3  ;;  %v1382_v19 = vor.u32 %v1381_v7, %v1380_v6  ;;  %v1611_v6 = vrot.slane %v1485_v22, 2  ;;  %v1798_v7 = vand.u32 %v2241_v61, %v2403_v5 }
  0x7a   : >> { %v2657_v21 = vpack.c.b16 %v1481_v13, %v1481_v13  ;;  %v1825_v13 = vand.u32 %v2243_v63, %v2403_v5 }
  0x7b   : >> { %v1383_v27 = vsel %vm434_vm5, %v1377_v18, %v1382_v19 }
  0x7c   : >> { %v1613_v60 = vshrl.u32 %v2657_v21, 16 }
  0x7e   : >> { %2162 = vmatmul.msk.bf16.vlgmr.msra.gmra.mxu3 %vm250_vm2, %v1148_v32  ;;  %v1487_v32 = vrot.slane %v1485_v22, 1  ;;  %v2245_v22 = vld [vmem:[%s2753_s1 + $0x60] sm:$0x3] }
  0x7f   : >> { %2160 = vmatmul.msk.bf16.vlgmr.msra.gmra.mxu2 %vm250_vm2, %v1115_v28  ;;  %1433 = vmatpush.bf16.msra.mxu3 %v1424_v35  ;;  %v1659_v28 = vand.u32 %v2222_v23, %v2403_v5  ;;  %v2230_v23 = vld [vmem:[%s2426_s18 + $0x110] sm:$0x3] }
  0x80   : >> { %1397 = vmatpush.bf16.msra.mxu2 %v1388_v31  ;;  %v1483_v31 = vshrl.u32 %v2652_v17, 16 }
  0x82   : >> { %v1488_v38 = vor.u32 %v1487_v32, %v1483_v31  ;;  %v1610_v4 = vrot.slane %v1483_v31, 1  ;;  %v1858_v32 = vand.u32 %v2245_v22, %v2403_v5 }
  0x84   : >> { %v1612_v18 = vor.u32 %v1611_v6, %v1610_v4 }
  0x88   : >> { %2171 = vmatmul.msk.bf16.vlgmr.msrb.gmra.mxu0 %vm250_vm2, %v2261_v29  ;;  %2180 = vmatmul.msk.bf16.vlgmr.msrb.gmra.mxu1 %vm250_vm2, %v2262_v33  ;;  %v1490_v33 = vshll.u32 %v2657_v21, 16 }
  0x89   : >> { %1469 = vmatpush.bf16.msrb.mxu0 %v1460_v47  ;;  %1507 = vmatpush.bf16.msrb.mxu1 %v1498_v49 }
  0x8a   : >> { %v1492_v39 = vrot.slane %v1490_v33, 1 }
  0x8c   : >> { %v1493_v50 = vsel %vm305_vm3, %v1488_v38, %v1492_v39 }
  0x8e   : >> { %2184 = vmatmul.msk.bf16.vlgmr.msrb.gmra.mxu3 %vm250_vm2, %v1296_v58  ;;  %v1557_v58 = vrot.slane %v2657_v21, 1 }
  0x8f   : >> { %2182 = vmatmul.msk.bf16.vlgmr.msrb.gmra.mxu2 %vm250_vm2, %v1258_v56  ;;  %1572 = vmatpush.bf16.msrb.mxu3 %v1563_v59  ;;  %v1530_v56 = vrot.slane %v1528_v46, 1 }
  0x90   : >> { %1545 = vmatpush.bf16.msrb.mxu2 %v1536_v57  ;;  %v1556_v57 = vrot.slane %v2652_v17, 1 }
  0x91   : >> { %v1531_v2 = vsel %vm305_vm3, %v1526_v55, %v1530_v56 }
  0x92   : >> { %v1558_v3 = vsel %vm379_vm4, %v1556_v57, %v1557_v58 }
  0x95   : >> { %v270_v8 = vpop.f32.mrf.mxu0  ;;  %v295_v9 = vpop.f32.mrf.mxu1 }
  0x96   : >> { %v296_v15 = vadd.f32 %v295_v9, %v270_v8 }
  0x98   : >> { %2186 = vmatmul.msk.bf16.vlgmr.msra.gmra.mxu0 %vm250_vm2, %v1323_v10  ;;  %2188 = vmatmul.msk.bf16.vlgmr.msra.gmra.mxu1 %vm250_vm2, %v1350_v11  ;;  %v1615_v11 = vrot.slane %v1613_v60, 1 }
  0x99   : >> { %1599 = vmatpush.bf16.msra.mxu0 %v1590_v12  ;;  %1632 = vmatpush.bf16.msra.mxu1 %v1623_v16  ;;  %v1616_v12 = vrot.slane %v1490_v33, 2  ;;  %v1584_v16 = vrot.slane %v2675_v36, 1  ;;  %v1754_v33 = vunpack.c.l.b16 %v2230_v23  ;;  %v2266_v36 = vld [vmem:[%s2426_s18 + $0x108] sm:$0xff] }
  0x9a   : >> { %v1758_v41 = vshll.u32 %v2266_v36, 16 }
  0x9b   : >> { %v1617_v19 = vor.u32 %v1616_v12, %v1615_v11 }
  0x9d   : >> { %v272_v29 = vpop.f32.mrf.mxu0  ;;  %v297_v30 = vpop.f32.mrf.mxu1  ;;  %v1618_v31 = vsel %vm434_vm5, %v1612_v18, %v1617_v19 }
  0x9e   : >> { %v298_v35 = vadd.f32 %v297_v30, %v272_v29  ;;  %2199 = vmatmul.msk.bf16.vlgmr.msra.gmra.mxu3 %vm250_vm2, %v2652_v17 }
  0x9f   : >> { %2190 = vmatmul.msk.bf16.vlgmr.msra.gmra.mxu2 %vm250_vm2, %v1383_v27  ;;  %1704 = vmatpush.bf16.msra.mxu3 %v1695_v34  ;;  %v1716_v27 = vunpack.c.l.b16 %v2221_v20  ;;  %v2265_v34 = vld [vmem:[%s2426_s18 + $0x24] sm:$0xff] }
  0xa0   : >> { %1668 = vmatpush.bf16.msra.mxu2 %v1659_v28  ;;  %v1720_v38 = vshll.u32 %v2265_v34, 16  ;;  %v1718_v45 = vshrl.u32 %v2265_v34, 16  ;;  %v1791_v4 = vrot.slane %v2265_v34, 1 }
  0xa1   : >> { %v370_v43 = vpop.f32.mrf.mxu3  ;;  %v1717_v37 = vpack.c.b16 %v1716_v27, %v1716_v27 }
  0xa2   : >> { %v332_v40 = vpop.f32.mrf.mxu2  ;;  %v1722_v46 = vrot.slane %v1720_v38, 1 }
  0xa3   : >> { %v337_v42 = vadd.f32 %v332_v40, %v296_v15  ;;  %v1583_v15 = vrot.slane %v2667_v25, 1  ;;  %v1755_v40 = vpack.c.b16 %v1754_v33, %v1754_v33  ;;  %v1725_v5 = vshll.u32 %v1717_v37, 16 }
  0xa4   : >> { %v1792_v6 = vrot.slane %v1717_v37, 1 }
  0xa5   : >> { %v375_v47 = vadd.f32 %v370_v43, %v337_v42  ;;  %v398_v48 = vpop.f32.mrf.mxu0  ;;  %v425_v49 = vpop.f32.mrf.mxu1  ;;  %v1763_v52 = vshll.u32 %v1755_v40, 16  ;;  %v1727_v56 = vrot.slane %v1725_v5, 1 }
  0xa7   : >> { %v403_v54 = vadd.f32 %v398_v48, %v375_v47  ;;  %v1765_v58 = vrot.slane %v1763_v52, 1 }
  0xa8   : >> { %2208 = vmatmul.msk.bf16.vlgmr.msrb.gmra.mxu0 %vm250_vm2, %v2667_v25  ;;  %2210 = vmatmul.msk.bf16.vlgmr.msrb.gmra.mxu1 %vm250_vm2, %v1493_v50  ;;  %v1585_v25 = vsel %vm379_vm4, %v1583_v15, %v1584_v16  ;;  %v1756_v50 = vshrl.u32 %v2266_v36, 16  ;;  %v1851_v15 = vrot.slane %v1725_v5, 2  ;;  %v1793_v16 = vsel %vm379_vm4, %v1791_v4, %v1792_v6 }
  0xa9   : >> { %v430_v59 = vadd.f32 %v425_v49, %v403_v54  ;;  %1742 = vmatpush.bf16.msrb.mxu0 %v1733_v51  ;;  %1780 = vmatpush.bf16.msrb.mxu1 %v1771_v53  ;;  %v372_v1 = vpop.f32.mrf.mxu3  ;;  %v1760_v51 = vrot.slane %v1758_v41, 1  ;;  %v1723_v54 = vor.u32 %v1722_v46, %v1718_v45 }
  0xaa   : >> { %v334_v62 = vpop.f32.mrf.mxu2 }
  0xab   : >> { %v338_v0 = vadd.f32 %v334_v62, %v298_v35  ;;  %v1761_v57 = vor.u32 %v1760_v51, %v1756_v50 }
  0xad   : >> { %v376_v8 = vadd.f32 %v372_v1, %v338_v0  ;;  %v400_v9 = vpop.f32.mrf.mxu0  ;;  %v427_v10 = vpop.f32.mrf.mxu1  ;;  %v1728_v1 = vsel %vm305_vm3, %v1723_v54, %v1727_v56 }
  0xae   : >> { %2214 = vmatmul.msk.bf16.vlgmr.msrb.gmra.mxu3 %vm250_vm2, %v1558_v3 }
  0xaf   : >> { %v404_v14 = vadd.f32 %v400_v9, %v376_v8  ;;  %2212 = vmatmul.msk.bf16.vlgmr.msrb.gmra.mxu2 %vm250_vm2, %v1531_v2  ;;  %1834 = vmatpush.bf16.msrb.mxu3 %v1825_v13  ;;  %v1766_v2 = vsel %vm305_vm3, %v1761_v57, %v1765_v58  ;;  %v1818_v8 = vrot.slane %v2266_v36, 1  ;;  %v1819_v9 = vrot.slane %v1755_v40, 1 }
  0xb0   : >> { %1807 = vmatpush.bf16.msrb.mxu2 %v1798_v7 }
  0xb1   : >> { %v431_v17 = vadd.f32 %v427_v10, %v404_v14  ;;  %v495_v26 = vpop.f32.mrf.mxu3  ;;  %v1848_v10 = vshrl.u32 %v1717_v37, 16  ;;  %v1845_v14 = vrot.slane %v1718_v45, 1  ;;  %v1820_v19 = vsel %vm379_vm4, %v1818_v8, %v1819_v9 }
  0xb2   : >> { %v459_v21 = vpop.f32.mrf.mxu2 }
  0xb3   : >> { %v464_v24 = vadd.f32 %v459_v21, %v430_v59  ;;  %v1846_v21 = vrot.slane %v1720_v38, 2  ;;  %v1850_v22 = vrot.slane %v1848_v10, 1 }
  0xb5   : >> { %v500_v28 = vadd.f32 %v495_v26, %v464_v24  ;;  %v531_v29 = vpop.f32.mrf.mxu0  ;;  %v569_v30 = vpop.f32.mrf.mxu1  ;;  %v1847_v26 = vor.u32 %v1846_v21, %v1845_v14 }
  0xb7   : >> { %v536_v35 = vadd.f32 %v531_v29, %v500_v28 }
  0xb8   : >> { %2216 = vmatmul.msk.bf16.vlgmr.msra.gmra.mxu0 %vm250_vm2, %v1585_v25  ;;  %2218 = vmatmul.msk.bf16.vlgmr.msra.gmra.mxu1 %vm250_vm2, %v1618_v31  ;;  %v1852_v25 = vor.u32 %v1851_v15, %v1850_v22 }
  0xb9   : >> { %v574_v39 = vadd.f32 %v569_v30, %v536_v35  ;;  %1867 = vmatpush.bf16.msra.mxu0 %v1858_v32  ;;  %v497_v44 = vpop.f32.mrf.mxu3 }
  0xba   : >> { %v461_v42 = vpop.f32.mrf.mxu2  ;;  %v1853_v33 = vsel %vm434_vm5, %v1847_v26, %v1852_v25 }
  0xbb   : >> { %v465_v43 = vadd.f32 %v461_v42, %v431_v17 }
  0xbd   : >> { %v501_v47 = vadd.f32 %v497_v44, %v465_v43  ;;  %v533_v48 = vpop.f32.mrf.mxu0  ;;  %v571_v49 = vpop.f32.mrf.mxu1 }
  0xbe   : >> { %2236 = vmatmul.msk.bf16.vlgmr.msra.gmra.mxu3 %vm250_vm2, %v2266_v36 }
  0xbf   : >> { %v537_v53 = vadd.f32 %v533_v48, %v501_v47  ;;  %2227 = vmatmul.msk.bf16.vlgmr.msra.gmra.mxu2 %vm250_vm2, %v2265_v34 }
  0xc1   : >> { %v575_v55 = vadd.f32 %v571_v49, %v537_v53  ;;  %v634_v61 = vpop.f32.mrf.mxu3 }
  0xc2   : >> { %v607_v59 = vpop.f32.mrf.mxu2 }
  0xc3   : >> { %v612_v60 = vadd.f32 %v607_v59, %v574_v39 }
  0xc5   : >> { %v639_v62 = vadd.f32 %v634_v61, %v612_v60  ;;  %v661_v63 = vpop.f32.mrf.mxu0  ;;  %v694_v0 = vpop.f32.mrf.mxu1 }
  0xc7   : >> { %v666_v3 = vadd.f32 %v661_v63, %v639_v62 }
  0xc8   : >> { %2238 = vmatmul.msk.bf16.vlgmr.msrb.gmra.mxu0 %vm250_vm2, %v1728_v1  ;;  %2240 = vmatmul.msk.bf16.vlgmr.msrb.gmra.mxu1 %vm250_vm2, %v1766_v2 }
  0xc9   : >> { %v699_v7 = vadd.f32 %v694_v0, %v666_v3  ;;  %v636_v13 = vpop.f32.mrf.mxu3 }
  0xca   : >> { %v609_v11 = vpop.f32.mrf.mxu2 }
  0xcb   : >> { %v613_v12 = vadd.f32 %v609_v11, %v575_v55 }
  0xcd   : >> { %v640_v17 = vadd.f32 %v636_v13, %v613_v12  ;;  %v663_v18 = vpop.f32.mrf.mxu0  ;;  %v696_v20 = vpop.f32.mrf.mxu1 }
  0xce   : >> { %2244 = vmatmul.msk.bf16.vlgmr.msrb.gmra.mxu3 %vm250_vm2, %v1820_v19 }
  0xcf   : >> { %v667_v23 = vadd.f32 %v663_v18, %v640_v17  ;;  %2242 = vmatmul.msk.bf16.vlgmr.msrb.gmra.mxu2 %vm250_vm2, %v1793_v16 }
  0xd1   : >> { %v700_v24 = vadd.f32 %v696_v20, %v667_v23  ;;  %v766_v29 = vpop.f32.mrf.mxu3 }
  0xd2   : >> { %v730_v27 = vpop.f32.mrf.mxu2 }
  0xd3   : >> { %v735_v28 = vadd.f32 %v730_v27, %v699_v7 }
  0xd5   : >> { %v771_v30 = vadd.f32 %v766_v29, %v735_v28  ;;  %v804_v31 = vpop.f32.mrf.mxu0  ;;  %v842_v32 = vpop.f32.mrf.mxu1 }
  0xd7   : >> { %v809_v34 = vadd.f32 %v804_v31, %v771_v30 }
  0xd8   : >> { %2246 = vmatmul.msk.bf16.vlgmr.msra.gmra.mxu0 %vm250_vm2, %v1853_v33 }
  0xd9   : >> { %v847_v35 = vadd.f32 %v842_v32, %v809_v34  ;;  %v768_v38 = vpop.f32.mrf.mxu3 }
  0xda   : >> { %v732_v36 = vpop.f32.mrf.mxu2 }
  0xdb   : >> { %v736_v37 = vadd.f32 %v732_v36, %v700_v24 }
  0xdd   : >> { %v772_v39 = vadd.f32 %v768_v38, %v736_v37  ;;  %v806_v40 = vpop.f32.mrf.mxu0  ;;  %v844_v41 = vpop.f32.mrf.mxu1 }
  0xdf   : >> { %v810_v42 = vadd.f32 %v806_v40, %v772_v39 }
  0xe1   : >> { %v896_v45 = vpop.f32.mrf.mxu3  ;;  %v848_v57 = vadd.f32 %v844_v41, %v810_v42 }
  0xe2   : >> { %v869_v43 = vpop.f32.mrf.mxu2 }
  0xe3   : >> { %v874_v44 = vadd.f32 %v869_v43, %v847_v35 }
  0xe5   : >> { %v901_v46 = vadd.f32 %v896_v45, %v874_v44  ;;  %v929_v5 = vpop.f32.mrf.mxu0  ;;  %v965_v47 = vpop.f32.mrf.mxu1 }
  0xe7   : >> { %v934_v48 = vadd.f32 %v929_v5, %v901_v46 }
  0xe9   : >> { %v898_v50 = vpop.f32.mrf.mxu3  ;;  %v970_v61 = vadd.f32 %v965_v47, %v934_v48 }
  0xea   : >> { %v871_v49 = vpop.f32.mrf.mxu2 }
  0xeb   : >> { %v875_v58 = vadd.f32 %v871_v49, %v848_v57 }
  0xed   : >> { %v931_v51 = vpop.f32.mrf.mxu0  ;;  %v967_v52 = vpop.f32.mrf.mxu1  ;;  %v902_v62 = vadd.f32 %v898_v50, %v875_v58 }
  0xef   : >> { %v935_v2 = vadd.f32 %v931_v51, %v902_v62 }
  0xf1   : >> { %v1039_v54 = vpop.f32.mrf.mxu3  ;;  %v971_v7 = vadd.f32 %v967_v52, %v935_v2 }
  0xf2   : >> { %v1001_v53 = vpop.f32.mrf.mxu2 }
  0xf3   : >> { %v1006_v1 = vadd.f32 %v1001_v53, %v970_v61 }
  0xf5   : >> { %v1077_v55 = vpop.f32.mrf.mxu0  ;;  %v1104_v56 = vpop.f32.mrf.mxu1  ;;  %v1044_v4 = vadd.f32 %v1039_v54, %v1006_v1 }
  0xf7   : >> { %v1082_v10 = vadd.f32 %v1077_v55, %v1044_v4 }
  0xf9   : >> { %v1041_v60 = vpop.f32.mrf.mxu3  ;;  %v1109_v13 = vadd.f32 %v1104_v56, %v1082_v10 }
  0xfa   : >> { %v1003_v59 = vpop.f32.mrf.mxu2 }
  0xfb   : >> { %v1007_v11 = vadd.f32 %v1003_v59, %v971_v7 }
  0xfd   : >> { %v1079_v63 = vpop.f32.mrf.mxu0  ;;  %v1106_v0 = vpop.f32.mrf.mxu1  ;;  %v1045_v14 = vadd.f32 %v1041_v60, %v1007_v11 }
  0xff   : >> { %v1083_v19 = vadd.f32 %v1079_v63, %v1045_v14 }
 0x101   : >> { %v1164_v6 = vpop.f32.mrf.mxu3  ;;  %v1110_v22 = vadd.f32 %v1106_v0, %v1083_v19 }
 0x102   : >> { %v1131_v3 = vpop.f32.mrf.mxu2 }
 0x103   : >> { %v1136_v16 = vadd.f32 %v1131_v3, %v1109_v13 }
 0x105   : >> { %v1200_v8 = vpop.f32.mrf.mxu0  ;;  %v1236_v9 = vpop.f32.mrf.mxu1  ;;  %v1169_v20 = vadd.f32 %v1164_v6, %v1136_v16 }
 0x107   : >> { %v1205_v24 = vadd.f32 %v1200_v8, %v1169_v20 }
 0x109   : >> { %v1166_v15 = vpop.f32.mrf.mxu3  ;;  %v1241_v28 = vadd.f32 %v1236_v9, %v1205_v24 }
 0x10a   : >> { %v1133_v12 = vpop.f32.mrf.mxu2 }
 0x10b   : >> { %v1137_v26 = vadd.f32 %v1133_v12, %v1110_v22 }
 0x10d   : >> { %v1202_v17 = vpop.f32.mrf.mxu0  ;;  %v1238_v18 = vpop.f32.mrf.mxu1  ;;  %v1170_v29 = vadd.f32 %v1166_v15, %v1137_v26 }
 0x10f   : >> { %v1206_v33 = vadd.f32 %v1202_v17, %v1170_v29 }
 0x111   : >> { %v1312_v23 = vpop.f32.mrf.mxu3  ;;  %v1242_v37 = vadd.f32 %v1238_v18, %v1206_v33 }
 0x112   : >> { %v1274_v21 = vpop.f32.mrf.mxu2 }
 0x113   : >> { %v1279_v31 = vadd.f32 %v1274_v21, %v1241_v28 }
 0x115   : >> { %v1339_v25 = vpop.f32.mrf.mxu0  ;;  %v1366_v27 = vpop.f32.mrf.mxu1  ;;  %v1317_v36 = vadd.f32 %v1312_v23, %v1279_v31 }
 0x117   : >> { %v1344_v39 = vadd.f32 %v1339_v25, %v1317_v36 }
 0x119   : >> { %v1314_v32 = vpop.f32.mrf.mxu3  ;;  %v1371_v44 = vadd.f32 %v1366_v27, %v1344_v39 }
 0x11a   : >> { %v1276_v30 = vpop.f32.mrf.mxu2 }
 0x11b   : >> { %v1280_v40 = vadd.f32 %v1276_v30, %v1242_v37 }
 0x11d   : >> { %v1341_v34 = vpop.f32.mrf.mxu0  ;;  %v1368_v35 = vpop.f32.mrf.mxu1  ;;  %v1318_v45 = vadd.f32 %v1314_v32, %v1280_v40 }
 0x11f   : >> { %v1345_v47 = vadd.f32 %v1341_v34, %v1318_v45 }
 0x121   : >> { %v1435_v41 = vpop.f32.mrf.mxu3  ;;  %v1372_v52 = vadd.f32 %v1368_v35, %v1345_v47  ;;  %v2307_v35 = vld [vmem:[%s2754_s2] ss:$0 sm:$0xff] }
 0x122   : >> { %v1399_v38 = vpop.f32.mrf.mxu2 }
 0x123   : >> { %v1404_v46 = vadd.f32 %v1399_v38, %v1371_v44 }
 0x125   : >> { %v1471_v42 = vpop.f32.mrf.mxu0  ;;  %v1509_v43 = vpop.f32.mrf.mxu1  ;;  %v1440_v49 = vadd.f32 %v1435_v41, %v1404_v46 }
 0x127   : >> { %v1476_v53 = vadd.f32 %v1471_v42, %v1440_v49 }
 0x129   : >> { %v1437_v48 = vpop.f32.mrf.mxu3  ;;  %v1514_v57 = vadd.f32 %v1509_v43, %v1476_v53 }
 0x12a   : >> { %v1401_v5 = vpop.f32.mrf.mxu2 }
 0x12b   : >> { %v1405_v54 = vadd.f32 %v1401_v5, %v1372_v52 }
 0x12d   : >> { %v1473_v50 = vpop.f32.mrf.mxu0  ;;  %v1511_v51 = vpop.f32.mrf.mxu1  ;;  %v1441_v58 = vadd.f32 %v1437_v48, %v1405_v54 }
 0x12f   : >> { %v1477_v62 = vadd.f32 %v1473_v50, %v1441_v58 }
 0x131   : >> { %v1574_v56 = vpop.f32.mrf.mxu3  ;;  %v1515_v2 = vadd.f32 %v1511_v51, %v1477_v62 }
 0x132   : >> { %v1547_v55 = vpop.f32.mrf.mxu2 }
 0x133   : >> { %v1552_v60 = vadd.f32 %v1547_v55, %v1514_v57 }
 0x135   : >> { %v1601_v59 = vpop.f32.mrf.mxu0  ;;  %v1634_v61 = vpop.f32.mrf.mxu1  ;;  %v1579_v0 = vadd.f32 %v1574_v56, %v1552_v60 }
 0x137   : >> { %v1606_v4 = vadd.f32 %v1601_v59, %v1579_v0 }
 0x139   : >> { %v1576_v1 = vpop.f32.mrf.mxu3  ;;  %v1639_v9 = vadd.f32 %v1634_v61, %v1606_v4 }
 0x13a   : >> { %v1549_v63 = vpop.f32.mrf.mxu2 }
 0x13b   : >> { %v1553_v6 = vadd.f32 %v1549_v63, %v1515_v2 }
 0x13d   : >> { %v1603_v3 = vpop.f32.mrf.mxu0  ;;  %v1636_v7 = vpop.f32.mrf.mxu1  ;;  %v1580_v10 = vadd.f32 %v1576_v1, %v1553_v6 }
 0x13f   : >> { %v1607_v14 = vadd.f32 %v1603_v3, %v1580_v10 }
 0x141   : >> { %v1706_v11 = vpop.f32.mrf.mxu3  ;;  %v1640_v17 = vadd.f32 %v1636_v7, %v1607_v14 }
 0x142   : >> { %v1670_v8 = vpop.f32.mrf.mxu2 }
 0x143   : >> { %v1675_v12 = vadd.f32 %v1670_v8, %v1639_v9 }
 0x145   : >> { %v1744_v13 = vpop.f32.mrf.mxu0  ;;  %v1711_v15 = vadd.f32 %v1706_v11, %v1675_v12  ;;  %v1782_v19 = vpop.f32.mrf.mxu1 }
 0x147   : >> { %v1749_v20 = vadd.f32 %v1744_v13, %v1711_v15 }
 0x149   : >> { %v1708_v18 = vpop.f32.mrf.mxu3  ;;  %v1787_v23 = vadd.f32 %v1782_v19, %v1749_v20 }
 0x14a   : >> { %v1672_v16 = vpop.f32.mrf.mxu2 }
 0x14b   : >> { %v1676_v21 = vadd.f32 %v1672_v16, %v1640_v17 }
 0x14d   : >> { %v1746_v22 = vpop.f32.mrf.mxu0  ;;  %v1712_v24 = vadd.f32 %v1708_v18, %v1676_v21  ;;  %v1784_v30 = vpop.f32.mrf.mxu1 }
 0x14f   : >> { %v1750_v28 = vadd.f32 %v1746_v22, %v1712_v24 }
 0x151   : >> { %v1836_v27 = vpop.f32.mrf.mxu3  ;;  %v1788_v32 = vadd.f32 %v1784_v30, %v1750_v28 }
 0x152   : >> { %v1809_v26 = vpop.f32.mrf.mxu2 }
 0x153   : >> { %v1814_v25 = vadd.f32 %v1809_v26, %v1787_v23 }
 0x155   : >> { %v1869_v29 = vpop.f32.mrf.mxu0  ;;  %v1841_v31 = vadd.f32 %v1836_v27, %v1814_v25 }
 0x157   : >> { %v1874_v34 = vadd.f32 %v1869_v29, %v1841_v31 }
 0x159   : >> { %v1838_v37 = vpop.f32.mrf.mxu3  ;;  %v1880_v40 = vadd.f32 %v2307_v35, %v1874_v34 }
 0x15a   : >> { %v1811_v33 = vpop.f32.mrf.mxu2 }
 0x15b   : >> { %v1815_v36 = vadd.f32 %v1811_v33, %v1788_v32  ;;  %v1882_v43 = vmax.f32 %v1880_v40, 0.0 }
 0x15d   : >> { %v1842_v38 = vadd.f32 %v1838_v37, %v1815_v36  ;;  %v1871_v39 = vpop.f32.mrf.mxu0 }
 0x15f   : >> { %v1875_v41 = vadd.f32 %v1871_v39, %v1842_v38 }
 0x161   : >> { %v1881_v42 = vadd.f32 %v2307_v35, %v1875_v41 }
 0x163   : >> { %v1883_v44 = vmax.f32 %v1881_v42, 0.0  ;;  %227 = sbr.rel (!%p225_p5) target bundleno = 16 (0x10), region = 138 }
 0x165   : >> { %v2271_v45 = vpack.c.bf16 %v1883_v44, %v1882_v43 }
 0x167   : >> { %2272 = vst [vmem:[%s1888_s26] sm:$0xff] %v2271_v45  }
 0x168 PF: > { %s13_s14 = sadd.s32 1, %s2334_s14   ;;  %s2756_s12 = smov %s2330_s13 }
 0x169   : > { %p10_p6 = scmp.ge.s32.totalorder %s13_s14, 4   ;;  %s2757_s13 = smov %s2759_s15 }
 0x16b   :  { %12 = sbr.rel (!%p10_p6) target bundleno = 2 (0x2), region = 149 }

// kernel: _lambda_.19
= control target key start
LH: loop header
LB: loop body
LE: loop exit
PB: predicated region body
PF: predicated region fallthrough
CT: control target
= control target key end

     0   :  { %s494_s1 = inlined_call_operand.vmem [shape: bf16[128,128], index: 1, kind: input, shape index: {}]   ;;  %s495_s2 = inlined_call_operand.vmem [shape: f32[1,128], index: 2, kind: input, shape index: {}]   ;;  %s496_s0 = inlined_call_operand.vmem [shape: bf16[128,128], index: 0, kind: input, shape index: {}]   ;;  %s497_s3 = inlined_call_operand.vmem [shape: bf16[128,128], index: 3, kind: output, shape index: {}]  }
   0x1   :  { %v326_v0 = vld [vmem:[%s494_s1 + $0x38] sm:$0xff]  ;;  %v325_v1 = vld [vmem:[%s494_s1 + $0x30] sm:$0xff]  ;;  %v324_v2 = vld [vmem:[%s494_s1 + $0x28] sm:$0xff] }
   0x2   :  { %146 = vmatpush.bf16.msra.mxu0 %v326_v0  ;;  %374 = vmatpush.bf16.msra.mxu1 %v326_v0  ;;  %v323_v3 = vld [vmem:[%s494_s1 + $0x20] sm:$0xff]  ;;  %v322_v4 = vld [vmem:[%s494_s1 + $0x18] sm:$0xff]  ;;  %v321_v5 = vld [vmem:[%s494_s1 + $0x10] sm:$0xff] }
   0x3   :  { %375 = vmatpush.bf16.msra.mxu2 %v326_v0  ;;  %376 = vmatpush.bf16.msra.mxu3 %v326_v0  ;;  %v320_v6 = vld [vmem:[%s494_s1 + $0x8] sm:$0xff]  ;;  %v319_v7 = vld [vmem:[%s494_s1] sm:$0xff]  ;;  %v313_v9 = vld [vmem:[%s496_s0 + $0x10] sm:$0xff] }
   0x4   :  { %v311_v8 = vld [vmem:[%s496_s0] sm:$0xff]  ;;  %v317_v11 = vld [vmem:[%s496_s0 + $0x30] sm:$0xff]  ;;  %v312_v12 = vld [vmem:[%s496_s0 + $0x8] sm:$0xff] }
   0x5   :  { %v315_v10 = vld [vmem:[%s496_s0 + $0x20] sm:$0xff]  ;;  %v314_v13 = vld [vmem:[%s496_s0 + $0x18] sm:$0xff]  ;;  %v316_v14 = vld [vmem:[%s496_s0 + $0x28] sm:$0xff] }
   0x6   :  { %147 = vmatpush.bf16.msra.mxu0 %v325_v1  ;;  %377 = vmatpush.bf16.msra.mxu1 %v325_v1  ;;  %v318_v15 = vld [vmem:[%s496_s0 + $0x38] sm:$0xff]  ;;  %v398_v18 = vld [vmem:[%s495_s2] ss:$0 sm:$0xff] }
   0x7   :  { %378 = vmatpush.bf16.msra.mxu2 %v325_v1  ;;  %379 = vmatpush.bf16.msra.mxu3 %v325_v1 }
   0xa   :  { %148 = vmatpush.bf16.msra.mxu0 %v324_v2  ;;  %380 = vmatpush.bf16.msra.mxu1 %v324_v2 }
   0xb   :  { %381 = vmatpush.bf16.msra.mxu2 %v324_v2  ;;  %382 = vmatpush.bf16.msra.mxu3 %v324_v2 }
   0xe   :  { %149 = vmatpush.bf16.msra.mxu0 %v323_v3  ;;  %383 = vmatpush.bf16.msra.mxu1 %v323_v3 }
   0xf   :  { %384 = vmatpush.bf16.msra.mxu2 %v323_v3  ;;  %385 = vmatpush.bf16.msra.mxu3 %v323_v3 }
  0x12   :  { %150 = vmatpush.bf16.msra.mxu0 %v322_v4  ;;  %386 = vmatpush.bf16.msra.mxu1 %v322_v4 }
  0x13   :  { %387 = vmatpush.bf16.msra.mxu2 %v322_v4  ;;  %388 = vmatpush.bf16.msra.mxu3 %v322_v4 }
  0x16   :  { %151 = vmatpush.bf16.msra.mxu0 %v321_v5  ;;  %389 = vmatpush.bf16.msra.mxu1 %v321_v5 }
  0x17   :  { %390 = vmatpush.bf16.msra.mxu2 %v321_v5  ;;  %391 = vmatpush.bf16.msra.mxu3 %v321_v5 }
  0x1a   :  { %152 = vmatpush.bf16.msra.mxu0 %v320_v6  ;;  %392 = vmatpush.bf16.msra.mxu1 %v320_v6 }
  0x1b   :  { %393 = vmatpush.bf16.msra.mxu2 %v320_v6  ;;  %394 = vmatpush.bf16.msra.mxu3 %v320_v6 }
  0x1e   :  { %153 = vmatpush.bf16.msra.mxu0 %v319_v7  ;;  %395 = vmatpush.bf16.msra.mxu1 %v319_v7 }
  0x1f   :  { %396 = vmatpush.bf16.msra.mxu2 %v319_v7  ;;  %397 = vmatpush.bf16.msra.mxu3 %v319_v7 }
  0x21   :  { %154 = vmatmul.bf16.vlgmr.msra.gmra.mxu0 %v311_v8  ;;  %164 = vmatmul.bf16.vlgmr.msra.gmra.mxu1 %v313_v9 }
  0x22   :  { %174 = vmatmul.bf16.vlgmr.msra.gmra.mxu2 %v315_v10  ;;  %184 = vmatmul.bf16.vlgmr.msra.gmra.mxu3 %v317_v11 }
  0x31   :  { %159 = vmatmul.bf16.gmra.mxu0 %v312_v12  ;;  %169 = vmatmul.bf16.gmra.mxu1 %v314_v13 }
  0x32   :  { %179 = vmatmul.bf16.gmra.mxu2 %v316_v14  ;;  %189 = vmatmul.bf16.gmra.mxu3 %v318_v15 }
  0x9e   :  { %v155_v16 = vpop.f32.mrf.mxu0  ;;  %v165_v17 = vpop.f32.mrf.mxu1 }
  0x9f   :  { %v156_v19 = vadd.f32 %v398_v18, %v155_v16  ;;  %v166_v20 = vadd.f32 %v398_v18, %v165_v17 }
  0xa1   :  { %v195_v27 = vmax.f32 %v156_v19, 0.0  ;;  %v199_v28 = vmax.f32 %v166_v20, 0.0 }
  0xa5   :  { %v175_v21 = vpop.f32.mrf.mxu2  ;;  %v185_v22 = vpop.f32.mrf.mxu3 }
  0xa6   :  { %v157_v23 = vpop.f32.mrf.mxu0  ;;  %v167_v24 = vpop.f32.mrf.mxu1  ;;  %v176_v33 = vadd.f32 %v398_v18, %v175_v21  ;;  %v186_v34 = vadd.f32 %v398_v18, %v185_v22 }
  0xa7   :  { %v158_v25 = vadd.f32 %v398_v18, %v157_v23  ;;  %v168_v26 = vadd.f32 %v398_v18, %v167_v24 }
  0xa8   :  { %v203_v41 = vmax.f32 %v176_v33, 0.0  ;;  %v207_v42 = vmax.f32 %v186_v34, 0.0 }
  0xa9   :  { %v196_v29 = vmax.f32 %v158_v25, 0.0  ;;  %v200_v30 = vmax.f32 %v168_v26, 0.0 }
  0xab   :  { %v330_v31 = vpack.c.bf16 %v196_v29, %v195_v27  ;;  %v340_v32 = vpack.c.bf16 %v200_v30, %v199_v28 }
  0xad   :  { %331 = vst [vmem:[%s497_s3] sm:$0xff] %v330_v31   ;;  %v177_v35 = vpop.f32.mrf.mxu2  ;;  %v187_v36 = vpop.f32.mrf.mxu3 }
  0xae   :  { %368 = vst [vmem:[%s497_s3 + $0x10] sm:$0xff] %v340_v32   ;;  %v178_v37 = vadd.f32 %v398_v18, %v177_v35  ;;  %v188_v38 = vadd.f32 %v398_v18, %v187_v36  ;;  %v160_v39 = vpop.f32.mrf.mxu0  ;;  %v170_v40 = vpop.f32.mrf.mxu1 }
  0xaf   :  { %v161_v47 = vadd.f32 %v398_v18, %v160_v39  ;;  %v171_v48 = vadd.f32 %v398_v18, %v170_v40 }
  0xb0   :  { %v204_v43 = vmax.f32 %v178_v37, 0.0  ;;  %v208_v44 = vmax.f32 %v188_v38, 0.0 }
  0xb1   :  { %v197_v55 = vmax.f32 %v161_v47, 0.0  ;;  %v201_v56 = vmax.f32 %v171_v48, 0.0 }
  0xb2   :  { %v350_v45 = vpack.c.bf16 %v204_v43, %v203_v41  ;;  %v360_v46 = vpack.c.bf16 %v208_v44, %v207_v42 }
  0xb4   :  { %370 = vst [vmem:[%s497_s3 + $0x20] sm:$0xff] %v350_v45  }
  0xb5   :  { %372 = vst [vmem:[%s497_s3 + $0x30] sm:$0xff] %v360_v46   ;;  %v180_v49 = vpop.f32.mrf.mxu2  ;;  %v190_v50 = vpop.f32.mrf.mxu3 }
  0xb6   :  { %v162_v51 = vpop.f32.mrf.mxu0  ;;  %v172_v52 = vpop.f32.mrf.mxu1  ;;  %v181_v61 = vadd.f32 %v398_v18, %v180_v49  ;;  %v191_v62 = vadd.f32 %v398_v18, %v190_v50 }
  0xb7   :  { %v163_v53 = vadd.f32 %v398_v18, %v162_v51  ;;  %v173_v54 = vadd.f32 %v398_v18, %v172_v52 }
  0xb8   :  { %v205_v3 = vmax.f32 %v181_v61, 0.0  ;;  %v209_v4 = vmax.f32 %v191_v62, 0.0 }
  0xb9   :  { %v198_v57 = vmax.f32 %v163_v53, 0.0  ;;  %v202_v58 = vmax.f32 %v173_v54, 0.0 }
  0xbb   :  { %v335_v59 = vpack.c.bf16 %v198_v57, %v197_v55  ;;  %v345_v60 = vpack.c.bf16 %v202_v58, %v201_v56 }
  0xbd   :  { %367 = vst [vmem:[%s497_s3 + $0x8] sm:$0xff] %v335_v59   ;;  %v182_v63 = vpop.f32.mrf.mxu2  ;;  %v192_v0 = vpop.f32.mrf.mxu3 }
  0xbe   :  { %369 = vst [vmem:[%s497_s3 + $0x18] sm:$0xff] %v345_v60   ;;  %v183_v1 = vadd.f32 %v398_v18, %v182_v63  ;;  %v193_v2 = vadd.f32 %v398_v18, %v192_v0 }
  0xc0   :  { %v206_v5 = vmax.f32 %v183_v1, 0.0  ;;  %v210_v6 = vmax.f32 %v193_v2, 0.0 }
  0xc2   :  { %v355_v7 = vpack.c.bf16 %v206_v5, %v205_v3  ;;  %v365_v8 = vpack.c.bf16 %v210_v6, %v209_v4 }
  0xc4   :  { %371 = vst [vmem:[%s497_s3 + $0x28] sm:$0xff] %v355_v7  }
  0xc5   :  { %373 = vst [vmem:[%s497_s3 + $0x38] sm:$0xff] %v365_v8  }

// kernel: _lambda_.21
= control target key start
LH: loop header
LB: loop body
LE: loop exit
PB: predicated region body
PF: predicated region fallthrough
CT: control target
= control target key end

     0   :  { %s631_s1 = inlined_call_operand.vmem [shape: bf16[128,128], index: 1, kind: input, shape index: {}]   ;;  %s632_s2 = inlined_call_operand.vmem [shape: f32[1,128], index: 2, kind: input, shape index: {}]   ;;  %s633_s0 = inlined_call_operand.vmem [shape: bf16[128,128], index: 0, kind: input, shape index: {}]   ;;  %s634_s3 = inlined_call_operand.vmem [shape: bf16[128,128], index: 3, kind: input, shape index: {}]   ;;  %s635_s4 = inlined_call_operand.vmem [shape: bf16[128,128], index: 4, kind: output, shape index: {}]  }
   0x1   :  { %v377_v0 = vld [vmem:[%s631_s1 + $0x38] sm:$0xff]  ;;  %v376_v1 = vld [vmem:[%s631_s1 + $0x30] sm:$0xff]  ;;  %v375_v2 = vld [vmem:[%s631_s1 + $0x28] sm:$0xff] }
   0x2   :  { %149 = vmatpush.bf16.msra.mxu0 %v377_v0  ;;  %464 = vmatpush.bf16.msra.mxu1 %v377_v0  ;;  %v374_v3 = vld [vmem:[%s631_s1 + $0x20] sm:$0xff]  ;;  %v373_v4 = vld [vmem:[%s631_s1 + $0x18] sm:$0xff]  ;;  %v372_v5 = vld [vmem:[%s631_s1 + $0x10] sm:$0xff] }
   0x3   :  { %465 = vmatpush.bf16.msra.mxu2 %v377_v0  ;;  %466 = vmatpush.bf16.msra.mxu3 %v377_v0  ;;  %v371_v6 = vld [vmem:[%s631_s1 + $0x8] sm:$0xff]  ;;  %v370_v7 = vld [vmem:[%s631_s1] sm:$0xff]  ;;  %v364_v9 = vld [vmem:[%s633_s0 + $0x10] sm:$0xff] }
   0x4   :  { %v362_v8 = vld [vmem:[%s633_s0] sm:$0xff]  ;;  %v368_v11 = vld [vmem:[%s633_s0 + $0x30] sm:$0xff]  ;;  %v363_v12 = vld [vmem:[%s633_s0 + $0x8] sm:$0xff] }
   0x5   :  { %v366_v10 = vld [vmem:[%s633_s0 + $0x20] sm:$0xff]  ;;  %v365_v13 = vld [vmem:[%s633_s0 + $0x18] sm:$0xff]  ;;  %v367_v14 = vld [vmem:[%s633_s0 + $0x28] sm:$0xff] }
   0x6   :  { %150 = vmatpush.bf16.msra.mxu0 %v376_v1  ;;  %467 = vmatpush.bf16.msra.mxu1 %v376_v1  ;;  %v369_v15 = vld [vmem:[%s633_s0 + $0x38] sm:$0xff]  ;;  %v565_v18 = vld [vmem:[%s632_s2] ss:$0 sm:$0xff]  ;;  %v451_v20 = vld [vmem:[%s634_s3 + $0x10] sm:$0xff]  }
   0x7   :  { %468 = vmatpush.bf16.msra.mxu2 %v376_v1  ;;  %469 = vmatpush.bf16.msra.mxu3 %v376_v1  ;;  %v379_v19 = vld [vmem:[%s634_s3] sm:$0xff]   ;;  %v388_v24 = vunpack.c.l.bf16 %v451_v20  ;;  %v389_v28 = vunpack.c.h.bf16 %v451_v20  ;;  %v455_v34 = vld [vmem:[%s634_s3 + $0x30] sm:$0xff]   ;;  %v450_v61 = vld [vmem:[%s634_s3 + $0x8] sm:$0xff]  }
   0x8   :  { %v380_v22 = vunpack.c.l.bf16 %v379_v19  ;;  %v381_v27 = vunpack.c.h.bf16 %v379_v19  ;;  %v453_v33 = vld [vmem:[%s634_s3 + $0x20] sm:$0xff]   ;;  %v404_v42 = vunpack.c.l.bf16 %v455_v34  ;;  %v405_v48 = vunpack.c.h.bf16 %v455_v34  ;;  %v452_v62 = vld [vmem:[%s634_s3 + $0x18] sm:$0xff]  }
   0x9   :  { %v396_v40 = vunpack.c.l.bf16 %v453_v33  ;;  %v397_v47 = vunpack.c.h.bf16 %v453_v33  ;;  %v456_v19 = vld [vmem:[%s634_s3 + $0x38] sm:$0xff]  }
   0xa   :  { %151 = vmatpush.bf16.msra.mxu0 %v375_v2  ;;  %470 = vmatpush.bf16.msra.mxu1 %v375_v2  ;;  %v409_v33 = vunpack.c.h.bf16 %v456_v19 }
   0xb   :  { %471 = vmatpush.bf16.msra.mxu2 %v375_v2  ;;  %472 = vmatpush.bf16.msra.mxu3 %v375_v2 }
   0xe   :  { %152 = vmatpush.bf16.msra.mxu0 %v374_v3  ;;  %473 = vmatpush.bf16.msra.mxu1 %v374_v3 }
   0xf   :  { %474 = vmatpush.bf16.msra.mxu2 %v374_v3  ;;  %475 = vmatpush.bf16.msra.mxu3 %v374_v3 }
  0x12   :  { %153 = vmatpush.bf16.msra.mxu0 %v373_v4  ;;  %476 = vmatpush.bf16.msra.mxu1 %v373_v4 }
  0x13   :  { %477 = vmatpush.bf16.msra.mxu2 %v373_v4  ;;  %478 = vmatpush.bf16.msra.mxu3 %v373_v4  ;;  %v384_v4 = vunpack.c.l.bf16 %v450_v61 }
  0x16   :  { %154 = vmatpush.bf16.msra.mxu0 %v372_v5  ;;  %479 = vmatpush.bf16.msra.mxu1 %v372_v5 }
  0x17   :  { %480 = vmatpush.bf16.msra.mxu2 %v372_v5  ;;  %481 = vmatpush.bf16.msra.mxu3 %v372_v5 }
  0x1a   :  { %155 = vmatpush.bf16.msra.mxu0 %v371_v6  ;;  %482 = vmatpush.bf16.msra.mxu1 %v371_v6 }
  0x1b   :  { %483 = vmatpush.bf16.msra.mxu2 %v371_v6  ;;  %484 = vmatpush.bf16.msra.mxu3 %v371_v6  ;;  %v392_v6 = vunpack.c.l.bf16 %v452_v62 }
  0x1e   :  { %156 = vmatpush.bf16.msra.mxu0 %v370_v7  ;;  %485 = vmatpush.bf16.msra.mxu1 %v370_v7 }
  0x1f   :  { %486 = vmatpush.bf16.msra.mxu2 %v370_v7  ;;  %487 = vmatpush.bf16.msra.mxu3 %v370_v7 }
  0x21   :  { %157 = vmatmul.bf16.vlgmr.msra.gmra.mxu0 %v362_v8  ;;  %167 = vmatmul.bf16.vlgmr.msra.gmra.mxu1 %v364_v9 }
  0x22   :  { %177 = vmatmul.bf16.vlgmr.msra.gmra.mxu2 %v366_v10  ;;  %187 = vmatmul.bf16.vlgmr.msra.gmra.mxu3 %v368_v11  ;;  %v385_v11 = vunpack.c.h.bf16 %v450_v61 }
  0x31   :  { %162 = vmatmul.bf16.gmra.mxu0 %v363_v12  ;;  %172 = vmatmul.bf16.gmra.mxu1 %v365_v13  ;;  %v393_v12 = vunpack.c.h.bf16 %v452_v62 }
  0x32   :  { %182 = vmatmul.bf16.gmra.mxu2 %v367_v14  ;;  %192 = vmatmul.bf16.gmra.mxu3 %v369_v15 }
  0x9e   :  { %v158_v16 = vpop.f32.mrf.mxu0  ;;  %v168_v17 = vpop.f32.mrf.mxu1 }
  0x9f   :  { %v159_v21 = vadd.f32 %v565_v18, %v158_v16  ;;  %v169_v23 = vadd.f32 %v565_v18, %v168_v17  ;;  %v454_v17 = vld [vmem:[%s634_s3 + $0x28] sm:$0xff]  }
  0xa1   :  { %v230_v31 = vadd.f32 %v380_v22, %v159_v21  ;;  %v234_v32 = vadd.f32 %v388_v24, %v169_v23 }
  0xa3   :  { %v246_v43 = vmax.f32 %v230_v31, 0.0  ;;  %v250_v44 = vmax.f32 %v234_v32, 0.0  ;;  %v401_v32 = vunpack.c.h.bf16 %v454_v17 }
  0xa5   :  { %v178_v25 = vpop.f32.mrf.mxu2  ;;  %v188_v26 = vpop.f32.mrf.mxu3 }
  0xa6   :  { %v160_v29 = vpop.f32.mrf.mxu0  ;;  %v170_v30 = vpop.f32.mrf.mxu1  ;;  %v179_v39 = vadd.f32 %v565_v18, %v178_v25  ;;  %v189_v41 = vadd.f32 %v565_v18, %v188_v26  ;;  %v400_v25 = vunpack.c.l.bf16 %v454_v17 }
  0xa7   :  { %v161_v35 = vadd.f32 %v565_v18, %v160_v29  ;;  %v171_v36 = vadd.f32 %v565_v18, %v170_v30 }
  0xa8   :  { %v238_v53 = vadd.f32 %v396_v40, %v179_v39  ;;  %v242_v54 = vadd.f32 %v404_v42, %v189_v41 }
  0xa9   :  { %v231_v37 = vadd.f32 %v381_v27, %v161_v35  ;;  %v235_v38 = vadd.f32 %v389_v28, %v171_v36  ;;  %v408_v27 = vunpack.c.l.bf16 %v456_v19 }
  0xaa   :  { %v254_v63 = vmax.f32 %v238_v53, 0.0  ;;  %v258_v0 = vmax.f32 %v242_v54, 0.0 }
  0xab   :  { %v247_v45 = vmax.f32 %v231_v37, 0.0  ;;  %v251_v46 = vmax.f32 %v235_v38, 0.0 }
  0xad   :  { %v413_v49 = vpack.c.bf16 %v247_v45, %v246_v43  ;;  %v423_v50 = vpack.c.bf16 %v251_v46, %v250_v44  ;;  %v180_v51 = vpop.f32.mrf.mxu2  ;;  %v190_v52 = vpop.f32.mrf.mxu3 }
  0xae   :  { %v181_v55 = vadd.f32 %v565_v18, %v180_v51  ;;  %v191_v56 = vadd.f32 %v565_v18, %v190_v52  ;;  %v163_v57 = vpop.f32.mrf.mxu0  ;;  %v173_v58 = vpop.f32.mrf.mxu1 }
  0xaf   :  { %414 = vst [vmem:[%s635_s4] sm:$0xff] %v413_v49   ;;  %v164_v3 = vadd.f32 %v565_v18, %v163_v57  ;;  %v174_v5 = vadd.f32 %v565_v18, %v173_v58 }
  0xb0   :  { %458 = vst [vmem:[%s635_s4 + $0x10] sm:$0xff] %v423_v50   ;;  %v239_v59 = vadd.f32 %v397_v47, %v181_v55  ;;  %v243_v60 = vadd.f32 %v405_v48, %v191_v56 }
  0xb1   :  { %v232_v15 = vadd.f32 %v384_v4, %v164_v3  ;;  %v236_v16 = vadd.f32 %v392_v6, %v174_v5 }
  0xb2   :  { %v255_v1 = vmax.f32 %v239_v59, 0.0  ;;  %v259_v2 = vmax.f32 %v243_v60, 0.0 }
  0xb3   :  { %v248_v28 = vmax.f32 %v232_v15, 0.0  ;;  %v252_v29 = vmax.f32 %v236_v16, 0.0 }
  0xb4   :  { %v433_v7 = vpack.c.bf16 %v255_v1, %v254_v63  ;;  %v443_v8 = vpack.c.bf16 %v259_v2, %v258_v0 }
  0xb5   :  { %v183_v9 = vpop.f32.mrf.mxu2  ;;  %v193_v10 = vpop.f32.mrf.mxu3 }
  0xb6   :  { %460 = vst [vmem:[%s635_s4 + $0x20] sm:$0xff] %v433_v7   ;;  %v165_v13 = vpop.f32.mrf.mxu0  ;;  %v175_v14 = vpop.f32.mrf.mxu1  ;;  %v184_v24 = vadd.f32 %v565_v18, %v183_v9  ;;  %v194_v26 = vadd.f32 %v565_v18, %v193_v10 }
  0xb7   :  { %462 = vst [vmem:[%s635_s4 + $0x30] sm:$0xff] %v443_v8   ;;  %v166_v20 = vadd.f32 %v565_v18, %v165_v13  ;;  %v176_v21 = vadd.f32 %v565_v18, %v175_v14 }
  0xb8   :  { %v240_v38 = vadd.f32 %v400_v25, %v184_v24  ;;  %v244_v39 = vadd.f32 %v408_v27, %v194_v26 }
  0xb9   :  { %v233_v22 = vadd.f32 %v385_v11, %v166_v20  ;;  %v237_v23 = vadd.f32 %v393_v12, %v176_v21 }
  0xba   :  { %v256_v44 = vmax.f32 %v240_v38, 0.0  ;;  %v260_v45 = vmax.f32 %v244_v39, 0.0 }
  0xbb   :  { %v249_v30 = vmax.f32 %v233_v22, 0.0  ;;  %v253_v31 = vmax.f32 %v237_v23, 0.0 }
  0xbd   :  { %v418_v34 = vpack.c.bf16 %v249_v30, %v248_v28  ;;  %v428_v35 = vpack.c.bf16 %v253_v31, %v252_v29  ;;  %v185_v36 = vpop.f32.mrf.mxu2  ;;  %v195_v37 = vpop.f32.mrf.mxu3 }
  0xbe   :  { %v186_v40 = vadd.f32 %v565_v18, %v185_v36  ;;  %v196_v41 = vadd.f32 %v565_v18, %v195_v37 }
  0xbf   :  { %457 = vst [vmem:[%s635_s4 + $0x8] sm:$0xff] %v418_v34  }
  0xc0   :  { %459 = vst [vmem:[%s635_s4 + $0x18] sm:$0xff] %v428_v35   ;;  %v241_v42 = vadd.f32 %v401_v32, %v186_v40  ;;  %v245_v43 = vadd.f32 %v409_v33, %v196_v41 }
  0xc2   :  { %v257_v46 = vmax.f32 %v241_v42, 0.0  ;;  %v261_v47 = vmax.f32 %v245_v43, 0.0 }
  0xc4   :  { %v438_v48 = vpack.c.bf16 %v257_v46, %v256_v44  ;;  %v448_v49 = vpack.c.bf16 %v261_v47, %v260_v45 }
  0xc6   :  { %461 = vst [vmem:[%s635_s4 + $0x28] sm:$0xff] %v438_v48  }
  0xc7   :  { %463 = vst [vmem:[%s635_s4 + $0x38] sm:$0xff] %v448_v49  }

// kernel: _lambda_.26
= control target key start
LH: loop header
LB: loop body
LE: loop exit
PB: predicated region body
PF: predicated region fallthrough
CT: control target
= control target key end

     0   :  { %s262_s1 = inlined_call_operand.vmem [shape: bf16[128,128], index: 1, kind: input, shape index: {}]   ;;  %s263_s2 = inlined_call_operand.vmem [shape: f32[1,128], index: 2, kind: input, shape index: {}]   ;;  %s264_s0 = inlined_call_operand.vmem [shape: bf16[32,128], index: 0, kind: input, shape index: {}]   ;;  %s265_s3 = inlined_call_operand.vmem [shape: bf16[32,128], index: 3, kind: output, shape index: {}]  }
   0x1   :  { %v182_v0 = vld [vmem:[%s262_s1 + $0x38] sm:$0xff]  ;;  %v181_v1 = vld [vmem:[%s262_s1 + $0x30] sm:$0xff]  ;;  %v180_v2 = vld [vmem:[%s262_s1 + $0x28] sm:$0xff] }
   0x2   :  { %98 = vmatpush.bf16.msra.mxu0 %v182_v0  ;;  %194 = vmatpush.bf16.msra.mxu1 %v182_v0  ;;  %v179_v3 = vld [vmem:[%s262_s1 + $0x20] sm:$0xff]  ;;  %v178_v4 = vld [vmem:[%s262_s1 + $0x18] sm:$0xff]  ;;  %v177_v5 = vld [vmem:[%s262_s1 + $0x10] sm:$0xff] }
   0x3   :  { %v176_v6 = vld [vmem:[%s262_s1 + $0x8] sm:$0xff]  ;;  %v175_v7 = vld [vmem:[%s262_s1] sm:$0xff] }
   0x4   :  { %v173_v8 = vld [vmem:[%s264_s0] sm:$0xff]  ;;  %v174_v9 = vld [vmem:[%s264_s0 + $0x8] sm:$0xff] }
   0x5   :  { %v202_v12 = vld [vmem:[%s263_s2] ss:$0 sm:$0xff] }
   0x6   :  { %99 = vmatpush.bf16.msra.mxu0 %v181_v1  ;;  %195 = vmatpush.bf16.msra.mxu1 %v181_v1 }
   0xa   :  { %100 = vmatpush.bf16.msra.mxu0 %v180_v2  ;;  %196 = vmatpush.bf16.msra.mxu1 %v180_v2 }
   0xe   :  { %101 = vmatpush.bf16.msra.mxu0 %v179_v3  ;;  %197 = vmatpush.bf16.msra.mxu1 %v179_v3 }
  0x12   :  { %102 = vmatpush.bf16.msra.mxu0 %v178_v4  ;;  %198 = vmatpush.bf16.msra.mxu1 %v178_v4 }
  0x16   :  { %103 = vmatpush.bf16.msra.mxu0 %v177_v5  ;;  %199 = vmatpush.bf16.msra.mxu1 %v177_v5 }
  0x1a   :  { %104 = vmatpush.bf16.msra.mxu0 %v176_v6  ;;  %200 = vmatpush.bf16.msra.mxu1 %v176_v6 }
  0x1e   :  { %105 = vmatpush.bf16.msra.mxu0 %v175_v7  ;;  %201 = vmatpush.bf16.msra.mxu1 %v175_v7 }
  0x21   :  { %106 = vmatmul.bf16.vlgmr.msra.gmra.mxu0 %v173_v8  ;;  %111 = vmatmul.bf16.vlgmr.msra.gmra.mxu1 %v174_v9 }
  0x9e   :  { %v107_v10 = vpop.f32.mrf.mxu0  ;;  %v112_v11 = vpop.f32.mrf.mxu1 }
  0x9f   :  { %v108_v13 = vadd.f32 %v202_v12, %v107_v10  ;;  %v113_v14 = vadd.f32 %v202_v12, %v112_v11 }
  0xa1   :  { %v117_v19 = vmax.f32 %v108_v13, 0.0  ;;  %v119_v20 = vmax.f32 %v113_v14, 0.0 }
  0xa6   :  { %v109_v15 = vpop.f32.mrf.mxu0  ;;  %v114_v16 = vpop.f32.mrf.mxu1 }
  0xa7   :  { %v110_v17 = vadd.f32 %v202_v12, %v109_v15  ;;  %v115_v18 = vadd.f32 %v202_v12, %v114_v16 }
  0xa9   :  { %v118_v21 = vmax.f32 %v110_v17, 0.0  ;;  %v120_v22 = vmax.f32 %v115_v18, 0.0 }
  0xab   :  { %v186_v23 = vpack.c.bf16 %v118_v21, %v117_v19  ;;  %v191_v24 = vpack.c.bf16 %v120_v22, %v119_v20 }
  0xad   :  { %187 = vst [vmem:[%s265_s3] sm:$0xff] %v186_v23  }
  0xae   :  { %193 = vst [vmem:[%s265_s3 + $0x8] sm:$0xff] %v191_v24  }

// kernel: _lambda_.20
= control target key start
LH: loop header
LB: loop body
LE: loop exit
PB: predicated region body
PF: predicated region fallthrough
CT: control target
= control target key end

     0   :  { %s1740_s12 = smov 0   ;;  %s1742_s13 = smov 0   ;;  %s2019_s0 = inlined_call_operand.vmem [shape: bf16[2,10,10,128], index: 0, kind: input, shape index: {}]   ;;  %s2020_s1 = inlined_call_operand.vmem [shape: bf16[9,128,128], index: 1, kind: input, shape index: {}]   ;;  %s2021_s2 = inlined_call_operand.vmem [shape: f32[1,128], index: 2, kind: input, shape index: {}]   ;;  %s2022_s3 = inlined_call_operand.vmem [shape: bf16[2,8,8,128], index: 3, kind: output, shape index: {}]  }
   0x1   :  { %s1744_s14 = smov 0  }
   0x2 LB: > { %s25_s15 = sadd.s32 1, %s1710_s13  ;;  %p1134_p0 = scmp.ge.s32.totalorder %s1714_s14, 1  ;;  %s1714_s14 = sphi %s1744_s14, %s13_s14   ;;  %s1710_s13 = sphi %s1742_s13, %s2024_s13   ;;  %s1706_s12 = sphi %s1740_s12, %s2023_s12  }
   0x3   : > { %p27_p1 = scmp.ge.s32.totalorder %s25_s15, 2  ;;  %p168_p2 = scmp.lt.s32.totalorder %s1714_s14, 3 }
   0x5   : > { %s2026_s15 = smov (%p27_p1, %s25_s15), 0  ;;  %p169_p3 = pnand %p1134_p0, %p168_p2 }
   0x6   : > { %p202_p4 = scmp.lt.s32.totalorder (!%p169_p3), %s1706_s12, 1  ;;  %s1768_s24 = smov (!%p169_p3), 0  }
   0x7   : > { %172 = sbr.rel (%p169_p3) target bundleno = 247 (0xf7), region = 32 }
   0xc   : > { %s2028_s12 = smov (!%p202_p4, %s1706_s12), 1 }
   0xd   : > { %s1654_s16 = smul.u32 80, %s2028_s12  ;;  %s1577_s17 = sshll.u32 %s2028_s12, 5 }
   0xe   : > { %s1761_s20 = scalar_lea.vmem %s2022_s3, %s1577_s17 }
   0xf   : > { %s1766_s23 = scalar_lea.vmem %s2019_s0, %s1654_s16 }
  0x10 LB: >> { %v1595_v0 = vld [vmem:[%s2020_s1 + $0x78] sm:$0xff]  ;;  %v1594_v4 = vld [vmem:[%s2020_s1 + $0x70] sm:$0xff]  ;;  %v1593_v8 = vld [vmem:[%s2020_s1 + $0x68] sm:$0xff]  ;;  %s1578_s28 = sshll.u32 %s1718_s24, 3  ;;  %s1574_s30 = sshll.u32 %s1718_s24, 2  ;;  %s1718_s24 = sphi %s1768_s24, %s227_s24  }
  0x11   : >> { %v1603_v1 = vld [vmem:[%s2020_s1 + $0xb8] sm:$0xff]  ;;  %327 = vmatpush.bf16.msra.mxu0 %v1595_v0  ;;  %v1602_v5 = vld [vmem:[%s2020_s1 + $0xb0] sm:$0xff]  ;;  %v1601_v9 = vld [vmem:[%s2020_s1 + $0xa8] sm:$0xff]  ;;  %s1823_s10 = scalar_lea.vmem %s1766_s23, %s1578_s28  ;;  %s1006_s4 = scalar_lea.vmem %s1761_s20, %s1574_s30 }
  0x12   : >> { %v1612_v2 = vld [vmem:[%s2020_s1 + $0xf8] sm:$0xff]  ;;  %468 = vmatpush.bf16.msra.mxu2 %v1603_v1  ;;  %v1611_v6 = vld [vmem:[%s2020_s1 + $0xf0] sm:$0xff]  ;;  %v1610_v10 = vld [vmem:[%s2020_s1 + $0xe8] sm:$0xff]  ;;  %s227_s24 = sadd.s32 1, %s1718_s24  }
  0x13   : >> { %v1587_v3 = vld [vmem:[%s2020_s1 + $0x38] sm:$0xff]  ;;  %553 = vmatpush.bf16.msra.mxu3 %v1612_v2  ;;  %v1586_v7 = vld [vmem:[%s2020_s1 + $0x30] sm:$0xff]  ;;  %v1585_v11 = vld [vmem:[%s2020_s1 + $0x28] sm:$0xff]  ;;  %p224_p5 = scmp.ge.s32.totalorder %s227_s24, 8  }
  0x14   : >> { %388 = vmatpush.bf16.msra.mxu1 %v1587_v3  ;;  %v1592_v12 = vld [vmem:[%s2020_s1 + $0x60] sm:$0xff]  ;;  %v1591_v16 = vld [vmem:[%s2020_s1 + $0x58] sm:$0xff]  ;;  %v1590_v22 = vld [vmem:[%s2020_s1 + $0x50] sm:$0xff] }
  0x15   : >> { %328 = vmatpush.bf16.msra.mxu0 %v1594_v4  ;;  %v1600_v13 = vld [vmem:[%s2020_s1 + $0xa0] sm:$0xff]  ;;  %v1599_v17 = vld [vmem:[%s2020_s1 + $0x98] sm:$0xff]  ;;  %v1598_v23 = vld [vmem:[%s2020_s1 + $0x90] sm:$0xff] }
  0x16   : >> { %469 = vmatpush.bf16.msra.mxu2 %v1602_v5  ;;  %v1609_v14 = vld [vmem:[%s2020_s1 + $0xe0] sm:$0xff]  ;;  %v1608_v18 = vld [vmem:[%s2020_s1 + $0xd8] sm:$0xff]  ;;  %v1607_v25 = vld [vmem:[%s2020_s1 + $0xd0] sm:$0xff] }
  0x17   : >> { %554 = vmatpush.bf16.msra.mxu3 %v1611_v6  ;;  %v1584_v15 = vld [vmem:[%s2020_s1 + $0x20] sm:$0xff]  ;;  %v1583_v19 = vld [vmem:[%s2020_s1 + $0x18] sm:$0xff]  ;;  %v1582_v26 = vld [vmem:[%s2020_s1 + $0x10] sm:$0xff] }
  0x18   : >> { %389 = vmatpush.bf16.msra.mxu1 %v1586_v7  ;;  %v1158_v20 = vld [vmem:[%s1823_s10] sm:$0xf]  ;;  %v1579_v21 = vld [vmem:[%s1823_s10] sm:$0x10]  ;;  %v1589_v27 = vld [vmem:[%s2020_s1 + $0x48] sm:$0xff] }
  0x19   : >> { %329 = vmatpush.bf16.msra.mxu0 %v1593_v8  ;;  %v1159_v24 = vor.u32 %v1579_v21, %v1158_v20  ;;  %v1597_v28 = vld [vmem:[%s2020_s1 + $0x88] sm:$0xff]  ;;  %v1588_v32 = vld [vmem:[%s2020_s1 + $0x40] sm:$0xff]  ;;  %v1620_v36 = vld [vmem:[%s2020_s1 + $0x138] sm:$0xff] }
  0x1a   : >> { %470 = vmatpush.bf16.msra.mxu2 %v1601_v9  ;;  %v1606_v30 = vld [vmem:[%s2020_s1 + $0xc8] sm:$0xff]  ;;  %v1596_v33 = vld [vmem:[%s2020_s1 + $0x80] sm:$0xff]  ;;  %v1637_v37 = vld [vmem:[%s2020_s1 + $0x1b8] sm:$0xff] }
  0x1b   : >> { %555 = vmatpush.bf16.msra.mxu3 %v1610_v10  ;;  %v274_v29 = vshll.u32 %v1159_v24, 16  ;;  %v1581_v31 = vld [vmem:[%s2020_s1 + $0x8] sm:$0xff]  ;;  %v272_v34 = vshrl.u32 %v1159_v24, 16  ;;  %v1605_v38 = vld [vmem:[%s2020_s1 + $0xc0] sm:$0xff]  ;;  %v1645_v40 = vld [vmem:[%s2020_s1 + $0x1f8] sm:$0xff]  ;;  %v418_v42 = vrot.slane %v1159_v24, 1 }
  0x1c   : >> { %390 = vmatpush.bf16.msra.mxu1 %v1585_v11  ;;  %v1580_v39 = vld [vmem:[%s2020_s1] sm:$0xff]  ;;  %v1628_v41 = vld [vmem:[%s2020_s1 + $0x178] sm:$0xff]  ;;  %v1619_v44 = vld [vmem:[%s2020_s1 + $0x130] sm:$0xff] }
  0x1d   : >> { %330 = vmatpush.bf16.msra.mxu0 %v1592_v12  ;;  %v276_v35 = vrot.slane %v274_v29, 1  ;;  %v1636_v45 = vld [vmem:[%s2020_s1 + $0x1b0] sm:$0xff]  ;;  %v1273_v48 = vld [vmem:[%s1823_s10 + $0x8] sm:$0xf]  ;;  %v231_v49 = vld [vmem:[%s1823_s10] sm:$0xf] }
  0x1e   : >> { %471 = vmatpush.bf16.msra.mxu2 %v1600_v13  ;;  %v1644_v46 = vld [vmem:[%s2020_s1 + $0x1f0] sm:$0xff]  ;;  %v1618_v50 = vld [vmem:[%s2020_s1 + $0x128] sm:$0xff]  ;;  %v1617_v54 = vld [vmem:[%s2020_s1 + $0x120] sm:$0xff] }
  0x1f   : >> { %556 = vmatpush.bf16.msra.mxu3 %v1609_v14  ;;  %v277_v43 = vor.u32 %v276_v35, %v272_v34  ;;  %v1627_v47 = vld [vmem:[%s2020_s1 + $0x170] sm:$0xff]  ;;  %v1635_v51 = vld [vmem:[%s2020_s1 + $0x1a8] sm:$0xff]  ;;  %v1634_v55 = vld [vmem:[%s2020_s1 + $0x1a0] sm:$0xff] }
  0x20   : >> { %391 = vmatpush.bf16.msra.mxu1 %v1584_v15  ;;  %v1643_v52 = vld [vmem:[%s2020_s1 + $0x1e8] sm:$0xff]  ;;  %v1642_v56 = vld [vmem:[%s2020_s1 + $0x1e0] sm:$0xff]  ;;  %v1616_v58 = vld [vmem:[%s2020_s1 + $0x118] sm:$0xff] }
  0x21   : >> { %331 = vmatpush.bf16.msra.mxu0 %v1591_v16  ;;  %v1626_v53 = vld [vmem:[%s2020_s1 + $0x168] sm:$0xff]  ;;  %v1625_v57 = vld [vmem:[%s2020_s1 + $0x160] sm:$0xff]  ;;  %v1633_v59 = vld [vmem:[%s2020_s1 + $0x198] sm:$0xff] }
  0x22   : >> { %472 = vmatpush.bf16.msra.mxu2 %v1599_v17  ;;  %v1341_v60 = vld [vmem:[%s1823_s10 + $0x8] sm:$0xf]  ;;  %v1604_v61 = vld [vmem:[%s1823_s10 + $0x8] sm:$0x10]  ;;  %v1641_v62 = vld [vmem:[%s2020_s1 + $0x1d8] sm:$0xff] }
  0x23   : >> { %557 = vmatpush.bf16.msra.mxu3 %v1608_v18  ;;  %v1624_v63 = vld [vmem:[%s2020_s1 + $0x158] sm:$0xff]  ;;  %v1492_v0 = vld [vmem:[%s1823_s10 + $0x10] sm:$0xf]  ;;  %v1629_v1 = vld [vmem:[%s1823_s10 + $0x10] sm:$0x10]  ;;  %v1342_v2 = vor.u32 %v1604_v61, %v1341_v60 }
  0x24   : >> { %392 = vmatpush.bf16.msra.mxu1 %v1583_v19  ;;  %v1615_v3 = vld [vmem:[%s2020_s1 + $0x110] sm:$0xff]  ;;  %v1493_v5 = vor.u32 %v1629_v1, %v1492_v0  ;;  %v1614_v9 = vld [vmem:[%s2020_s1 + $0x108] sm:$0xff]  ;;  %v1613_v16 = vld [vmem:[%s2020_s1 + $0x100] sm:$0xff] }
  0x25   : >> { %332 = vmatpush.bf16.msra.mxu0 %v1590_v22  ;;  %v1632_v4 = vld [vmem:[%s2020_s1 + $0x190] sm:$0xff]  ;;  %v592_v8 = vshll.u32 %v1342_v2, 16  ;;  %v1631_v10 = vld [vmem:[%s2020_s1 + $0x188] sm:$0xff]  ;;  %v590_v14 = vshrl.u32 %v1342_v2, 16  ;;  %v1630_v17 = vld [vmem:[%s2020_s1 + $0x180] sm:$0xff] }
  0x26   : >> { %473 = vmatpush.bf16.msra.mxu2 %v1598_v23  ;;  %v1640_v6 = vld [vmem:[%s2020_s1 + $0x1d0] sm:$0xff]  ;;  %v850_v11 = vshll.u32 %v1493_v5, 16  ;;  %v1639_v12 = vld [vmem:[%s2020_s1 + $0x1c8] sm:$0xff]  ;;  %v1653_v18 = vld [vmem:[%s2020_s1 + $0x238] sm:$0xff]  ;;  %v848_v19 = vshrl.u32 %v1493_v5, 16  ;;  %v934_v34 = vrot.slane %v1493_v5, 1 }
  0x27   : >> { %558 = vmatpush.bf16.msra.mxu3 %v1607_v25  ;;  %v1623_v7 = vld [vmem:[%s2020_s1 + $0x150] sm:$0xff]  ;;  %v1622_v13 = vld [vmem:[%s2020_s1 + $0x148] sm:$0xff]  ;;  %v594_v15 = vrot.slane %v592_v8, 1  ;;  %v1638_v21 = vld [vmem:[%s2020_s1 + $0x1c0] sm:$0xff] }
  0x28   : >> { %393 = vmatpush.bf16.msra.mxu1 %v1582_v26  ;;  %v852_v20 = vrot.slane %v850_v11, 1  ;;  %v1621_v22 = vld [vmem:[%s2020_s1 + $0x140] sm:$0xff]  ;;  %v1424_v24 = vld [vmem:[%s1823_s10 + $0x10] sm:$0xf] }
  0x29   : >> { %333 = vmatpush.bf16.msra.mxu0 %v1589_v27  ;;  %v595_v23 = vor.u32 %v594_v15, %v590_v14  ;;  %v1652_v25 = vld [vmem:[%s2020_s1 + $0x230] sm:$0xff]  ;;  %v676_v27 = vrot.slane %v1342_v2, 1  ;;  %v1650_v29 = vld [vmem:[%s2020_s1 + $0x220] sm:$0xff] }
  0x2a   : >> { %474 = vmatpush.bf16.msra.mxu2 %v1597_v28  ;;  %v853_v26 = vor.u32 %v852_v20, %v848_v19  ;;  %v1651_v28 = vld [vmem:[%s2020_s1 + $0x228] sm:$0xff] }
  0x2b   : >> { %559 = vmatpush.bf16.msra.mxu3 %v1606_v30  ;;  %v1649_v30 = vld [vmem:[%s2020_s1 + $0x218] sm:$0xff] }
  0x2c   : >> { %394 = vmatpush.bf16.msra.mxu1 %v1581_v31  ;;  %v1648_v31 = vld [vmem:[%s2020_s1 + $0x210] sm:$0xff] }
  0x2d   : >> { %334 = vmatpush.bf16.msra.mxu0 %v1588_v32  ;;  %v1647_v32 = vld [vmem:[%s2020_s1 + $0x208] sm:$0xff] }
  0x2e   : >> { %475 = vmatpush.bf16.msra.mxu2 %v1596_v33  ;;  %v1646_v33 = vld [vmem:[%s2020_s1 + $0x200] sm:$0xff] }
  0x2f   : >> { %560 = vmatpush.bf16.msra.mxu3 %v1605_v38 }
  0x30   : >> { %395 = vmatpush.bf16.msra.mxu1 %v1580_v39  ;;  %335 = vmatmul.bf16.vlgmr.msra.gmra.mxu0 %v277_v43 }
  0x31   : >> { %645 = vmatpush.bf16.msrb.mxu0 %v1620_v36  ;;  %476 = vmatmul.bf16.vlgmr.msra.gmra.mxu2 %v418_v42 }
  0x32   : >> { %811 = vmatpush.bf16.msrb.mxu2 %v1637_v37  ;;  %561 = vmatmul.bf16.vlgmr.msra.gmra.mxu3 %v1273_v48 }
  0x33   : >> { %903 = vmatpush.bf16.msrb.mxu3 %v1645_v40  ;;  %396 = vmatmul.bf16.vlgmr.msra.gmra.mxu1 %v231_v49 }
  0x34   : >> { %726 = vmatpush.bf16.msrb.mxu1 %v1628_v41 }
  0x35   : >> { %646 = vmatpush.bf16.msrb.mxu0 %v1619_v44 }
  0x36   : >> { %812 = vmatpush.bf16.msrb.mxu2 %v1636_v45 }
  0x37   : >> { %904 = vmatpush.bf16.msrb.mxu3 %v1644_v46 }
  0x38   : >> { %727 = vmatpush.bf16.msrb.mxu1 %v1627_v47 }
  0x39   : >> { %647 = vmatpush.bf16.msrb.mxu0 %v1618_v50 }
  0x3a   : >> { %813 = vmatpush.bf16.msrb.mxu2 %v1635_v51 }
  0x3b   : >> { %905 = vmatpush.bf16.msrb.mxu3 %v1643_v52 }
  0x3c   : >> { %728 = vmatpush.bf16.msrb.mxu1 %v1626_v53 }
  0x3d   : >> { %648 = vmatpush.bf16.msrb.mxu0 %v1617_v54 }
  0x3e   : >> { %814 = vmatpush.bf16.msrb.mxu2 %v1634_v55 }
  0x3f   : >> { %906 = vmatpush.bf16.msrb.mxu3 %v1642_v56 }
  0x40   : >> { %729 = vmatpush.bf16.msrb.mxu1 %v1625_v57 }
  0x41   : >> { %649 = vmatpush.bf16.msrb.mxu0 %v1616_v58  ;;  %v1687_v58 = vld [vmem:[%s2021_s2] ss:$0 sm:$0xff] }
  0x42   : >> { %815 = vmatpush.bf16.msrb.mxu2 %v1633_v59 }
  0x43   : >> { %907 = vmatpush.bf16.msrb.mxu3 %v1641_v62 }
  0x44   : >> { %730 = vmatpush.bf16.msrb.mxu1 %v1624_v63 }
  0x45   : >> { %650 = vmatpush.bf16.msrb.mxu0 %v1615_v3 }
  0x46   : >> { %816 = vmatpush.bf16.msrb.mxu2 %v1632_v4 }
  0x47   : >> { %908 = vmatpush.bf16.msrb.mxu3 %v1640_v6 }
  0x48   : >> { %731 = vmatpush.bf16.msrb.mxu1 %v1623_v7 }
  0x49   : >> { %651 = vmatpush.bf16.msrb.mxu0 %v1614_v9 }
  0x4a   : >> { %817 = vmatpush.bf16.msrb.mxu2 %v1631_v10 }
  0x4b   : >> { %909 = vmatpush.bf16.msrb.mxu3 %v1639_v12 }
  0x4c   : >> { %732 = vmatpush.bf16.msrb.mxu1 %v1622_v13 }
  0x4d   : >> { %652 = vmatpush.bf16.msrb.mxu0 %v1613_v16 }
  0x4e   : >> { %818 = vmatpush.bf16.msrb.mxu2 %v1630_v17 }
  0x4f   : >> { %910 = vmatpush.bf16.msrb.mxu3 %v1638_v21 }
  0x50   : >> { %733 = vmatpush.bf16.msrb.mxu1 %v1621_v22  ;;  %653 = vmatmul.bf16.vlgmr.msrb.gmra.mxu0 %v595_v23 }
  0x51   : >> { %984 = vmatpush.bf16.msra.mxu0 %v1653_v18  ;;  %819 = vmatmul.bf16.vlgmr.msrb.gmra.mxu2 %v1424_v24 }
  0x52   : >> { %911 = vmatmul.bf16.vlgmr.msrb.gmra.mxu3 %v853_v26 }
  0x53   : >> { %734 = vmatmul.bf16.vlgmr.msrb.gmra.mxu1 %v676_v27 }
  0x55   : >> { %985 = vmatpush.bf16.msra.mxu0 %v1652_v25 }
  0x59   : >> { %986 = vmatpush.bf16.msra.mxu0 %v1651_v28 }
  0x5d   : >> { %987 = vmatpush.bf16.msra.mxu0 %v1650_v29 }
  0x61   : >> { %988 = vmatpush.bf16.msra.mxu0 %v1649_v30 }
  0x65   : >> { %989 = vmatpush.bf16.msra.mxu0 %v1648_v31 }
  0x69   : >> { %990 = vmatpush.bf16.msra.mxu0 %v1647_v32 }
  0x6d   : >> { %991 = vmatpush.bf16.msra.mxu0 %v1646_v33 }
  0x70   : >> { %992 = vmatmul.bf16.vlgmr.msra.gmra.mxu0 %v934_v34 }
  0xad   : >> { %v336_v35 = vpop.f32.mrf.mxu0 }
  0xb0   : >> { %v397_v36 = vpop.f32.mrf.mxu1 }
  0xb1   : >> { %v398_v45 = vadd.f32 %v397_v36, %v336_v35 }
  0xb4   : >> { %v477_v37 = vpop.f32.mrf.mxu2 }
  0xb5   : >> { %v562_v38 = vpop.f32.mrf.mxu3  ;;  %v338_v39 = vpop.f32.mrf.mxu0  ;;  %v481_v47 = vadd.f32 %v477_v37, %v398_v45 }
  0xb7   : >> { %v566_v51 = vadd.f32 %v562_v38, %v481_v47 }
  0xb8   : >> { %v399_v40 = vpop.f32.mrf.mxu1 }
  0xbc   : >> { %v479_v41 = vpop.f32.mrf.mxu2 }
  0xbd   : >> { %v564_v42 = vpop.f32.mrf.mxu3 }
  0xcd   : >> { %v654_v43 = vpop.f32.mrf.mxu0 }
  0xce   : >> { %v658_v53 = vadd.f32 %v654_v43, %v566_v51 }
  0xd0   : >> { %v735_v44 = vpop.f32.mrf.mxu1 }
  0xd1   : >> { %v739_v55 = vadd.f32 %v735_v44, %v658_v53 }
  0xd4   : >> { %v820_v46 = vpop.f32.mrf.mxu2 }
  0xd5   : >> { %v912_v48 = vpop.f32.mrf.mxu3  ;;  %v656_v49 = vpop.f32.mrf.mxu0  ;;  %v824_v56 = vadd.f32 %v820_v46, %v739_v55 }
  0xd7   : >> { %v916_v57 = vadd.f32 %v912_v48, %v824_v56 }
  0xd8   : >> { %v737_v50 = vpop.f32.mrf.mxu1 }
  0xdc   : >> { %v822_v52 = vpop.f32.mrf.mxu2 }
  0xdd   : >> { %v914_v54 = vpop.f32.mrf.mxu3 }
  0xed   : >> { %v993_v59 = vpop.f32.mrf.mxu0 }
  0xee   : >> { %v997_v60 = vadd.f32 %v993_v59, %v916_v57 }
  0xf0   : >> { %v1002_v61 = vadd.f32 %v1687_v58, %v997_v60 }
  0xf2   : >> { %v1003_v62 = vmax.f32 %v1002_v61, 0.0  ;;  %226 = sbr.rel (!%p224_p5) target bundleno = 16 (0x10), region = 87 }
  0xf4   : >> { %v1004_v63 = vpack.c.bf16 %v1003_v62, %v1003_v62 }
  0xf5   : >> { %v995_v0 = vpop.f32.mrf.mxu0 }
  0xf6   : >> { %1007 = vst [vmem:[%s1006_s4] sm:$0xf] %v1004_v63 }
  0xf7 PF: > { %s13_s14 = sadd.s32 1, %s1714_s14   ;;  %s2023_s12 = smov %s1710_s13 }
  0xf8   : > { %p10_p6 = scmp.ge.s32.totalorder %s13_s14, 4   ;;  %s2024_s13 = smov %s2026_s15 }
  0xfa   :  { %12 = sbr.rel (!%p10_p6) target bundleno = 2 (0x2), region = 98 }

// kernel: _lambda_.25
= control target key start
LH: loop header
LB: loop body
LE: loop exit
PB: predicated region body
PF: predicated region fallthrough
CT: control target
= control target key end

     0   :  { %s258_s1 = inlined_call_operand.vmem [shape: bf16[128,128], index: 1, kind: input, shape index: {}]   ;;  %s259_s2 = inlined_call_operand.vmem [shape: f32[1,128], index: 2, kind: input, shape index: {}]   ;;  %s260_s0 = inlined_call_operand.vmem [shape: bf16[32,128], index: 0, kind: input, shape index: {}]   ;;  %s261_s3 = inlined_call_operand.vmem [shape: bf16[32,128], index: 3, kind: output, shape index: {}]  }
   0x1   :  { %v178_v0 = vld [vmem:[%s258_s1 + $0x38] sm:$0xff]  ;;  %v177_v1 = vld [vmem:[%s258_s1 + $0x30] sm:$0xff]  ;;  %v176_v2 = vld [vmem:[%s258_s1 + $0x28] sm:$0xff] }
   0x2   :  { %98 = vmatpush.bf16.msra.mxu0 %v178_v0  ;;  %190 = vmatpush.bf16.msra.mxu1 %v178_v0  ;;  %v175_v3 = vld [vmem:[%s258_s1 + $0x20] sm:$0xff]  ;;  %v174_v4 = vld [vmem:[%s258_s1 + $0x18] sm:$0xff]  ;;  %v173_v5 = vld [vmem:[%s258_s1 + $0x10] sm:$0xff] }
   0x3   :  { %v172_v6 = vld [vmem:[%s258_s1 + $0x8] sm:$0xff]  ;;  %v171_v7 = vld [vmem:[%s258_s1] sm:$0xff] }
   0x4   :  { %v169_v8 = vld [vmem:[%s260_s0] sm:$0xff]  ;;  %v170_v9 = vld [vmem:[%s260_s0 + $0x8] sm:$0xff] }
   0x5   :  { %v198_v12 = vld [vmem:[%s259_s2] ss:$0 sm:$0xff] }
   0x6   :  { %99 = vmatpush.bf16.msra.mxu0 %v177_v1  ;;  %191 = vmatpush.bf16.msra.mxu1 %v177_v1 }
   0xa   :  { %100 = vmatpush.bf16.msra.mxu0 %v176_v2  ;;  %192 = vmatpush.bf16.msra.mxu1 %v176_v2 }
   0xe   :  { %101 = vmatpush.bf16.msra.mxu0 %v175_v3  ;;  %193 = vmatpush.bf16.msra.mxu1 %v175_v3 }
  0x12   :  { %102 = vmatpush.bf16.msra.mxu0 %v174_v4  ;;  %194 = vmatpush.bf16.msra.mxu1 %v174_v4 }
  0x16   :  { %103 = vmatpush.bf16.msra.mxu0 %v173_v5  ;;  %195 = vmatpush.bf16.msra.mxu1 %v173_v5 }
  0x1a   :  { %104 = vmatpush.bf16.msra.mxu0 %v172_v6  ;;  %196 = vmatpush.bf16.msra.mxu1 %v172_v6 }
  0x1e   :  { %105 = vmatpush.bf16.msra.mxu0 %v171_v7  ;;  %197 = vmatpush.bf16.msra.mxu1 %v171_v7 }
  0x21   :  { %106 = vmatmul.bf16.vlgmr.msra.gmra.mxu0 %v169_v8  ;;  %111 = vmatmul.bf16.vlgmr.msra.gmra.mxu1 %v170_v9 }
  0x9e   :  { %v107_v10 = vpop.f32.mrf.mxu0  ;;  %v112_v11 = vpop.f32.mrf.mxu1 }
  0x9f   :  { %v108_v15 = vadd.f32 %v198_v12, %v107_v10  ;;  %v113_v16 = vadd.f32 %v198_v12, %v112_v11 }
  0xa6   :  { %v109_v13 = vpop.f32.mrf.mxu0  ;;  %v114_v14 = vpop.f32.mrf.mxu1 }
  0xa7   :  { %v110_v17 = vadd.f32 %v198_v12, %v109_v13  ;;  %v115_v18 = vadd.f32 %v198_v12, %v114_v14 }
  0xa9   :  { %v182_v19 = vpack.c.bf16 %v110_v17, %v108_v15  ;;  %v187_v20 = vpack.c.bf16 %v115_v18, %v113_v16 }
  0xab   :  { %183 = vst [vmem:[%s261_s3] sm:$0xff] %v182_v19  }
  0xac   :  { %189 = vst [vmem:[%s261_s3 + $0x8] sm:$0xff] %v187_v20  }

// kernel: _lambda_.28
= control target key start
LH: loop header
LB: loop body
LE: loop exit
PB: predicated region body
PF: predicated region fallthrough
CT: control target
= control target key end

     0   :  { %s297_s1 = inlined_call_operand.vmem [shape: bf16[128,128], index: 1, kind: input, shape index: {}]   ;;  %s298_s2 = inlined_call_operand.vmem [shape: f32[1,128], index: 2, kind: input, shape index: {}]   ;;  %s299_s0 = inlined_call_operand.vmem [shape: bf16[32,128], index: 0, kind: input, shape index: {}]   ;;  %s300_s3 = inlined_call_operand.vmem [shape: bf16[32,128], index: 3, kind: input, shape index: {}]   ;;  %s301_s4 = inlined_call_operand.vmem [shape: bf16[32,128], index: 4, kind: output, shape index: {}]  }
   0x1   :  { %v197_v0 = vld [vmem:[%s297_s1 + $0x38] sm:$0xff]  ;;  %v196_v1 = vld [vmem:[%s297_s1 + $0x30] sm:$0xff]  ;;  %v195_v2 = vld [vmem:[%s297_s1 + $0x28] sm:$0xff] }
   0x2   :  { %101 = vmatpush.bf16.msra.mxu0 %v197_v0  ;;  %218 = vmatpush.bf16.msra.mxu1 %v197_v0  ;;  %v194_v3 = vld [vmem:[%s297_s1 + $0x20] sm:$0xff]  ;;  %v193_v4 = vld [vmem:[%s297_s1 + $0x18] sm:$0xff]  ;;  %v192_v5 = vld [vmem:[%s297_s1 + $0x10] sm:$0xff] }
   0x3   :  { %v191_v6 = vld [vmem:[%s297_s1 + $0x8] sm:$0xff]  ;;  %v190_v7 = vld [vmem:[%s297_s1] sm:$0xff] }
   0x4   :  { %v188_v8 = vld [vmem:[%s299_s0] sm:$0xff]  ;;  %v189_v9 = vld [vmem:[%s299_s0 + $0x8] sm:$0xff] }
   0x5   :  { %v226_v12 = vld [vmem:[%s298_s2] ss:$0 sm:$0xff]  ;;  %v216_v14 = vld [vmem:[%s300_s3 + $0x8] sm:$0xff]  }
   0x6   :  { %102 = vmatpush.bf16.msra.mxu0 %v196_v1  ;;  %219 = vmatpush.bf16.msra.mxu1 %v196_v1  ;;  %v199_v13 = vld [vmem:[%s300_s3] sm:$0xff]   ;;  %v204_v18 = vunpack.c.l.bf16 %v216_v14  ;;  %v205_v20 = vunpack.c.h.bf16 %v216_v14 }
   0x7   :  { %v200_v16 = vunpack.c.l.bf16 %v199_v13  ;;  %v201_v19 = vunpack.c.h.bf16 %v199_v13 }
   0xa   :  { %103 = vmatpush.bf16.msra.mxu0 %v195_v2  ;;  %220 = vmatpush.bf16.msra.mxu1 %v195_v2 }
   0xe   :  { %104 = vmatpush.bf16.msra.mxu0 %v194_v3  ;;  %221 = vmatpush.bf16.msra.mxu1 %v194_v3 }
  0x12   :  { %105 = vmatpush.bf16.msra.mxu0 %v193_v4  ;;  %222 = vmatpush.bf16.msra.mxu1 %v193_v4 }
  0x16   :  { %106 = vmatpush.bf16.msra.mxu0 %v192_v5  ;;  %223 = vmatpush.bf16.msra.mxu1 %v192_v5 }
  0x1a   :  { %107 = vmatpush.bf16.msra.mxu0 %v191_v6  ;;  %224 = vmatpush.bf16.msra.mxu1 %v191_v6 }
  0x1e   :  { %108 = vmatpush.bf16.msra.mxu0 %v190_v7  ;;  %225 = vmatpush.bf16.msra.mxu1 %v190_v7 }
  0x21   :  { %109 = vmatmul.bf16.vlgmr.msra.gmra.mxu0 %v188_v8  ;;  %114 = vmatmul.bf16.vlgmr.msra.gmra.mxu1 %v189_v9 }
  0x9e   :  { %v110_v10 = vpop.f32.mrf.mxu0  ;;  %v115_v11 = vpop.f32.mrf.mxu1 }
  0x9f   :  { %v111_v15 = vadd.f32 %v226_v12, %v110_v10  ;;  %v116_v17 = vadd.f32 %v226_v12, %v115_v11 }
  0xa1   :  { %v128_v23 = vadd.f32 %v200_v16, %v111_v15  ;;  %v130_v24 = vadd.f32 %v204_v18, %v116_v17 }
  0xa3   :  { %v132_v29 = vmax.f32 %v128_v23, 0.0  ;;  %v134_v30 = vmax.f32 %v130_v24, 0.0 }
  0xa6   :  { %v112_v21 = vpop.f32.mrf.mxu0  ;;  %v117_v22 = vpop.f32.mrf.mxu1 }
  0xa7   :  { %v113_v25 = vadd.f32 %v226_v12, %v112_v21  ;;  %v118_v26 = vadd.f32 %v226_v12, %v117_v22 }
  0xa9   :  { %v129_v27 = vadd.f32 %v201_v19, %v113_v25  ;;  %v131_v28 = vadd.f32 %v205_v20, %v118_v26 }
  0xab   :  { %v133_v31 = vmax.f32 %v129_v27, 0.0  ;;  %v135_v32 = vmax.f32 %v131_v28, 0.0 }
  0xad   :  { %v209_v33 = vpack.c.bf16 %v133_v31, %v132_v29  ;;  %v214_v34 = vpack.c.bf16 %v135_v32, %v134_v30 }
  0xaf   :  { %210 = vst [vmem:[%s301_s4] sm:$0xff] %v209_v33  }
  0xb0   :  { %217 = vst [vmem:[%s301_s4 + $0x8] sm:$0xff] %v214_v34  }

// kernel: _lambda_.27
= control target key start
LH: loop header
LB: loop body
LE: loop exit
PB: predicated region body
PF: predicated region fallthrough
CT: control target
= control target key end

     0   :  { %s1709_s12 = smov 0   ;;  %s1711_s13 = smov 0   ;;  %s1982_s0 = inlined_call_operand.vmem [shape: bf16[2,6,6,128], index: 0, kind: input, shape index: {}]   ;;  %s1983_s1 = inlined_call_operand.vmem [shape: bf16[9,128,128], index: 1, kind: input, shape index: {}]   ;;  %s1984_s2 = inlined_call_operand.vmem [shape: f32[1,128], index: 2, kind: input, shape index: {}]   ;;  %s1985_s3 = inlined_call_operand.vmem [shape: bf16[2,4,4,128], index: 3, kind: output, shape index: {}]  }
   0x1   :  { %s1713_s14 = smov 0  }
   0x2 LB: > { %s25_s15 = sadd.s32 1, %s1679_s13  ;;  %p1122_p0 = scmp.ge.s32.totalorder %s1683_s14, 1  ;;  %s1683_s14 = sphi %s1713_s14, %s13_s14   ;;  %s1679_s13 = sphi %s1711_s13, %s1987_s13   ;;  %s1675_s12 = sphi %s1709_s12, %s1986_s12  }
   0x3   : > { %p27_p1 = scmp.ge.s32.totalorder %s25_s15, 2  ;;  %p168_p2 = scmp.lt.s32.totalorder %s1683_s14, 3 }
   0x5   : > { %s1989_s15 = smov (%p27_p1, %s25_s15), 0  ;;  %p169_p3 = pnand %p1122_p0, %p168_p2 }
   0x6   : > { %p202_p4 = scmp.lt.s32.totalorder (!%p169_p3), %s1675_s12, 1  ;;  %s1737_s24 = smov (!%p169_p3), 0  }
   0x7   : > { %172 = sbr.rel (%p169_p3) target bundleno = 247 (0xf7), region = 32 }
   0xc   : > { %s1991_s12 = smov (!%p202_p4, %s1675_s12), 1 }
   0xd   : > { %s1623_s16 = smul.u32 24, %s1991_s12  ;;  %s1550_s17 = sshll.u32 %s1991_s12, 3 }
   0xe   : > { %s1730_s20 = scalar_lea.vmem %s1985_s3, %s1550_s17 }
   0xf   : > { %s1735_s23 = scalar_lea.vmem %s1982_s0, %s1623_s16 }
  0x10 LB: >> { %v1566_v0 = vld [vmem:[%s1983_s1 + $0x78] sm:$0xff]  ;;  %v1565_v4 = vld [vmem:[%s1983_s1 + $0x70] sm:$0xff]  ;;  %v1564_v8 = vld [vmem:[%s1983_s1 + $0x68] sm:$0xff]  ;;  %s1126_s28 = sshll.u32 %s1687_s24, 2  ;;  %s1687_s24 = sphi %s1737_s24, %s227_s24  }
  0x11   : >> { %v1574_v1 = vld [vmem:[%s1983_s1 + $0xb8] sm:$0xff]  ;;  %323 = vmatpush.bf16.msra.mxu0 %v1566_v0  ;;  %v1573_v5 = vld [vmem:[%s1983_s1 + $0xb0] sm:$0xff]  ;;  %v1572_v9 = vld [vmem:[%s1983_s1 + $0xa8] sm:$0xff]  ;;  %s1792_s10 = scalar_lea.vmem %s1735_s23, %s1126_s28  ;;  %s1547_s28 = sshll.u32 %s1687_s24, 1 }
  0x12   : >> { %v1582_v2 = vld [vmem:[%s1983_s1 + $0xf8] sm:$0xff]  ;;  %464 = vmatpush.bf16.msra.mxu2 %v1574_v1  ;;  %v1581_v6 = vld [vmem:[%s1983_s1 + $0xf0] sm:$0xff]  ;;  %v1580_v10 = vld [vmem:[%s1983_s1 + $0xe8] sm:$0xff]  ;;  %s994_s29 = scalar_lea.vmem %s1730_s20, %s1547_s28  ;;  %s227_s24 = sadd.s32 1, %s1687_s24  }
  0x13   : >> { %v1558_v3 = vld [vmem:[%s1983_s1 + $0x38] sm:$0xff]  ;;  %547 = vmatpush.bf16.msra.mxu3 %v1582_v2  ;;  %v1557_v7 = vld [vmem:[%s1983_s1 + $0x30] sm:$0xff]  ;;  %v1556_v11 = vld [vmem:[%s1983_s1 + $0x28] sm:$0xff]  ;;  %p224_p5 = scmp.ge.s32.totalorder %s227_s24, 4  }
  0x14   : >> { %384 = vmatpush.bf16.msra.mxu1 %v1558_v3  ;;  %v1563_v12 = vld [vmem:[%s1983_s1 + $0x60] sm:$0xff]  ;;  %v1562_v16 = vld [vmem:[%s1983_s1 + $0x58] sm:$0xff]  ;;  %v1561_v22 = vld [vmem:[%s1983_s1 + $0x50] sm:$0xff] }
  0x15   : >> { %324 = vmatpush.bf16.msra.mxu0 %v1565_v4  ;;  %v1571_v13 = vld [vmem:[%s1983_s1 + $0xa0] sm:$0xff]  ;;  %v1570_v17 = vld [vmem:[%s1983_s1 + $0x98] sm:$0xff]  ;;  %v1569_v23 = vld [vmem:[%s1983_s1 + $0x90] sm:$0xff] }
  0x16   : >> { %465 = vmatpush.bf16.msra.mxu2 %v1573_v5  ;;  %v1579_v14 = vld [vmem:[%s1983_s1 + $0xe0] sm:$0xff]  ;;  %v1578_v18 = vld [vmem:[%s1983_s1 + $0xd8] sm:$0xff]  ;;  %v1577_v25 = vld [vmem:[%s1983_s1 + $0xd0] sm:$0xff] }
  0x17   : >> { %548 = vmatpush.bf16.msra.mxu3 %v1581_v6  ;;  %v1555_v15 = vld [vmem:[%s1983_s1 + $0x20] sm:$0xff]  ;;  %v1554_v19 = vld [vmem:[%s1983_s1 + $0x18] sm:$0xff]  ;;  %v1553_v26 = vld [vmem:[%s1983_s1 + $0x10] sm:$0xff] }
  0x18   : >> { %385 = vmatpush.bf16.msra.mxu1 %v1557_v7  ;;  %v230_v20 = vld [vmem:[%s1792_s10] sm:$0x7]  ;;  %v1560_v27 = vld [vmem:[%s1983_s1 + $0x48] sm:$0xff]  ;;  %v1590_v36 = vld [vmem:[%s1983_s1 + $0x138] sm:$0xff] }
  0x19   : >> { %325 = vmatpush.bf16.msra.mxu0 %v1564_v8  ;;  %v265_v21 = vunpack.c.l.b16 %v230_v20  ;;  %v1568_v28 = vld [vmem:[%s1983_s1 + $0x88] sm:$0xff]  ;;  %v1559_v32 = vld [vmem:[%s1983_s1 + $0x40] sm:$0xff]  ;;  %v1606_v37 = vld [vmem:[%s1983_s1 + $0x1b8] sm:$0xff] }
  0x1a   : >> { %466 = vmatpush.bf16.msra.mxu2 %v1572_v9  ;;  %v1576_v30 = vld [vmem:[%s1983_s1 + $0xc8] sm:$0xff]  ;;  %v1567_v33 = vld [vmem:[%s1983_s1 + $0x80] sm:$0xff]  ;;  %v1614_v40 = vld [vmem:[%s1983_s1 + $0x1f8] sm:$0xff] }
  0x1b   : >> { %549 = vmatpush.bf16.msra.mxu3 %v1580_v10  ;;  %v266_v24 = vpack.c.b16 %v265_v21, %v265_v21  ;;  %v1552_v31 = vld [vmem:[%s1983_s1 + $0x8] sm:$0xff]  ;;  %v1575_v38 = vld [vmem:[%s1983_s1 + $0xc0] sm:$0xff]  ;;  %v1598_v41 = vld [vmem:[%s1983_s1 + $0x178] sm:$0xff] }
  0x1c   : >> { %386 = vmatpush.bf16.msra.mxu1 %v1556_v11  ;;  %v1551_v39 = vld [vmem:[%s1983_s1] sm:$0xff]  ;;  %v1589_v44 = vld [vmem:[%s1983_s1 + $0x130] sm:$0xff]  ;;  %v1588_v49 = vld [vmem:[%s1983_s1 + $0x128] sm:$0xff] }
  0x1d   : >> { %326 = vmatpush.bf16.msra.mxu0 %v1563_v12  ;;  %v270_v29 = vshll.u32 %v266_v24, 16  ;;  %v268_v34 = vshrl.u32 %v266_v24, 16  ;;  %v414_v42 = vrot.slane %v266_v24, 1  ;;  %v1605_v45 = vld [vmem:[%s1983_s1 + $0x1b0] sm:$0xff]  ;;  %v1256_v48 = vld [vmem:[%s1792_s10 + $0x4] sm:$0x7] }
  0x1e   : >> { %467 = vmatpush.bf16.msra.mxu2 %v1571_v13  ;;  %v1613_v46 = vld [vmem:[%s1983_s1 + $0x1f0] sm:$0xff]  ;;  %v1604_v50 = vld [vmem:[%s1983_s1 + $0x1a8] sm:$0xff]  ;;  %v1587_v53 = vld [vmem:[%s1983_s1 + $0x120] sm:$0xff]  ;;  %v579_v58 = vunpack.c.l.b16 %v1256_v48 }
  0x1f   : >> { %550 = vmatpush.bf16.msra.mxu3 %v1579_v14  ;;  %v272_v35 = vrot.slane %v270_v29, 1  ;;  %v1597_v47 = vld [vmem:[%s1983_s1 + $0x170] sm:$0xff]  ;;  %v1612_v51 = vld [vmem:[%s1983_s1 + $0x1e8] sm:$0xff]  ;;  %v1603_v54 = vld [vmem:[%s1983_s1 + $0x1a0] sm:$0xff] }
  0x20   : >> { %387 = vmatpush.bf16.msra.mxu1 %v1555_v15  ;;  %v1596_v52 = vld [vmem:[%s1983_s1 + $0x168] sm:$0xff]  ;;  %v1611_v55 = vld [vmem:[%s1983_s1 + $0x1e0] sm:$0xff]  ;;  %v1586_v59 = vld [vmem:[%s1983_s1 + $0x118] sm:$0xff]  ;;  %v580_v0 = vpack.c.b16 %v579_v58, %v579_v58 }
  0x21   : >> { %327 = vmatpush.bf16.msra.mxu0 %v1562_v16  ;;  %v273_v43 = vor.u32 %v272_v35, %v268_v34  ;;  %v1595_v56 = vld [vmem:[%s1983_s1 + $0x160] sm:$0xff]  ;;  %v1402_v57 = vld [vmem:[%s1792_s10 + $0x8] sm:$0x7]  ;;  %v1602_v60 = vld [vmem:[%s1983_s1 + $0x198] sm:$0xff] }
  0x22   : >> { %468 = vmatpush.bf16.msra.mxu2 %v1570_v17  ;;  %v833_v61 = vunpack.c.l.b16 %v1402_v57  ;;  %v1610_v62 = vld [vmem:[%s1983_s1 + $0x1d8] sm:$0xff]  ;;  %v1585_v1 = vld [vmem:[%s1983_s1 + $0x110] sm:$0xff]  ;;  %v584_v6 = vshll.u32 %v580_v0, 16  ;;  %v1584_v7 = vld [vmem:[%s1983_s1 + $0x108] sm:$0xff]  ;;  %v582_v12 = vshrl.u32 %v580_v0, 16  ;;  %v668_v24 = vrot.slane %v580_v0, 1 }
  0x23   : >> { %551 = vmatpush.bf16.msra.mxu3 %v1578_v18  ;;  %v1594_v63 = vld [vmem:[%s1983_s1 + $0x158] sm:$0xff]  ;;  %v1601_v2 = vld [vmem:[%s1983_s1 + $0x190] sm:$0xff]  ;;  %v1600_v8 = vld [vmem:[%s1983_s1 + $0x188] sm:$0xff] }
  0x24   : >> { %388 = vmatpush.bf16.msra.mxu1 %v1554_v19  ;;  %v834_v3 = vpack.c.b16 %v833_v61, %v833_v61  ;;  %v1609_v4 = vld [vmem:[%s1983_s1 + $0x1d0] sm:$0xff]  ;;  %v1608_v10 = vld [vmem:[%s1983_s1 + $0x1c8] sm:$0xff]  ;;  %v586_v13 = vrot.slane %v584_v6, 1  ;;  %v1583_v14 = vld [vmem:[%s1983_s1 + $0x100] sm:$0xff] }
  0x25   : >> { %328 = vmatpush.bf16.msra.mxu0 %v1561_v22  ;;  %v1593_v5 = vld [vmem:[%s1983_s1 + $0x150] sm:$0xff]  ;;  %v1592_v11 = vld [vmem:[%s1983_s1 + $0x148] sm:$0xff]  ;;  %v1599_v15 = vld [vmem:[%s1983_s1 + $0x180] sm:$0xff] }
  0x26   : >> { %469 = vmatpush.bf16.msra.mxu2 %v1569_v23  ;;  %v838_v9 = vshll.u32 %v834_v3, 16  ;;  %v1622_v16 = vld [vmem:[%s1983_s1 + $0x238] sm:$0xff]  ;;  %v836_v17 = vshrl.u32 %v834_v3, 16  ;;  %v1607_v19 = vld [vmem:[%s1983_s1 + $0x1c0] sm:$0xff]  ;;  %v587_v21 = vor.u32 %v586_v13, %v582_v12  ;;  %v1621_v22 = vld [vmem:[%s1983_s1 + $0x230] sm:$0xff] }
  0x27   : >> { %552 = vmatpush.bf16.msra.mxu3 %v1577_v25  ;;  %v1620_v25 = vld [vmem:[%s1983_s1 + $0x228] sm:$0xff] }
  0x28   : >> { %389 = vmatpush.bf16.msra.mxu1 %v1553_v26  ;;  %v840_v18 = vrot.slane %v838_v9, 1  ;;  %v1619_v26 = vld [vmem:[%s1983_s1 + $0x220] sm:$0xff]  ;;  %v1616_v29 = vld [vmem:[%s1983_s1 + $0x208] sm:$0xff] }
  0x29   : >> { %329 = vmatpush.bf16.msra.mxu0 %v1560_v27  ;;  %v1618_v27 = vld [vmem:[%s1983_s1 + $0x218] sm:$0xff] }
  0x2a   : >> { %470 = vmatpush.bf16.msra.mxu2 %v1568_v28  ;;  %v841_v23 = vor.u32 %v840_v18, %v836_v17  ;;  %v1617_v28 = vld [vmem:[%s1983_s1 + $0x210] sm:$0xff] }
  0x2b   : >> { %553 = vmatpush.bf16.msra.mxu3 %v1576_v30  ;;  %v1615_v30 = vld [vmem:[%s1983_s1 + $0x200] sm:$0xff] }
  0x2c   : >> { %390 = vmatpush.bf16.msra.mxu1 %v1552_v31  ;;  %v922_v31 = vrot.slane %v834_v3, 1 }
  0x2d   : >> { %330 = vmatpush.bf16.msra.mxu0 %v1559_v32 }
  0x2e   : >> { %471 = vmatpush.bf16.msra.mxu2 %v1567_v33 }
  0x2f   : >> { %554 = vmatpush.bf16.msra.mxu3 %v1575_v38 }
  0x30   : >> { %391 = vmatpush.bf16.msra.mxu1 %v1551_v39  ;;  %331 = vmatmul.bf16.vlgmr.msra.gmra.mxu0 %v273_v43 }
  0x31   : >> { %637 = vmatpush.bf16.msrb.mxu0 %v1590_v36  ;;  %472 = vmatmul.bf16.vlgmr.msra.gmra.mxu2 %v414_v42 }
  0x32   : >> { %801 = vmatpush.bf16.msrb.mxu2 %v1606_v37  ;;  %555 = vmatmul.bf16.vlgmr.msra.gmra.mxu3 %v1256_v48 }
  0x33   : >> { %891 = vmatpush.bf16.msrb.mxu3 %v1614_v40  ;;  %392 = vmatmul.bf16.vlgmr.msra.gmra.mxu1 %v230_v20  ;;  %v1591_v20 = vld [vmem:[%s1983_s1 + $0x140] sm:$0xff] }
  0x34   : >> { %718 = vmatpush.bf16.msrb.mxu1 %v1598_v41 }
  0x35   : >> { %638 = vmatpush.bf16.msrb.mxu0 %v1589_v44 }
  0x36   : >> { %802 = vmatpush.bf16.msrb.mxu2 %v1605_v45 }
  0x37   : >> { %892 = vmatpush.bf16.msrb.mxu3 %v1613_v46 }
  0x38   : >> { %719 = vmatpush.bf16.msrb.mxu1 %v1597_v47 }
  0x39   : >> { %639 = vmatpush.bf16.msrb.mxu0 %v1588_v49 }
  0x3a   : >> { %803 = vmatpush.bf16.msrb.mxu2 %v1604_v50 }
  0x3b   : >> { %893 = vmatpush.bf16.msrb.mxu3 %v1612_v51 }
  0x3c   : >> { %720 = vmatpush.bf16.msrb.mxu1 %v1596_v52 }
  0x3d   : >> { %640 = vmatpush.bf16.msrb.mxu0 %v1587_v53 }
  0x3e   : >> { %804 = vmatpush.bf16.msrb.mxu2 %v1603_v54 }
  0x3f   : >> { %894 = vmatpush.bf16.msrb.mxu3 %v1611_v55  ;;  %v1656_v55 = vld [vmem:[%s1984_s2] ss:$0 sm:$0xff] }
  0x40   : >> { %721 = vmatpush.bf16.msrb.mxu1 %v1595_v56 }
  0x41   : >> { %641 = vmatpush.bf16.msrb.mxu0 %v1586_v59 }
  0x42   : >> { %805 = vmatpush.bf16.msrb.mxu2 %v1602_v60 }
  0x43   : >> { %895 = vmatpush.bf16.msrb.mxu3 %v1610_v62 }
  0x44   : >> { %722 = vmatpush.bf16.msrb.mxu1 %v1594_v63 }
  0x45   : >> { %642 = vmatpush.bf16.msrb.mxu0 %v1585_v1 }
  0x46   : >> { %806 = vmatpush.bf16.msrb.mxu2 %v1601_v2 }
  0x47   : >> { %896 = vmatpush.bf16.msrb.mxu3 %v1609_v4 }
  0x48   : >> { %723 = vmatpush.bf16.msrb.mxu1 %v1593_v5 }
  0x49   : >> { %643 = vmatpush.bf16.msrb.mxu0 %v1584_v7 }
  0x4a   : >> { %807 = vmatpush.bf16.msrb.mxu2 %v1600_v8 }
  0x4b   : >> { %897 = vmatpush.bf16.msrb.mxu3 %v1608_v10 }
  0x4c   : >> { %724 = vmatpush.bf16.msrb.mxu1 %v1592_v11 }
  0x4d   : >> { %644 = vmatpush.bf16.msrb.mxu0 %v1583_v14 }
  0x4e   : >> { %808 = vmatpush.bf16.msrb.mxu2 %v1599_v15 }
  0x4f   : >> { %898 = vmatpush.bf16.msrb.mxu3 %v1607_v19 }
  0x50   : >> { %725 = vmatpush.bf16.msrb.mxu1 %v1591_v20  ;;  %645 = vmatmul.bf16.vlgmr.msrb.gmra.mxu0 %v587_v21 }
  0x51   : >> { %972 = vmatpush.bf16.msra.mxu0 %v1622_v16  ;;  %809 = vmatmul.bf16.vlgmr.msrb.gmra.mxu2 %v1402_v57 }
  0x52   : >> { %899 = vmatmul.bf16.vlgmr.msrb.gmra.mxu3 %v841_v23 }
  0x53   : >> { %726 = vmatmul.bf16.vlgmr.msrb.gmra.mxu1 %v668_v24 }
  0x55   : >> { %973 = vmatpush.bf16.msra.mxu0 %v1621_v22 }
  0x59   : >> { %974 = vmatpush.bf16.msra.mxu0 %v1620_v25 }
  0x5d   : >> { %975 = vmatpush.bf16.msra.mxu0 %v1619_v26 }
  0x61   : >> { %976 = vmatpush.bf16.msra.mxu0 %v1618_v27 }
  0x65   : >> { %977 = vmatpush.bf16.msra.mxu0 %v1617_v28 }
  0x69   : >> { %978 = vmatpush.bf16.msra.mxu0 %v1616_v29 }
  0x6d   : >> { %979 = vmatpush.bf16.msra.mxu0 %v1615_v30 }
  0x70   : >> { %980 = vmatmul.bf16.vlgmr.msra.gmra.mxu0 %v922_v31 }
  0xad   : >> { %v332_v32 = vpop.f32.mrf.mxu0 }
  0xb0   : >> { %v393_v33 = vpop.f32.mrf.mxu1 }
  0xb1   : >> { %v394_v42 = vadd.f32 %v393_v33, %v332_v32 }
  0xb4   : >> { %v473_v34 = vpop.f32.mrf.mxu2 }
  0xb5   : >> { %v556_v35 = vpop.f32.mrf.mxu3  ;;  %v334_v36 = vpop.f32.mrf.mxu0  ;;  %v477_v44 = vadd.f32 %v473_v34, %v394_v42 }
  0xb7   : >> { %v560_v48 = vadd.f32 %v556_v35, %v477_v44 }
  0xb8   : >> { %v395_v37 = vpop.f32.mrf.mxu1 }
  0xbc   : >> { %v475_v38 = vpop.f32.mrf.mxu2 }
  0xbd   : >> { %v558_v39 = vpop.f32.mrf.mxu3 }
  0xcd   : >> { %v646_v40 = vpop.f32.mrf.mxu0 }
  0xce   : >> { %v650_v50 = vadd.f32 %v646_v40, %v560_v48 }
  0xd0   : >> { %v727_v41 = vpop.f32.mrf.mxu1 }
  0xd1   : >> { %v731_v52 = vadd.f32 %v727_v41, %v650_v50 }
  0xd4   : >> { %v810_v43 = vpop.f32.mrf.mxu2 }
  0xd5   : >> { %v900_v45 = vpop.f32.mrf.mxu3  ;;  %v648_v46 = vpop.f32.mrf.mxu0  ;;  %v814_v53 = vadd.f32 %v810_v43, %v731_v52 }
  0xd7   : >> { %v904_v54 = vadd.f32 %v900_v45, %v814_v53 }
  0xd8   : >> { %v729_v47 = vpop.f32.mrf.mxu1 }
  0xdc   : >> { %v812_v49 = vpop.f32.mrf.mxu2 }
  0xdd   : >> { %v902_v51 = vpop.f32.mrf.mxu3 }
  0xed   : >> { %v981_v56 = vpop.f32.mrf.mxu0 }
  0xee   : >> { %v985_v57 = vadd.f32 %v981_v56, %v904_v54 }
  0xf0   : >> { %v990_v58 = vadd.f32 %v1656_v55, %v985_v57 }
  0xf2   : >> { %v991_v59 = vmax.f32 %v990_v58, 0.0  ;;  %226 = sbr.rel (!%p224_p5) target bundleno = 16 (0x10), region = 87 }
  0xf4   : >> { %v992_v60 = vpack.c.bf16 %v991_v59, %v991_v59 }
  0xf5   : >> { %v983_v61 = vpop.f32.mrf.mxu0 }
  0xf6   : >> { %995 = vst [vmem:[%s994_s29] sm:$0x3] %v992_v60 }
  0xf7 PF: > { %s13_s14 = sadd.s32 1, %s1683_s14   ;;  %s1986_s12 = smov %s1679_s13 }
  0xf8   : > { %p10_p6 = scmp.ge.s32.totalorder %s13_s14, 4   ;;  %s1987_s13 = smov %s1989_s15 }
  0xfa   :  { %12 = sbr.rel (!%p10_p6) target bundleno = 2 (0x2), region = 98 }

</bundles_post_ra>
